<compile_context>
chip_gen: v6e
topology: v6e:2x2x1
jax: 0.10.0
libtpu: 0.0.40
codegen_flags: <defaults>
</compile_context>

<pallas_src>
import functools

import jax
import jax.numpy as jnp
from jax import lax
from jax.experimental import pallas as pl
from jax.experimental.pallas import tpu as pltpu

KAPPA = 0.5
DECAY = 0.25


# ---------------------------------------------------------------------------
# Pallas kernel: fused 3x3 conv (9 shifted matmuls) + LIF update + spiking
# ---------------------------------------------------------------------------
def _lif_conv_kernel(thres_ref, x_ref, w_ref, b_ref, mem_ref, spike_ref,
                     mem_out_ref, spike_out_ref, *, H, W, decay):
    HW = H * W
    # Column (w) coordinate of every output pixel row; used to mask the taps
    # that would otherwise read across the left / right image border.
    col = lax.broadcasted_iota(jnp.int32, (HW, 1), 0) % W

    acc = jnp.zeros(mem_ref.shape, jnp.float32)
    for kw in range(3):
        part = jnp.zeros(mem_ref.shape, jnp.float32)
        for kh in range(3):
            # Output pixel p = h*W + w sits at padded-input row 2*W + p; tap
            # (kh, kw) needs padded-input row 2*W + p + (kh-1)*W + (kw-1).
            start = 2 * W + (kh - 1) * W + (kw - 1)       # static, >= W-1
            xs = x_ref[pl.ds(start, HW), :]               # (HW, Cin) bf16
            part += jnp.dot(xs, w_ref[kh * 3 + kw],       # (Cin, TN) bf16
                            preferred_element_type=jnp.float32)
        if kw == 0:
            part = jnp.where(col > 0, part, 0.0)          # left border pad
        elif kw == 2:
            part = jnp.where(col < W - 1, part, 0.0)      # right border pad
        acc += part

    conv = acc + b_ref[...]                               # (HW, TN) + (1, TN)
    thres = thres_ref[0]                                  # SMEM scalar (f32)

    mem_new = mem_ref[...] * decay * (1.0 - spike_ref[...]) + conv
    spike_new = (mem_new > thres).astype(jnp.float32)
    mem_out_ref[...] = mem_new
    spike_out_ref[...] = spike_new


# ---------------------------------------------------------------------------
# Wrapper: layout plumbing (NCHW <-> row-flattened NHWC) + pallas_call
# ---------------------------------------------------------------------------
@functools.partial(jax.jit, static_argnames=("tn",))
def lif_neuron_forward(x_nchw, weight_oihw, bias, mem_nchw, spike_nchw,
                       w_param, *, tn=128):
    """Fused conv2d(3x3, pad=1, stride=1) + LIF membrane update + spiking.

    x:      (N, Cin, H, W) f32     weight: (Cout, Cin, 3, 3) f32
    bias:   (Cout,) f32            mem/spike: (N, Cout, H, W) f32
    w_param: scalar (learnable kappa); threshold = sigmoid(w_param)
    Returns (mem_new, spike_new) in NCHW, float32.
    """
    N, Cin, H, W = x_nchw.shape
    Cout, Cin_w, KH, KW = weight_oihw.shape
    assert (KH, KW) == (3, 3) and Cin_w == Cin
    HW = H * W
    HPW = (H + 4) * W                       # 2 zero image-rows of halo per side
    cout_p = pl.cdiv(Cout, tn) * tn         # lane-dense channel padding
    pad_c = cout_p - Cout

    # Threshold as a traced (1,) f32 array -> SMEM scalar (no recompiles).
    thres = jax.nn.sigmoid(jnp.asarray(w_param, jnp.float32)).reshape(1)

    # x: NCHW -> NHWC -> pad H by 2 rows each side -> flatten spatial -> bf16.
    x = jnp.transpose(x_nchw, (0, 2, 3, 1))
    x = jnp.pad(x, ((0, 0), (2, 2), (0, 0), (0, 0)))
    x = x.reshape(N, HPW, Cin).astype(jnp.bfloat16)

    # Weights: (Cout,Cin,3,3) -> per-tap (9, Cin, Cout_p) bf16; bias (1, Cout_p).
    w = jnp.transpose(weight_oihw, (2, 3, 1, 0)).reshape(9, Cin, Cout)
    w = jnp.pad(w, ((0, 0), (0, 0), (0, pad_c))).astype(jnp.bfloat16)
    b = jnp.pad(bias.reshape(1, Cout), ((0, 0), (0, pad_c))).astype(jnp.float32)

    # State: NCHW -> (N, H*W, Cout_p) f32 (channel-padded with zeros).
    def to_rows(t):
        t = jnp.transpose(t, (0, 2, 3, 1)).reshape(N, HW, Cout)
        return jnp.pad(t, ((0, 0), (0, 0), (0, pad_c))).astype(jnp.float32)

    mem = to_rows(mem_nchw)
    spike = to_rows(spike_nchw)

    kernel = functools.partial(_lif_conv_kernel, H=H, W=W, decay=DECAY)
    grid = (N, cout_p // tn)

    mem_new, spike_new = pl.pallas_call(
        kernel,
        out_shape=(jax.ShapeDtypeStruct((N, HW, cout_p), jnp.float32),
                   jax.ShapeDtypeStruct((N, HW, cout_p), jnp.float32)),
        grid_spec=pltpu.PrefetchScalarGridSpec(
            num_scalar_prefetch=0,
            grid=grid,
            in_specs=[
                # threshold scalar, whole array in SMEM
                pl.BlockSpec(memory_space=pltpu.MemorySpace.SMEM),
                # padded, row-flattened image for batch n (reused across Cout tiles)
                pl.BlockSpec((None, HPW, Cin), lambda n, c: (n, 0, 0)),
                # per-tap conv weights for this Cout tile
                pl.BlockSpec((9, Cin, tn), lambda n, c: (0, 0, c)),
                # bias for this Cout tile
                pl.BlockSpec((1, tn), lambda n, c: (0, c)),
                # membrane / previous-spike state
                pl.BlockSpec((None, HW, tn), lambda n, c: (n, 0, c)),
                pl.BlockSpec((None, HW, tn), lambda n, c: (n, 0, c)),
            ],
            out_specs=[
                pl.BlockSpec((None, HW, tn), lambda n, c: (n, 0, c)),
                pl.BlockSpec((None, HW, tn), lambda n, c: (n, 0, c)),
            ],
        ),
        compiler_params=pltpu.CompilerParams(
            dimension_semantics=("parallel", "arbitrary")),
    )(thres, x, w, b, mem, spike)

    # Back to NCHW, drop channel padding.
    def from_rows(t):
        t = t[:, :, :Cout].reshape(N, H, W, Cout)
        return jnp.transpose(t, (0, 3, 1, 2))

    return from_rows(mem_new), from_rows(spike_new)


# ---------------------------------------------------------------------------
# Pure-JAX f32 reference (mirrors the PyTorch mem_update / ActFun semantics)
# ---------------------------------------------------------------------------
def lif_neuron_reference(x, weight, bias, mem, spike, w_param):
    thres = jax.nn.sigmoid(jnp.asarray(w_param, jnp.float32))
    conv = lax.conv_general_dilated(
        x, weight, window_strides=(1, 1), padding=((1, 1), (1, 1)),
        dimension_numbers=("NCHW", "OIHW", "NCHW"))
    conv = conv + bias.reshape(1, -1, 1, 1)
    mem_new = mem * DECAY * (1.0 - spike) + conv
    spike_new = (mem_new > thres).astype(jnp.float32)
    return mem_new, spike_new


if __name__ == "__main__":
    key = jax.random.PRNGKey(0)
    k_x, k_w, k_b, k_m, k_s = jax.random.split(key, 5)

    # Small shapes consistent with a SpikingVGG9 conv block.
    N, Cin, Cout, H, W = 2, 4, 8, 16, 16

    x = jax.random.normal(k_x, (N, Cin, H, W), dtype=jnp.float32)
    weight = jax.random.normal(k_w, (Cout, Cin, 3, 3), dtype=jnp.float32) * 0.1
    bias = jax.random.normal(k_b, (Cout,), dtype=jnp.float32) * 0.1
    mem0 = jax.random.normal(k_m, (N, Cout, H, W), dtype=jnp.float32)
    spike0 = jax.random.bernoulli(k_s, 0.5, (N, Cout, H, W)).astype(jnp.float32)

    mem_new, spike_new = lif_neuron_forward(x, weight, bias, mem0, spike0,
                                            KAPPA)
    jax.block_until_ready((mem_new, spike_new))

    # Correctness vs. the f32 reference.  The kernel uses bf16 matmul operands,
    # so allow small numeric slack on the membrane and rare spike flips for
    # membrane values that land within ~1e-2 of the threshold.
    mem_ref, spike_ref = lif_neuron_reference(x, weight, bias, mem0, spike0,
                                              KAPPA)
    assert jnp.allclose(mem_new, mem_ref, atol=5e-2, rtol=5e-2)
    assert float(jnp.mean(jnp.abs(spike_new - spike_ref))) < 0.02

    print("KERNEL_OK")
</pallas_src>

<mosaic_0001>
module attributes {stable_mosaic.version = 11 : i64} {
  func.func @_lif_conv_kernel(%arg0: i32, %arg1: i32, %arg2: memref<1xf32, #tpu.memory_space<smem>>, %arg3: memref<1x320x4xbf16, #tpu.memory_space<vmem>>, %arg4: memref<9x4x128xbf16, #tpu.memory_space<vmem>>, %arg5: memref<1x128xf32, #tpu.memory_space<vmem>>, %arg6: memref<1x256x128xf32, #tpu.memory_space<vmem>>, %arg7: memref<1x256x128xf32, #tpu.memory_space<vmem>>, %arg8: memref<1x256x128xf32, #tpu.memory_space<vmem>>, %arg9: memref<1x256x128xf32, #tpu.memory_space<vmem>>) attributes {dimension_semantics = [#tpu.dimension_semantics<parallel>, #tpu.dimension_semantics<arbitrary>], iteration_bounds = array<i64: 2, 1>, scalar_prefetch = 0 : i64, scratch_operands = 0 : i64, tpu.core_type = #tpu.core_type<tc>, window_params = [{transform_indices = @transform_0, window_bounds = array<i64: 1>}, {transform_indices = @transform_1, window_bounds = array<i64: 1, 320, 4>}, {transform_indices = @transform_2, window_bounds = array<i64: 9, 4, 128>}, {transform_indices = @transform_3, window_bounds = array<i64: 1, 128>}, {transform_indices = @transform_4, window_bounds = array<i64: 1, 256, 128>}, {transform_indices = @transform_5, window_bounds = array<i64: 1, 256, 128>}, {transform_indices = @transform_6, window_bounds = array<i64: 1, 256, 128>}, {transform_indices = @transform_7, window_bounds = array<i64: 1, 256, 128>}]} {
    %0 = tpu.iota {dimensions = array<i32: 0>} : vector<256x1xi32>
    %c16_i32 = arith.constant 16 : i32
    %c0_i32 = arith.constant 0 : i32
    %1 = arith.cmpi eq, %c16_i32, %c0_i32 : i32
    %c1_i32 = arith.constant 1 : i32
    %2 = arith.select %1, %c1_i32, %c16_i32 : i32
    %3 = vector.broadcast %2 : i32 to vector<256x1xi32>
    %4 = arith.remsi %0, %3 : vector<256x1xi32>
    %c0_i32_0 = arith.constant 0 : i32
    %5 = vector.broadcast %c0_i32_0 : i32 to vector<256x1xi32>
    %6 = arith.cmpi ne, %4, %5 : vector<256x1xi32>
    %c0_i32_1 = arith.constant 0 : i32
    %7 = vector.broadcast %c0_i32_1 : i32 to vector<256x1xi32>
    %8 = arith.cmpi slt, %4, %7 : vector<256x1xi32>
    %c0_i32_2 = arith.constant 0 : i32
    %9 = arith.cmpi slt, %2, %c0_i32_2 : i32
    %10 = vector.broadcast %9 : i1 to vector<256x1xi1>
    %11 = vector.broadcast %10 : vector<256x1xi1> to vector<256x1xi1>
    %12 = arith.xori %8, %11 : vector<256x1xi1>
    %13 = arith.andi %12, %6 : vector<256x1xi1>
    %14 = vector.broadcast %2 : i32 to vector<256x1xi32>
    %15 = arith.addi %4, %14 : vector<256x1xi32>
    %16 = arith.select %13, %15, %4 : vector<256x1xi1>, vector<256x1xi32>
    %cst = arith.constant 0.000000e+00 : f32
    %17 = vector.broadcast %cst : f32 to vector<256x128xf32>
    %cst_3 = arith.constant 0.000000e+00 : f32
    %18 = vector.broadcast %cst_3 : f32 to vector<256x128xf32>
    %c0 = arith.constant 0 : index
    %c15 = arith.constant 15 : index
    %c0_4 = arith.constant 0 : index
    %19 = vector.load %arg3[%c0, %c15, %c0_4] : memref<1x320x4xbf16, #tpu.memory_space<vmem>>, vector<1x256x4xbf16>
    %20 = vector.shape_cast %19 : vector<1x256x4xbf16> to vector<256x4xbf16>
    %c0_5 = arith.constant 0 : index
    %c0_6 = arith.constant 0 : index
    %c0_7 = arith.constant 0 : index
    %21 = vector.load %arg4[%c0_5, %c0_6, %c0_7] : memref<9x4x128xbf16, #tpu.memory_space<vmem>>, vector<1x4x128xbf16>
    %22 = vector.shape_cast %21 : vector<1x4x128xbf16> to vector<4x128xbf16>
    %cst_8 = arith.constant dense<0.000000e+00> : vector<256x128xf32>
    %23 = tpu.matmul %20, %22, %cst_8 {dimension_numbers = #tpu.dot_dimension_numbers<[1], [0], [0], [1], [0, 0, 1, 1], [], []>} : vector<256x4xbf16>, vector<4x128xbf16>, vector<256x128xf32> -> vector<256x128xf32>
    %24 = arith.addf %18, %23 : vector<256x128xf32>
    %c0_9 = arith.constant 0 : index
    %c31 = arith.constant 31 : index
    %c0_10 = arith.constant 0 : index
    %25 = vector.load %arg3[%c0_9, %c31, %c0_10] : memref<1x320x4xbf16, #tpu.memory_space<vmem>>, vector<1x256x4xbf16>
    %26 = vector.shape_cast %25 : vector<1x256x4xbf16> to vector<256x4xbf16>
    %c3 = arith.constant 3 : index
    %c0_11 = arith.constant 0 : index
    %c0_12 = arith.constant 0 : index
    %27 = vector.load %arg4[%c3, %c0_11, %c0_12] : memref<9x4x128xbf16, #tpu.memory_space<vmem>>, vector<1x4x128xbf16>
    %28 = vector.shape_cast %27 : vector<1x4x128xbf16> to vector<4x128xbf16>
    %cst_13 = arith.constant dense<0.000000e+00> : vector<256x128xf32>
    %29 = tpu.matmul %26, %28, %cst_13 {dimension_numbers = #tpu.dot_dimension_numbers<[1], [0], [0], [1], [0, 0, 1, 1], [], []>} : vector<256x4xbf16>, vector<4x128xbf16>, vector<256x128xf32> -> vector<256x128xf32>
    %30 = arith.addf %24, %29 : vector<256x128xf32>
    %c0_14 = arith.constant 0 : index
    %c47 = arith.constant 47 : index
    %c0_15 = arith.constant 0 : index
    %31 = vector.load %arg3[%c0_14, %c47, %c0_15] : memref<1x320x4xbf16, #tpu.memory_space<vmem>>, vector<1x256x4xbf16>
    %32 = vector.shape_cast %31 : vector<1x256x4xbf16> to vector<256x4xbf16>
    %c6 = arith.constant 6 : index
    %c0_16 = arith.constant 0 : index
    %c0_17 = arith.constant 0 : index
    %33 = vector.load %arg4[%c6, %c0_16, %c0_17] : memref<9x4x128xbf16, #tpu.memory_space<vmem>>, vector<1x4x128xbf16>
    %34 = vector.shape_cast %33 : vector<1x4x128xbf16> to vector<4x128xbf16>
    %cst_18 = arith.constant dense<0.000000e+00> : vector<256x128xf32>
    %35 = tpu.matmul %32, %34, %cst_18 {dimension_numbers = #tpu.dot_dimension_numbers<[1], [0], [0], [1], [0, 0, 1, 1], [], []>} : vector<256x4xbf16>, vector<4x128xbf16>, vector<256x128xf32> -> vector<256x128xf32>
    %36 = arith.addf %30, %35 : vector<256x128xf32>
    %c0_i32_19 = arith.constant 0 : i32
    %37 = vector.broadcast %c0_i32_19 : i32 to vector<256x1xi32>
    %38 = arith.cmpi sgt, %16, %37 : vector<256x1xi32>
    %cst_20 = arith.constant 0.000000e+00 : f32
    %39 = vector.shape_cast %38 : vector<256x1xi1> to vector<256x1xi1>
    %40 = vector.broadcast %39 : vector<256x1xi1> to vector<256x128xi1>
    %41 = vector.broadcast %cst_20 : f32 to vector<256x128xf32>
    %42 = arith.select %40, %36, %41 : vector<256x128xi1>, vector<256x128xf32>
    %43 = arith.addf %17, %42 : vector<256x128xf32>
    %cst_21 = arith.constant 0.000000e+00 : f32
    %44 = vector.broadcast %cst_21 : f32 to vector<256x128xf32>
    %c0_22 = arith.constant 0 : index
    %c16 = arith.constant 16 : index
    %c0_23 = arith.constant 0 : index
    %45 = vector.load %arg3[%c0_22, %c16, %c0_23] : memref<1x320x4xbf16, #tpu.memory_space<vmem>>, vector<1x256x4xbf16>
    %46 = vector.shape_cast %45 : vector<1x256x4xbf16> to vector<256x4xbf16>
    %c1 = arith.constant 1 : index
    %c0_24 = arith.constant 0 : index
    %c0_25 = arith.constant 0 : index
    %47 = vector.load %arg4[%c1, %c0_24, %c0_25] : memref<9x4x128xbf16, #tpu.memory_space<vmem>>, vector<1x4x128xbf16>
    %48 = vector.shape_cast %47 : vector<1x4x128xbf16> to vector<4x128xbf16>
    %cst_26 = arith.constant dense<0.000000e+00> : vector<256x128xf32>
    %49 = tpu.matmul %46, %48, %cst_26 {dimension_numbers = #tpu.dot_dimension_numbers<[1], [0], [0], [1], [0, 0, 1, 1], [], []>} : vector<256x4xbf16>, vector<4x128xbf16>, vector<256x128xf32> -> vector<256x128xf32>
    %50 = arith.addf %44, %49 : vector<256x128xf32>
    %c0_27 = arith.constant 0 : index
    %c32 = arith.constant 32 : index
    %c0_28 = arith.constant 0 : index
    %51 = vector.load %arg3[%c0_27, %c32, %c0_28] : memref<1x320x4xbf16, #tpu.memory_space<vmem>>, vector<1x256x4xbf16>
    %52 = vector.shape_cast %51 : vector<1x256x4xbf16> to vector<256x4xbf16>
    %c4 = arith.constant 4 : index
    %c0_29 = arith.constant 0 : index
    %c0_30 = arith.constant 0 : index
    %53 = vector.load %arg4[%c4, %c0_29, %c0_30] : memref<9x4x128xbf16, #tpu.memory_space<vmem>>, vector<1x4x128xbf16>
    %54 = vector.shape_cast %53 : vector<1x4x128xbf16> to vector<4x128xbf16>
    %cst_31 = arith.constant dense<0.000000e+00> : vector<256x128xf32>
    %55 = tpu.matmul %52, %54, %cst_31 {dimension_numbers = #tpu.dot_dimension_numbers<[1], [0], [0], [1], [0, 0, 1, 1], [], []>} : vector<256x4xbf16>, vector<4x128xbf16>, vector<256x128xf32> -> vector<256x128xf32>
    %56 = arith.addf %50, %55 : vector<256x128xf32>
    %c0_32 = arith.constant 0 : index
    %c48 = arith.constant 48 : index
    %c0_33 = arith.constant 0 : index
    %57 = vector.load %arg3[%c0_32, %c48, %c0_33] : memref<1x320x4xbf16, #tpu.memory_space<vmem>>, vector<1x256x4xbf16>
    %58 = vector.shape_cast %57 : vector<1x256x4xbf16> to vector<256x4xbf16>
    %c7 = arith.constant 7 : index
    %c0_34 = arith.constant 0 : index
    %c0_35 = arith.constant 0 : index
    %59 = vector.load %arg4[%c7, %c0_34, %c0_35] : memref<9x4x128xbf16, #tpu.memory_space<vmem>>, vector<1x4x128xbf16>
    %60 = vector.shape_cast %59 : vector<1x4x128xbf16> to vector<4x128xbf16>
    %cst_36 = arith.constant dense<0.000000e+00> : vector<256x128xf32>
    %61 = tpu.matmul %58, %60, %cst_36 {dimension_numbers = #tpu.dot_dimension_numbers<[1], [0], [0], [1], [0, 0, 1, 1], [], []>} : vector<256x4xbf16>, vector<4x128xbf16>, vector<256x128xf32> -> vector<256x128xf32>
    %62 = arith.addf %56, %61 : vector<256x128xf32>
    %63 = arith.addf %43, %62 : vector<256x128xf32>
    %cst_37 = arith.constant 0.000000e+00 : f32
    %64 = vector.broadcast %cst_37 : f32 to vector<256x128xf32>
    %c0_38 = arith.constant 0 : index
    %c17 = arith.constant 17 : index
    %c0_39 = arith.constant 0 : index
    %65 = vector.load %arg3[%c0_38, %c17, %c0_39] : memref<1x320x4xbf16, #tpu.memory_space<vmem>>, vector<1x256x4xbf16>
    %66 = vector.shape_cast %65 : vector<1x256x4xbf16> to vector<256x4xbf16>
    %c2 = arith.constant 2 : index
    %c0_40 = arith.constant 0 : index
    %c0_41 = arith.constant 0 : index
    %67 = vector.load %arg4[%c2, %c0_40, %c0_41] : memref<9x4x128xbf16, #tpu.memory_space<vmem>>, vector<1x4x128xbf16>
    %68 = vector.shape_cast %67 : vector<1x4x128xbf16> to vector<4x128xbf16>
    %cst_42 = arith.constant dense<0.000000e+00> : vector<256x128xf32>
    %69 = tpu.matmul %66, %68, %cst_42 {dimension_numbers = #tpu.dot_dimension_numbers<[1], [0], [0], [1], [0, 0, 1, 1], [], []>} : vector<256x4xbf16>, vector<4x128xbf16>, vector<256x128xf32> -> vector<256x128xf32>
    %70 = arith.addf %64, %69 : vector<256x128xf32>
    %c0_43 = arith.constant 0 : index
    %c33 = arith.constant 33 : index
    %c0_44 = arith.constant 0 : index
    %71 = vector.load %arg3[%c0_43, %c33, %c0_44] : memref<1x320x4xbf16, #tpu.memory_space<vmem>>, vector<1x256x4xbf16>
    %72 = vector.shape_cast %71 : vector<1x256x4xbf16> to vector<256x4xbf16>
    %c5 = arith.constant 5 : index
    %c0_45 = arith.constant 0 : index
    %c0_46 = arith.constant 0 : index
    %73 = vector.load %arg4[%c5, %c0_45, %c0_46] : memref<9x4x128xbf16, #tpu.memory_space<vmem>>, vector<1x4x128xbf16>
    %74 = vector.shape_cast %73 : vector<1x4x128xbf16> to vector<4x128xbf16>
    %cst_47 = arith.constant dense<0.000000e+00> : vector<256x128xf32>
    %75 = tpu.matmul %72, %74, %cst_47 {dimension_numbers = #tpu.dot_dimension_numbers<[1], [0], [0], [1], [0, 0, 1, 1], [], []>} : vector<256x4xbf16>, vector<4x128xbf16>, vector<256x128xf32> -> vector<256x128xf32>
    %76 = arith.addf %70, %75 : vector<256x128xf32>
    %c0_48 = arith.constant 0 : index
    %c49 = arith.constant 49 : index
    %c0_49 = arith.constant 0 : index
    %77 = vector.load %arg3[%c0_48, %c49, %c0_49] : memref<1x320x4xbf16, #tpu.memory_space<vmem>>, vector<1x256x4xbf16>
    %78 = vector.shape_cast %77 : vector<1x256x4xbf16> to vector<256x4xbf16>
    %c8 = arith.constant 8 : index
    %c0_50 = arith.constant 0 : index
    %c0_51 = arith.constant 0 : index
    %79 = vector.load %arg4[%c8, %c0_50, %c0_51] : memref<9x4x128xbf16, #tpu.memory_space<vmem>>, vector<1x4x128xbf16>
    %80 = vector.shape_cast %79 : vector<1x4x128xbf16> to vector<4x128xbf16>
    %cst_52 = arith.constant dense<0.000000e+00> : vector<256x128xf32>
    %81 = tpu.matmul %78, %80, %cst_52 {dimension_numbers = #tpu.dot_dimension_numbers<[1], [0], [0], [1], [0, 0, 1, 1], [], []>} : vector<256x4xbf16>, vector<4x128xbf16>, vector<256x128xf32> -> vector<256x128xf32>
    %82 = arith.addf %76, %81 : vector<256x128xf32>
    %c15_i32 = arith.constant 15 : i32
    %83 = vector.broadcast %c15_i32 : i32 to vector<256x1xi32>
    %84 = arith.cmpi slt, %16, %83 : vector<256x1xi32>
    %cst_53 = arith.constant 0.000000e+00 : f32
    %85 = vector.shape_cast %84 : vector<256x1xi1> to vector<256x1xi1>
    %86 = vector.broadcast %85 : vector<256x1xi1> to vector<256x128xi1>
    %87 = vector.broadcast %cst_53 : f32 to vector<256x128xf32>
    %88 = arith.select %86, %82, %87 : vector<256x128xi1>, vector<256x128xf32>
    %89 = arith.addf %63, %88 : vector<256x128xf32>
    %c0_54 = arith.constant 0 : index
    %c0_55 = arith.constant 0 : index
    %90 = vector.load %arg5[%c0_54, %c0_55] : memref<1x128xf32, #tpu.memory_space<vmem>>, vector<1x128xf32>
    %91 = vector.broadcast %90 : vector<1x128xf32> to vector<256x128xf32>
    %92 = arith.addf %89, %91 : vector<256x128xf32>
    %c0_56 = arith.constant 0 : index
    %93 = memref.load %arg2[%c0_56] : memref<1xf32, #tpu.memory_space<smem>>
    %c0_57 = arith.constant 0 : index
    %c0_58 = arith.constant 0 : index
    %c0_59 = arith.constant 0 : index
    %94 = vector.load %arg6[%c0_57, %c0_58, %c0_59] : memref<1x256x128xf32, #tpu.memory_space<vmem>>, vector<1x256x128xf32>
    %95 = vector.shape_cast %94 : vector<1x256x128xf32> to vector<256x128xf32>
    %cst_60 = arith.constant 2.500000e-01 : f32
    %96 = vector.broadcast %cst_60 : f32 to vector<256x128xf32>
    %97 = arith.mulf %95, %96 : vector<256x128xf32>
    %c0_61 = arith.constant 0 : index
    %c0_62 = arith.constant 0 : index
    %c0_63 = arith.constant 0 : index
    %98 = vector.load %arg7[%c0_61, %c0_62, %c0_63] : memref<1x256x128xf32, #tpu.memory_space<vmem>>, vector<1x256x128xf32>
    %99 = vector.shape_cast %98 : vector<1x256x128xf32> to vector<256x128xf32>
    %cst_64 = arith.constant 1.000000e+00 : f32
    %100 = vector.broadcast %cst_64 : f32 to vector<256x128xf32>
    %101 = arith.subf %100, %99 : vector<256x128xf32>
    %102 = arith.mulf %97, %101 : vector<256x128xf32>
    %103 = arith.addf %102, %92 : vector<256x128xf32>
    %104 = vector.broadcast %93 : f32 to vector<256x128xf32>
    %105 = arith.cmpf ogt, %103, %104 : vector<256x128xf32>
    %106 = arith.extui %105 : vector<256x128xi1> to vector<256x128xi32>
    %107 = arith.sitofp %106 : vector<256x128xi32> to vector<256x128xf32>
    %c0_65 = arith.constant 0 : index
    %c0_66 = arith.constant 0 : index
    %c0_67 = arith.constant 0 : index
    %108 = vector.load %arg8[%c0_65, %c0_66, %c0_67] : memref<1x256x128xf32, #tpu.memory_space<vmem>>, vector<1x256x128xf32>
    %109 = vector.shape_cast %108 : vector<1x256x128xf32> to vector<256x128xf32>
    %110 = vector.shape_cast %103 : vector<256x128xf32> to vector<1x256x128xf32>
    tpu.vector_store %arg8[%c0_65, %c0_66, %c0_67], %110 {strides = array<i32>} : memref<1x256x128xf32, #tpu.memory_space<vmem>>, vector<1x256x128xf32>,
    %c0_68 = arith.constant 0 : index
    %c0_69 = arith.constant 0 : index
    %c0_70 = arith.constant 0 : index
    %111 = vector.load %arg9[%c0_68, %c0_69, %c0_70] : memref<1x256x128xf32, #tpu.memory_space<vmem>>, vector<1x256x128xf32>
    %112 = vector.shape_cast %111 : vector<1x256x128xf32> to vector<256x128xf32>
    %113 = vector.shape_cast %107 : vector<256x128xf32> to vector<1x256x128xf32>
    tpu.vector_store %arg9[%c0_68, %c0_69, %c0_70], %113 {strides = array<i32>} : memref<1x256x128xf32, #tpu.memory_space<vmem>>, vector<1x256x128xf32>,
    return
  }
  func.func @transform_0(%arg0: i32, %arg1: i32) -> i32 {
    %c0_i32 = arith.constant 0 : i32
    %c0_i32_0 = arith.constant 0 : i32
    return %c0_i32 : i32
  }
  func.func @transform_1(%arg0: i32, %arg1: i32) -> (i32, i32, i32) {
    %c0_i32 = arith.constant 0 : i32
    %c0_i32_0 = arith.constant 0 : i32
    %c0_i32_1 = arith.constant 0 : i32
    return %arg0, %c0_i32, %c0_i32_0 : i32, i32, i32
  }
  func.func @transform_2(%arg0: i32, %arg1: i32) -> (i32, i32, i32) {
    %c0_i32 = arith.constant 0 : i32
    %c0_i32_0 = arith.constant 0 : i32
    %c0_i32_1 = arith.constant 0 : i32
    return %c0_i32, %c0_i32_0, %arg1 : i32, i32, i32
  }
  func.func @transform_3(%arg0: i32, %arg1: i32) -> (i32, i32) {
    %c0_i32 = arith.constant 0 : i32
    %c0_i32_0 = arith.constant 0 : i32
    return %c0_i32, %arg1 : i32, i32
  }
  func.func @transform_4(%arg0: i32, %arg1: i32) -> (i32, i32, i32) {
    %c0_i32 = arith.constant 0 : i32
    %c0_i32_0 = arith.constant 0 : i32
    return %arg0, %c0_i32, %arg1 : i32, i32, i32
  }
  func.func @transform_5(%arg0: i32, %arg1: i32) -> (i32, i32, i32) {
    %c0_i32 = arith.constant 0 : i32
    %c0_i32_0 = arith.constant 0 : i32
    return %arg0, %c0_i32, %arg1 : i32, i32, i32
  }
  func.func @transform_6(%arg0: i32, %arg1: i32) -> (i32, i32, i32) {
    %c0_i32 = arith.constant 0 : i32
    %c0_i32_0 = arith.constant 0 : i32
    return %arg0, %c0_i32, %arg1 : i32, i32, i32
  }
  func.func @transform_7(%arg0: i32, %arg1: i32) -> (i32, i32, i32) {
    %c0_i32 = arith.constant 0 : i32
    %c0_i32_0 = arith.constant 0 : i32
    return %arg0, %c0_i32, %arg1 : i32, i32, i32
  }
}

</mosaic_0001>

<bundles_post_ra>
// kernel: lif_neuron_forward.1
= control target key start
LH: loop header
LB: loop body
LE: loop exit
PB: predicated region body
PF: predicated region fallthrough
CT: control target
= control target key end

     0   :  { %s5776_s26 = smov 0   ;;  %s5778_s27 = smov 0   ;;  %s7862_s0 = inlined_call_operand.<no memory space> [shape: f32[1], index: 0, kind: input, shape index: {}]   ;;  %s7863_s1 = inlined_call_operand.vmem [shape: bf16[2,320,4], index: 1, kind: input, shape index: {}]   ;;  %s7864_s2 = inlined_call_operand.vmem [shape: bf16[9,4,128], index: 2, kind: input, shape index: {}]   ;;  %s7865_s3 = inlined_call_operand.vmem [shape: f32[1,128], index: 3, kind: input, shape index: {}]   ;;  %s7866_s4 = inlined_call_operand.vmem [shape: f32[2,256,128], index: 4, kind: input, shape index: {}]   ;;  %s7867_s5 = inlined_call_operand.vmem [shape: f32[2,256,128], index: 5, kind: input, shape index: {}]   ;;  %s7868_s6 = inlined_call_operand.vmem [shape: f32[2,256,128], index: 6, kind: output, shape index: {0}]   ;;  %s7869_s7 = inlined_call_operand.vmem [shape: f32[2,256,128], index: 7, kind: output, shape index: {1}]  }
   0x1   :  { %13 = sst [smem:[#allocation2]] %s7862_s0  ;;  %s5780_s28 = smov 0  }
   0x2 LB: > { %s31_s0 = sadd.s32 1, %s5726_s27  ;;  %p4798_p0 = scmp.ge.s32.totalorder %s5730_s28, 1  ;;  %s5730_s28 = sphi %s5780_s28, %s19_s28   ;;  %s5726_s27 = sphi %s5778_s27, %s8242_s27   ;;  %s5722_s26 = sphi %s5776_s26, %s8241_s26  }
   0x3   : > { %p33_p1 = scmp.ge.s32.totalorder %s31_s0, 2  ;;  %p304_p2 = scmp.lt.s32.totalorder %s5730_s28, 3 }
   0x5   : > { %s8244_s0 = smov (%p33_p1, %s31_s0), 0  ;;  %p305_p3 = pnand %p4798_p0, %p304_p2 }
   0x7   : > { %308 = sbr.rel (%p305_p3) target bundleno = 536 (0x218), region = 44 }
   0xc   : > { %v4808_v0 = vld [vmem:[%s7864_s2 + $0x6] sm:$0x3]  ;;  %vm1156_vm0 = vcmask 1041408   ;;  %p370_p4 = scmp.lt.s32.totalorder %s5722_s26, 1  ;;  %v865_v2 = vld [vmem:[%s7864_s2] sm:$0x3] }
   0xd   : > { %5567 = vmatprep.subr.msk.bf16.mxu1 %vm1156_vm0, %v4808_v0  ;;  %5566 = vmatprep.subr.msk.bf16.mxu0 %vm1156_vm0, %v4808_v0  ;;  %v1158_v1 = vsel %vm1156_vm0, %v4808_v0, 0  ;;  %v4861_v3 = vld [vmem:[%s7864_s2 + $0xc] sm:$0x3]  ;;  %vm954_vm1 = vsmask.f32 4352  ;;  %v5817_v4 = vsel %vm1156_vm0, %v865_v2, 0 }
   0xe   : > { %5565 = vmatpush3.bf16.msra.mxu1 %v1158_v1  ;;  %5259 = vmatpush3.bf16.msra.mxu0 %v1158_v1  ;;  %s8246_s26 = smov (!%p370_p4, %s5722_s26), 1  ;;  %v5820_v5 = vsel %vm1156_vm0, %v4861_v3, 0  ;;  %vm1107_vm2 = vcmask 31744   ;;  %vm3021_vm3 = vsmask.f32 7424  ;;  %s7136_s14 = sld [smem:[#allocation2]] }
   0xf   : > { %5568 = vmatprep.subr.msk.bf16.mxu1 %vm1156_vm0, %v865_v2  ;;  %5569 = vmatprep.subr.msk.bf16.mxu0 %vm1156_vm0, %v4861_v3  ;;  %s5576_s12 = smul.u32 160, %s8246_s26  ;;  %s7034_s8 = sshll.u32 %s8246_s26, 8 }
  0x10   : > { %s7069_s10 = scalar_lea.vmem %s7866_s4, %s7034_s8  ;;  %s7075_s13 = scalar_lea.vmem %s7867_s5, %s7034_s8 }
  0x11   : > { %s5814_s15 = scalar_lea.vmem %s7863_s1, %s5576_s12  ;;  %s7438_s19 = scalar_lea.vmem %s7868_s6, %s7034_s8 }
  0x12   : > { %v5823_v6 = vld [vmem:[%s5814_s15 + $0x10] sm:$0xf]  ;;  %v836_v7 = vld [vmem:[%s5814_s15 + $0x14] sm:$0xf]  ;;  %v837_v8 = vld [vmem:[%s5814_s15 + $0x18] sm:$0xf]  ;;  %s7459_s22 = scalar_lea.vmem %s7869_s7, %s7034_s8 }
  0x13   : > { %v838_v9 = vld [vmem:[%s5814_s15 + $0x1c] sm:$0xf]  ;;  %v866_v10 = vld [vmem:[%s5814_s15 + $0xc] sm:$0x8]  ;;  %v4810_v11 = vcombine.low %v836_v7, %v837_v8  ;;  %v5833_v13 = vcombine.low %v5823_v6, %v836_v7  ;;  %v5839_v16 = vld [vmem:[%s5814_s15 + $0x50] sm:$0xf] }
  0x14   : > { %v5830_v12 = vld [vmem:[%s5814_s15 + $0x4c] sm:$0xf]  ;;  %v4809_v14 = vcombine.low %v866_v10, %v5823_v6  ;;  %v5836_v15 = vcombine.low %v837_v8, %v838_v9  ;;  %7918 = vst [vmem:[#allocation6_spill] sm:$0xff] %v5839_v16  ;;  %v5842_v17 = vld [vmem:[%s5814_s15 + $0x54] sm:$0xf] }
  0x15   : > { %7915 = vst [vmem:[#allocation3_spill] sm:$0xff] %v5830_v12  ;;  %7916 = vst [vmem:[#allocation4_spill] sm:$0xff] %v5833_v13  ;;  %v5845_v18 = vld [vmem:[%s5814_s15 + $0x58] sm:$0xf]  ;;  %v964_v19 = vshrl.u32 %v4810_v11, 16  ;;  %v967_v20 = vshll.u32 %v4810_v11, 16  ;;  %v4817_v21 = vcombine.low %v5830_v12, %v5839_v16 }
  0x16   : > { %7917 = vst [vmem:[#allocation5_spill] sm:$0xff] %v5836_v15  ;;  %7919 = vst [vmem:[#allocation7_spill] sm:$0xff] %v5842_v17  ;;  %v4818_v22 = vcombine.low %v5842_v17, %v5845_v18  ;;  %v5852_v23 = vld [vmem:[%s5814_s15 + $0x20] sm:$0xf]  ;;  %v956_v24 = vshrl.u32 %v4809_v14, 16  ;;  %v959_v25 = vshll.u32 %v4809_v14, 16 }
  0x17   : > { %7920 = vst [vmem:[#allocation8_spill] sm:$0xff] %v5845_v18  ;;  %v4811_v26 = vcombine.low %v838_v9, %v5852_v23  ;;  %v5856_v27 = vld [vmem:[%s5814_s15 + $0x5c] sm:$0xf]  ;;  %v5859_v28 = vld [vmem:[%s5814_s15 + $0x60] sm:$0xf]  ;;  %v966_v30 = vrot.slane %v964_v19, 3 }
  0x18   : > { %7921 = vst [vmem:[#allocation9_spill] sm:$0xff] %v5856_v27  ;;  %v5862_v29 = vld [vmem:[%s5814_s15 + $0x24] sm:$0xf]  ;;  %v969_v31 = vrot.slane %v967_v20, 4  ;;  %v1027_v32 = vshrl.u32 %v4817_v21, 16  ;;  %v1030_v33 = vshll.u32 %v4817_v21, 16  ;;  %v4819_v51 = vcombine.low %v5856_v27, %v5859_v28 }
  0x19   : > { %v5865_v34 = vld [vmem:[%s5814_s15 + $0x28] sm:$0xf]  ;;  %v958_v35 = vrot.slane %v956_v24, 3  ;;  %v961_v36 = vrot.slane %v959_v25, 4  ;;  %v1036_v37 = vshrl.u32 %v4818_v22, 16  ;;  %v1039_v38 = vshll.u32 %v4818_v22, 16 }
  0x1a   : > { %v5868_v39 = vld [vmem:[%s5814_s15 + $0x64] sm:$0xf]  ;;  %v5870_v40 = vor.u32 %v969_v31, %v966_v30  ;;  %v1029_v41 = vrot.slane %v1027_v32, 3  ;;  %v1032_v42 = vrot.slane %v1030_v33, 4  ;;  %v973_v43 = vshrl.u32 %v4811_v26, 16 }
  0x1b   : > { %v5873_v44 = vld [vmem:[%s5814_s15 + $0x68] sm:$0xf]  ;;  %v962_v45 = vor.u32 %v961_v36, %v958_v35  ;;  %v1038_v46 = vrot.slane %v1036_v37, 3  ;;  %v1041_v47 = vrot.slane %v1039_v38, 4  ;;  %v976_v48 = vshll.u32 %v4811_v26, 16 }
  0x1c   : > { %v5875_v49 = vor.u32 %v1032_v42, %v1029_v41  ;;  %v975_v50 = vrot.slane %v973_v43, 3  ;;  %v4812_v52 = vcombine.low %v5862_v29, %v5865_v34  ;;  %v5882_v53 = vld [vmem:[%s5814_s15 + $0x2c] sm:$0xf]  ;;  %v5885_v54 = vld [vmem:[%s5814_s15 + $0x30] sm:$0xf]  ;;  %v4820_v58 = vcombine.low %v5868_v39, %v5873_v44 }
  0x1d   : > { %v971_v55 = vsel %vm954_vm1, %v962_v45, %v5870_v40  ;;  %v1042_v56 = vor.u32 %v1041_v47, %v1038_v46  ;;  %v978_v57 = vrot.slane %v976_v48, 4  ;;  %v5892_v59 = vld [vmem:[%s5814_s15 + $0x6c] sm:$0xf]  ;;  %v5895_v60 = vld [vmem:[%s5814_s15 + $0x70] sm:$0xf]  ;;  %v1045_v61 = vshrl.u32 %v4819_v51, 16 }
  0x1e   : > { %5260 = vmatprep.mubr.msk.bf16.mxu0 %vm1107_vm2, %v971_v55  ;;  %v1048_v62 = vshll.u32 %v4819_v51, 16  ;;  %v982_v63 = vshrl.u32 %v4812_v52, 16  ;;  %v985_v0 = vshll.u32 %v4812_v52, 16  ;;  %v5899_v1 = vld [vmem:[%s5814_s15 + $0x34] sm:$0xf]  ;;  %v1054_v7 = vshrl.u32 %v4820_v58, 16 }
  0x1f   : > { %v5903_v2 = vsel %vm954_vm1, %v5875_v49, %v1042_v56  ;;  %v979_v3 = vor.u32 %v978_v57, %v975_v50  ;;  %v1057_v8 = vshll.u32 %v4820_v58, 16  ;;  %v5906_v9 = vld [vmem:[%s5814_s15 + $0x38] sm:$0xf]  ;;  %v5909_v10 = vld [vmem:[%s5814_s15 + $0x74] sm:$0xf]  ;;  %v1047_v11 = vrot.slane %v1045_v61, 3 }
  0x20   : > { %7922 = vst [vmem:[#allocation10_spill] sm:$0xff] %v5903_v2  ;;  %5276 = vmatprep.mubr.msk.bf16.mxu1 %vm1107_vm2, %v5903_v2  ;;  %v1050_v14 = vrot.slane %v1048_v62, 4  ;;  %v984_v19 = vrot.slane %v982_v63, 3  ;;  %v987_v20 = vrot.slane %v985_v0, 4  ;;  %v5914_v21 = vld [vmem:[%s5814_s15 + $0x78] sm:$0xf]  ;;  %v4813_v26 = vcombine.low %v5882_v53, %v5885_v54 }
  0x21   : > { %v5918_v22 = vsel %vm954_vm1, %v5870_v40, %v979_v3  ;;  %v1056_v24 = vrot.slane %v1054_v7, 3  ;;  %v1059_v25 = vrot.slane %v1057_v8, 4  ;;  %v5925_v30 = vld [vmem:[%s7864_s2 + $0x2] sm:$0x3]  ;;  %v4821_v33 = vcombine.low %v5892_v59, %v5895_v60  ;;  %v5937_v42 = vld [vmem:[%s5814_s15 + $0x3c] sm:$0xf] }
  0x22   : > { %5261 = vmatmul.mubr.msk.bf16.vlgmr.msra.gmra.mxu0 %vm1107_vm2, %v5918_v22  ;;  %v1051_v31 = vor.u32 %v1050_v14, %v1047_v11  ;;  %v988_v32 = vor.u32 %v987_v20, %v984_v19  ;;  %v4814_v35 = vcombine.low %v5899_v1, %v5906_v9  ;;  %v991_v37 = vshrl.u32 %v4813_v26, 16  ;;  %v5942_v43 = vld [vmem:[%s7864_s2 + $0x8] sm:$0x3]  ;;  %v5951_v48 = vld [vmem:[%s5814_s15 + $0x40] sm:$0xf] }
  0x23   : > { %5327 = vmatpush3.bf16.msra.mxu0 %v5820_v5  ;;  %v1060_v36 = vor.u32 %v1059_v25, %v1056_v24  ;;  %v994_v38 = vshll.u32 %v4813_v26, 16  ;;  %v4822_v41 = vcombine.low %v5909_v10, %v5914_v21  ;;  %v1063_v5 = vshrl.u32 %v4821_v33, 16  ;;  %v5954_v50 = vld [vmem:[%s5814_s15 + $0x7c] sm:$0xf]  ;;  %v5966_v57 = vld [vmem:[%s5814_s15 + $0x80] sm:$0xf] }
  0x24   : > { %v5945_v45 = vsel %vm954_vm1, %v1042_v56, %v1051_v31  ;;  %v5948_v46 = vsel %vm954_vm1, %v979_v3, %v988_v32  ;;  %v1066_v47 = vshll.u32 %v4821_v33, 16  ;;  %5571 = vmatprep.subr.msk.bf16.mxu0 %vm1156_vm0, %v5925_v30  ;;  %v993_v52 = vrot.slane %v991_v37, 3  ;;  %v5974_v11 = vld [vmem:[%s5814_s15 + $0x44] sm:$0xf]  ;;  %v5981_v24 = vld [vmem:[%s5814_s15 + $0x48] sm:$0xf] }
  0x25   : > { %7923 = vst [vmem:[#allocation11_spill] sm:$0xff] %v5945_v45  ;;  %5277 = vmatmul.mubr.msk.bf16.vlgmr.msra.gmra.mxu1 %vm1107_vm2, %v5945_v45  ;;  %5264 = vmatprep.mubr.msk.bf16.mxu0 %vm1107_vm2, %v5948_v46  ;;  %v5963_v51 = vsel %vm954_vm1, %v1051_v31, %v1060_v36  ;;  %v996_v55 = vrot.slane %v994_v38, 4  ;;  %v1000_v56 = vshrl.u32 %v4814_v35, 16  ;;  %v1065_v58 = vrot.slane %v1063_v5, 3  ;;  %7925 = vst [vmem:[#allocation13_spill] sm:$0xff] %v5981_v24 }
  0x26   : > { %7924 = vst [vmem:[#allocation12_spill] sm:$0xff] %v5963_v51  ;;  %5293 = vmatpush3.bf16.msra.mxu1 %v5817_v4  ;;  %5280 = vmatprep.mubr.msk.bf16.mxu1 %vm1107_vm2, %v5963_v51  ;;  %v1068_v61 = vrot.slane %v1066_v47, 4  ;;  %v1003_v62 = vshll.u32 %v4814_v35, 16  ;;  %v1072_v63 = vshrl.u32 %v4822_v41, 16  ;;  %v1075_v7 = vshll.u32 %v4822_v41, 16 }
  0x27   : > { %v997_v0 = vor.u32 %v996_v55, %v993_v52  ;;  %v1002_v3 = vrot.slane %v1000_v56, 3  ;;  %v4815_v8 = vcombine.low %v5937_v42, %v5951_v48  ;;  %5570 = vmatprep.subr.msk.bf16.mxu1 %vm1156_vm0, %v5942_v43  ;;  %v4823_v20 = vcombine.low %v5954_v50, %v5966_v57  ;;  %v5984_v25 = vld [vmem:[%s5814_s15 + $0x84] sm:$0xf]  ;;  %v5990_v37 = vld [vmem:[%s5814_s15 + $0x88] sm:$0xf] }
  0x28   : > { %v1069_v4 = vor.u32 %v1068_v61, %v1065_v58  ;;  %v1005_v14 = vrot.slane %v1003_v62, 4  ;;  %v1074_v19 = vrot.slane %v1072_v63, 3  ;;  %v1077_v31 = vrot.slane %v1075_v7, 4  ;;  %v6000_v58 = vld [vmem:[%s5814_s15 + $0x8c] sm:$0xf] }
  0x29   : > { %v5987_v26 = vsel %vm954_vm1, %v988_v32, %v997_v0  ;;  %v1009_v33 = vshrl.u32 %v4815_v8, 16  ;;  %v1012_v35 = vshll.u32 %v4815_v8, 16  ;;  %v1081_v5 = vshrl.u32 %v4823_v20, 16  ;;  %v6009_v7 = vld [vmem:[%s5814_s15 + $0x8] sm:$0xf] }
  0x2a   : > { %5265 = vmatmul.mubr.msk.bf16.gmra.mxu0 %vm1107_vm2, %v5987_v26  ;;  %v5995_v38 = vsel %vm954_vm1, %v1060_v36, %v1069_v4  ;;  %v1006_v41 = vor.u32 %v1005_v14, %v1002_v3  ;;  %v1084_v47 = vshll.u32 %v4823_v20, 16  ;;  %v1078_v52 = vor.u32 %v1077_v31, %v1074_v19  ;;  %v832_v3 = vld [vmem:[%s5814_s15 + $0x4] sm:$0x8]  ;;  %v6085_v45 = vld [vmem:[%s5814_s15 + $0x34] sm:$0xf] }
  0x2b   : > { %7926 = vst [vmem:[#allocation14_spill] sm:$0xff] %v5995_v38  ;;  %v1011_v55 = vrot.slane %v1009_v33, 3  ;;  %v1014_v32 = vrot.slane %v1012_v35, 4  ;;  %v4816_v56 = vcombine.low %v5974_v11, %v5981_v24  ;;  %v1083_v62 = vrot.slane %v1081_v5, 3  ;;  %v6025_v5 = vld [vmem:[%s5814_s15 + $0xc] sm:$0xf] }
  0x2c   : > { %v6003_v61 = vsel %vm954_vm1, %v997_v0, %v1006_v41  ;;  %v1086_v63 = vrot.slane %v1084_v47, 4  ;;  %v4824_v36 = vcombine.low %v5984_v25, %v5990_v37  ;;  %v6016_v0 = vsel %vm954_vm1, %v1069_v4, %v1078_v52  ;;  %v6050_v15 = vld [vmem:[%s5814_s15 + $0x24] sm:$0xf] }
  0x2d   : > { %5281 = vmatmul.mubr.msk.bf16.gmra.mxu1 %vm1107_vm2, %v5995_v38  ;;  %5268 = vmatprep.mubr.msk.bf16.mxu0 %vm1107_vm2, %v6003_v61  ;;  %7927 = vst [vmem:[#allocation15_spill] sm:$0xff] %v6016_v0  ;;  %v1015_v8 = vor.u32 %v1014_v32, %v1011_v55  ;;  %v1018_v14 = vshrl.u32 %v4816_v56, 16  ;;  %v1021_v19 = vshll.u32 %v4816_v56, 16  ;;  %v4825_v35 = vcombine.low %v6000_v58, %v6000_v58  ;;  %v1530_v56 = vld [vmem:[%s5814_s15 + $0x14] sm:$0x8] }
  0x2e   : > { %5284 = vmatprep.mubr.msk.bf16.mxu1 %vm1107_vm2, %v6016_v0  ;;  %v6020_v20 = vor.u32 %v1086_v63, %v1083_v62  ;;  %v1090_v31 = vshrl.u32 %v4824_v36, 16  ;;  %v1093_v33 = vshll.u32 %v4824_v36, 16  ;;  %v4842_v32 = vcombine.low %v832_v3, %v6009_v7  ;;  %v6033_v62 = vld [vmem:[%s5814_s15 + $0x18] sm:$0xf]  ;;  %v6045_v3 = vld [vmem:[%s5814_s15 + $0x20] sm:$0xf] }
  0x2f   : > { %v6028_v4 = vsel %vm954_vm1, %v1006_v41, %v1015_v8  ;;  %v1020_v47 = vrot.slane %v1018_v14, 3  ;;  %v1023_v55 = vrot.slane %v1021_v19, 4  ;;  %v1099_v27 = vshrl.u32 %v4825_v35, 16  ;;  %v6042_v19 = vld [vmem:[%s5814_s15 + $0x1c] sm:$0xf]  ;;  %7929 = vst [vmem:[#allocation17_spill] sm:$0xff] %v6045_v3 }
  0x30   : > { %v6037_v63 = vsel %vm954_vm1, %v1078_v52, %v6020_v20  ;;  %v1092_v36 = vrot.slane %v1090_v31, 3  ;;  %v1095_v18 = vrot.slane %v1093_v33, 4  ;;  %v1102_v17 = vshll.u32 %v4825_v35, 16  ;;  %7930 = vst [vmem:[#allocation18_spill] sm:$0xff] %v6050_v15  ;;  %v6053_v31 = vld [vmem:[%s5814_s15 + $0x28] sm:$0xf] }
  0x31   : > { %7928 = vst [vmem:[#allocation16_spill] sm:$0xff] %v6037_v63  ;;  %v1024_v16 = vor.u32 %v1023_v55, %v1020_v47  ;;  %v4843_v41 = vcombine.low %v6025_v5, %v5823_v6  ;;  %v1331_v14 = vshrl.u32 %v4842_v32, 16  ;;  %v1101_v12 = vrot.slane %v1099_v27, 3  ;;  %7931 = vst [vmem:[#allocation19_spill] sm:$0xff] %v6053_v31 }
  0x32   : > { %5269 = vmatmul.mubr.msk.bf16.gmra.mxu0 %vm1107_vm2, %v6028_v4  ;;  %v1096_v24 = vor.u32 %v1095_v18, %v1092_v36  ;;  %v1334_v52 = vshll.u32 %v4842_v32, 16  ;;  %v4862_v33 = vcombine.low %v1530_v56, %v6033_v62  ;;  %v1104_v35 = vrot.slane %v1102_v17, 4 }
  0x33   : > { %v6057_v6 = vsel %vm954_vm1, %v1015_v8, %v1024_v16  ;;  %v1333_v47 = vrot.slane %v1331_v14, 3  ;;  %v6061_v55 = vsel %vm1156_vm0, %v5925_v30, 0  ;;  %v1339_v32 = vshrl.u32 %v4843_v41, 16  ;;  %v6074_v14 = vld [vmem:[%s5814_s15 + $0x2c] sm:$0xf] }
  0x34   : > { %7932 = vst [vmem:[#allocation20_spill] sm:$0xff] %v6057_v6  ;;  %5272 = vmatprep.mubr.msk.bf16.mxu0 %vm1107_vm2, %v6057_v6  ;;  %v1097_v18 = vsel %vm954_vm1, %v6020_v20, %v1096_v24  ;;  %v1336_v27 = vrot.slane %v1334_v52, 4  ;;  %v1342_v36 = vshll.u32 %v4843_v41, 16  ;;  %v1105_v17 = vor.u32 %v1104_v35, %v1101_v12 }
  0x35   : > { %5285 = vmatmul.mubr.msk.bf16.gmra.mxu1 %vm1107_vm2, %v6037_v63  ;;  %v4863_v8 = vcombine.low %v6042_v19, %v6045_v3  ;;  %v4864_v30 = vcombine.low %v6050_v15, %v6053_v31  ;;  %v1649_v56 = vshrl.u32 %v4862_v33, 16  ;;  %v1341_v41 = vrot.slane %v1339_v32, 3  ;;  %v6078_v63 = vld [vmem:[%s5814_s15 + $0x30] sm:$0xf]  ;;  %v6093_v32 = vld [vmem:[%s5814_s15 + $0x3c] sm:$0xf] }
  0x36   : > { %5288 = vmatprep.mubr.msk.bf16.mxu1 %vm1107_vm2, %v1097_v18  ;;  %v1337_v52 = vor.u32 %v1336_v27, %v1333_v47  ;;  %v1344_v13 = vrot.slane %v1342_v36, 4  ;;  %v1652_v0 = vshll.u32 %v4862_v33, 16  ;;  %7933 = vst [vmem:[#allocation21_spill] sm:$0xff] %v6078_v63  ;;  %v6082_v12 = vsel %vm954_vm1, %v1024_v16, %v5875_v49  ;;  %v6090_v27 = vld [vmem:[%s5814_s15 + $0x38] sm:$0xf] }
  0x37   : > { %v1651_v35 = vrot.slane %v1649_v56, 3  ;;  %v1657_v38 = vshrl.u32 %v4863_v8, 16  ;;  %v1660_v51 = vshll.u32 %v4863_v8, 16  ;;  %v1666_v33 = vshrl.u32 %v4864_v30, 16  ;;  %7934 = vst [vmem:[#allocation22_spill] sm:$0xff] %v6090_v27 }
  0x38   : > { %v1345_v2 = vor.u32 %v1344_v13, %v1341_v41  ;;  %v1654_v18 = vrot.slane %v1652_v0, 4  ;;  %v1669_v36 = vshll.u32 %v4864_v30, 16  ;;  %v4865_v8 = vcombine.low %v6074_v14, %v6078_v63  ;;  %v6098_v13 = vld [vmem:[%s5814_s15 + $0x40] sm:$0xf]  ;;  %v6105_v15 = vld [vmem:[%s5814_s15 + $0x44] sm:$0xf] }
  0x39   : > { %v1659_v16 = vrot.slane %v1657_v38, 3  ;;  %v1662_v49 = vrot.slane %v1660_v51, 4  ;;  %7935 = vst [vmem:[#allocation23_spill] sm:$0xff] %v6098_v13  ;;  %v1106_v0 = vsel %vm954_vm1, %v1096_v24, %v1105_v17  ;;  %v1668_v47 = vrot.slane %v1666_v33, 3  ;;  %v6108_v38 = vld [vmem:[%s5814_s15 + $0x48] sm:$0xf] }
  0x3a   : > { %5273 = vmatmul.mubr.msk.bf16.gmra.mxu0 %vm1107_vm2, %v6082_v12  ;;  %v1346_v56 = vsel %vm954_vm1, %v1337_v52, %v1345_v2  ;;  %v1655_v41 = vor.u32 %v1654_v18, %v1651_v35  ;;  %v6111_v51 = vld [vmem:[%s5814_s15 + $0x4c] sm:$0xf]  ;;  %v1671_v3 = vrot.slane %v1669_v36, 4  ;;  %v1675_v63 = vshrl.u32 %v4865_v8, 16  ;;  %v6118_v17 = vld [vmem:[%s5814_s15 + $0x50] sm:$0xf] }
  0x3b   : > { %v1663_v30 = vor.u32 %v1662_v49, %v1659_v16  ;;  %v1678_v6 = vshll.u32 %v4865_v8, 16  ;;  %v4866_v31 = vcombine.low %v6085_v45, %v6090_v27  ;;  %v4867_v24 = vcombine.low %v6093_v32, %v6098_v13 }
  0x3c   : > { %v1672_v35 = vor.u32 %v1671_v3, %v1668_v47  ;;  %v1677_v18 = vrot.slane %v1675_v63, 3  ;;  %v4869_v3 = vcombine.low %v6111_v51, %v6118_v17 }
  0x3d   : > { %5289 = vmatmul.mubr.msk.bf16.gmra.mxu1 %vm1107_vm2, %v1106_v0  ;;  %v1664_v52 = vsel %vm954_vm1, %v1655_v41, %v1663_v30  ;;  %v1680_v33 = vrot.slane %v1678_v6, 4  ;;  %v1684_v16 = vshrl.u32 %v4866_v31, 16  ;;  %v1687_v49 = vshll.u32 %v4866_v31, 16 }
  0x3e   : > { %5294 = vmatprep.mubr.msk.bf16.mxu1 %vm1107_vm2, %v1346_v56  ;;  %5328 = vmatprep.mubr.msk.bf16.mxu0 %vm1107_vm2, %v1664_v52  ;;  %v1693_v36 = vshrl.u32 %v4867_v24, 16  ;;  %v1696_v8 = vshll.u32 %v4867_v24, 16  ;;  %v1673_v13 = vsel %vm954_vm1, %v1663_v30, %v1672_v35  ;;  %v4868_v0 = vcombine.low %v6105_v15, %v6108_v38  ;;  %v6135_v30 = vld [vmem:[%s7864_s2 + $0xa] sm:$0x3]  ;;  %v6141_v52 = vld [vmem:[%s5814_s15 + $0x54] sm:$0xf] }
  0x3f   : > { %v1681_v27 = vor.u32 %v1680_v33, %v1677_v18  ;;  %v1686_v63 = vrot.slane %v1684_v16, 3  ;;  %v1689_v6 = vrot.slane %v1687_v49, 4  ;;  %v2273_v31 = vsel %vm1156_vm0, %v5942_v43, 0  ;;  %7936 = vst [vmem:[#allocation24_spill] sm:$0xff] %v6135_v30  ;;  %v6146_v43 = vld [vmem:[%s7864_s2 + $0xe] sm:$0x3] }
  0x40   : > { %v1695_v47 = vrot.slane %v1693_v36, 3  ;;  %v1698_v56 = vrot.slane %v1696_v8, 4  ;;  %v1347_v24 = vsel %vm954_vm1, %v1345_v2, %v5870_v40  ;;  %7937 = vst [vmem:[#allocation25_spill] sm:$0xff] %v6146_v43  ;;  %v1702_v18 = vshrl.u32 %v4868_v0, 16  ;;  %v6157_v49 = vld [vmem:[%s5814_s15 + $0x5c] sm:$0xf] }
  0x41   : > { %v1682_v41 = vsel %vm954_vm1, %v1672_v35, %v1681_v27  ;;  %v1690_v35 = vor.u32 %v1689_v6, %v1686_v63  ;;  %v1705_v33 = vshll.u32 %v4868_v0, 16  ;;  %v1711_v2 = vshrl.u32 %v4869_v3, 16  ;;  %7939 = vst [vmem:[#allocation27_spill] sm:$0xff] %v6157_v49  ;;  %v6165_v36 = vld [vmem:[%s5814_s15 + $0x64] sm:$0xf] }
  0x42   : > { %5329 = vmatmul.mubr.msk.bf16.vlgmr.msra.gmra.mxu0 %vm1107_vm2, %v1673_v13  ;;  %v1699_v40 = vor.u32 %v1698_v56, %v1695_v47  ;;  %v1714_v16 = vshll.u32 %v4869_v3, 16  ;;  %v6151_v13 = vld [vmem:[%s5814_s15 + $0x58] sm:$0xf]  ;;  %7941 = vst [vmem:[#allocation29_spill] sm:$0xff] %v6165_v36  ;;  %v1704_v0 = vrot.slane %v1702_v18, 3 }
  0x43   : > { %5395 = vmatpush3.bf16.msra.mxu0 %v6061_v55  ;;  %5332 = vmatprep.mubr.msk.bf16.mxu0 %vm1107_vm2, %v1682_v41  ;;  %7938 = vst [vmem:[#allocation26_spill] sm:$0xff] %v6151_v13  ;;  %v6160_v55 = vld [vmem:[%s5814_s15 + $0x60] sm:$0xf]  ;;  %v1691_v8 = vsel %vm954_vm1, %v1681_v27, %v1690_v35  ;;  %v1707_v3 = vrot.slane %v1705_v33, 4  ;;  %v4870_v63 = vcombine.low %v6141_v52, %v6151_v13  ;;  %v6171_v6 = vld [vmem:[%s5814_s15 + $0x68] sm:$0xf] }
  0x44   : > { %5573 = vmatprep.subr.msk.bf16.mxu0 %vm1156_vm0, %v6135_v30  ;;  %7940 = vst [vmem:[#allocation28_spill] sm:$0xff] %v6160_v55  ;;  %7942 = vst [vmem:[#allocation30_spill] sm:$0xff] %v6171_v6  ;;  %v1700_v47 = vsel %vm954_vm1, %v1690_v35, %v1699_v40  ;;  %v1713_v56 = vrot.slane %v1711_v2, 3  ;;  %v6179_v41 = vld [vmem:[%s5814_s15 + $0x6c] sm:$0xf] }
  0x45   : > { %5295 = vmatmul.mubr.msk.bf16.vlgmr.msra.gmra.mxu1 %vm1107_vm2, %v1347_v24  ;;  %7943 = vst [vmem:[#allocation31_spill] sm:$0xff] %v6179_v41  ;;  %v6183_v27 = vld [vmem:[%s5814_s15 + $0x70] sm:$0xf]  ;;  %v1708_v24 = vor.u32 %v1707_v3, %v1704_v0  ;;  %v1720_v18 = vshrl.u32 %v4870_v63, 16  ;;  %v1723_v33 = vshll.u32 %v4870_v63, 16 }
  0x46   : > { %5361 = vmatpush3.bf16.msra.mxu1 %v2273_v31  ;;  %5298 = vmatprep.mubr.msk.bf16.mxu1 %vm1107_vm2, %v5918_v22  ;;  %v1716_v31 = vrot.slane %v1714_v16, 4  ;;  %v4871_v22 = vcombine.low %v6157_v49, %v6160_v55  ;;  %7944 = vst [vmem:[#allocation32_spill] sm:$0xff] %v6183_v27  ;;  %v4873_v30 = vcombine.low %v6179_v41, %v6183_v27  ;;  %v6200_v55 = vld [vmem:[%s5814_s15 + $0x74] sm:$0xf] }
  0x47   : > { %5572 = vmatprep.subr.msk.bf16.mxu1 %vm1156_vm0, %v6146_v43  ;;  %v4872_v43 = vcombine.low %v6165_v36, %v6171_v6  ;;  %v1709_v0 = vsel %vm954_vm1, %v1699_v40, %v1708_v24  ;;  %v1722_v3 = vrot.slane %v1720_v18, 3  ;;  %v1725_v63 = vrot.slane %v1723_v33, 4  ;;  %v6203_v36 = vld [vmem:[%s5814_s15 + $0x78] sm:$0xf]  ;;  %v6206_v40 = vld [vmem:[%s5814_s15 + $0x7c] sm:$0xf] }
  0x48   : > { %v1717_v35 = vor.u32 %v1716_v31, %v1713_v56  ;;  %v1729_v2 = vshrl.u32 %v4871_v22, 16  ;;  %v1732_v16 = vshll.u32 %v4871_v22, 16  ;;  %v1747_v6 = vshrl.u32 %v4873_v30, 16  ;;  %v6209_v18 = vld [vmem:[%s5814_s15 + $0x80] sm:$0xf] }
  0x49   : > { %v1741_v27 = vshll.u32 %v4872_v43, 16 }
  0x4a   : > { %5333 = vmatmul.mubr.msk.bf16.gmra.mxu0 %vm1107_vm2, %v1691_v8  ;;  %v4844_v8 = vcombine.low %v5984_v25, %v5984_v25  ;;  %v1731_v56 = vrot.slane %v1729_v2, 3  ;;  %v1734_v31 = vrot.slane %v1732_v16, 4  ;;  %v1749_v13 = vrot.slane %v1747_v6, 3  ;;  %v7945_v6 = vld [vmem:[#allocation19_spill] sm:$0xff] }
  0x4b   : > { %5336 = vmatprep.mubr.msk.bf16.mxu0 %vm1107_vm2, %v1700_v47  ;;  %v1738_v47 = vshrl.u32 %v4872_v43, 16 }
  0x4c   : > { %v1349_v22 = vshrl.u32 %v4844_v8, 16  ;;  %v1352_v41 = vshll.u32 %v4844_v8, 16  ;;  %v1735_v16 = vor.u32 %v1734_v31, %v1731_v56  ;;  %v4929_v8 = vcombine.low %v6009_v7, %v6025_v5  ;;  %v7965_v7 = vld [vmem:[#allocation25_spill] sm:$0xff] }
  0x4d   : > { %5299 = vmatmul.mubr.msk.bf16.gmra.mxu1 %vm1107_vm2, %v5948_v46  ;;  %v1718_v46 = vsel %vm954_vm1, %v1708_v24, %v1717_v35  ;;  %v1726_v24 = vor.u32 %v1725_v63, %v1722_v3  ;;  %v1740_v43 = vrot.slane %v1738_v47, 3  ;;  %v6228_v3 = vcombine.low %v5885_v54, %v5899_v1  ;;  %v7947_v63 = vld [vmem:[#allocation21_spill] sm:$0xff]  ;;  %v7957_v47 = vld [vmem:[#allocation30_spill] sm:$0xff] }
  0x4e   : > { %5302 = vmatprep.mubr.msk.bf16.mxu1 %vm1107_vm2, %v5987_v26  ;;  %v1750_v26 = vshll.u32 %v4873_v30, 16  ;;  %v1351_v33 = vrot.slane %v1349_v22, 3  ;;  %v1354_v2 = vrot.slane %v1352_v41, 4  ;;  %v6216_v30 = vcombine.low %v5852_v23, %v5862_v29 }
  0x4f   : > { %v6232_v23 = vcombine.low %v5906_v9, %v5937_v42  ;;  %v6236_v29 = vcombine.low %v5951_v48, %v5974_v11  ;;  %v1736_v1 = vsel %vm954_vm1, %v1726_v24, %v1735_v16  ;;  %v6250_v9 = vcombine.low %v5859_v28, %v5868_v39  ;;  %v7959_v28 = vld [vmem:[#allocation12_spill] sm:$0xff] }
  0x50   : > { %v1355_v49 = vor.u32 %v1354_v2, %v1351_v33  ;;  %v1752_v41 = vrot.slane %v1750_v26, 4  ;;  %v6254_v42 = vcombine.low %v5873_v44, %v5892_v59  ;;  %v6258_v48 = vcombine.low %v5895_v60, %v5909_v10  ;;  %v6272_v44 = vld [vmem:[%s5814_s15 + $0x84] sm:$0xf]  ;;  %v6275_v59 = vld [vmem:[%s5814_s15 + $0x88] sm:$0xf] }
  0x51   : > { %v6262_v11 = vcombine.low %v5914_v21, %v5954_v50  ;;  %v6281_v50 = vld [vmem:[%s5814_s15 + $0x8c] sm:$0xf]  ;;  %v4876_v33 = vcombine.low %v6272_v44, %v6275_v59  ;;  %v2671_v5 = vsel %vm1156_vm0, %v7965_v7, 0 }
  0x52   : > { %5337 = vmatmul.mubr.msk.bf16.gmra.mxu0 %vm1107_vm2, %v1709_v0  ;;  %v1743_v0 = vrot.slane %v1741_v27, 4  ;;  %v6245_v54 = vsel %vm954_vm1, %v6020_v20, %v1355_v49  ;;  %v6266_v20 = vcombine.low %v5966_v57, %v5984_v25  ;;  %v1753_v57 = vor.u32 %v1752_v41, %v1749_v13  ;;  %v6284_v49 = vld [vmem:[%s5814_s15 + $0x90] sm:$0xf]  ;;  %v7948_v13 = vld [vmem:[#allocation22_spill] sm:$0xff]  ;;  %v7956_v41 = vld [vmem:[#allocation31_spill] sm:$0xff] }
  0x53   : > { %5340 = vmatprep.mubr.msk.bf16.mxu0 %vm1107_vm2, %v1718_v46  ;;  %v6222_v46 = vcombine.low %v5865_v34, %v5882_v53  ;;  %v1727_v34 = vsel %vm954_vm1, %v1717_v35, %v1726_v24  ;;  %v4874_v53 = vcombine.low %v6200_v55, %v6203_v36  ;;  %v7946_v35 = vld [vmem:[#allocation20_spill] sm:$0xff]  ;;  %v4877_v24 = vcombine.low %v6281_v50, %v6284_v49 }
  0x54   : > { %v1744_v39 = vor.u32 %v1743_v0, %v1740_v43  ;;  %v5662_v7 = vld [vmem:[%s5814_s15 + $0x28] sm:$0xff]  }
  0x55   : > { %5303 = vmatmul.mubr.msk.bf16.gmra.mxu1 %vm1107_vm2, %v6003_v61  ;;  %v4875_v61 = vcombine.low %v6206_v40, %v6209_v18  ;;  %v1756_v10 = vshrl.u32 %v4874_v53, 16  ;;  %v1759_v21 = vshll.u32 %v4874_v53, 16  ;;  %v1774_v53 = vshrl.u32 %v4876_v33, 16 }
  0x56   : > { %5306 = vmatprep.mubr.msk.bf16.mxu1 %vm1107_vm2, %v6028_v4  ;;  %v1745_v56 = vsel %vm954_vm1, %v1735_v16, %v1744_v39  ;;  %v1754_v2 = vsel %vm954_vm1, %v1744_v39, %v1753_v57  ;;  %v1783_v39 = vshrl.u32 %v4877_v24, 16  ;;  %v7953_v16 = vld [vmem:[#allocation11_spill] sm:$0xff] }
  0x57   : > { %v1765_v25 = vshrl.u32 %v4875_v61, 16  ;;  %v1768_v4 = vshll.u32 %v4875_v61, 16  ;;  %v1758_v22 = vrot.slane %v1756_v10, 3  ;;  %v1761_v26 = vrot.slane %v1759_v21, 4 }
  0x58   : > { %v1777_v61 = vshll.u32 %v4876_v33, 16  ;;  %v1786_v21 = vshll.u32 %v4877_v24, 16  ;;  %v1785_v31 = vrot.slane %v1783_v39, 3 }
  0x59   : > { %v1767_v43 = vrot.slane %v1765_v25, 3  ;;  %v1770_v0 = vrot.slane %v1768_v4, 4  ;;  %v6311_v25 = vld [vmem:[%s5814_s15 + $0x94] sm:$0xf]  ;;  %v7950_v4 = vld [vmem:[#allocation10_spill] sm:$0xff] }
  0x5a   : > { %5341 = vmatmul.mubr.msk.bf16.gmra.mxu0 %vm1107_vm2, %v1727_v34  ;;  %v1762_v34 = vor.u32 %v1761_v26, %v1758_v22  ;;  %v7954_v22 = vld [vmem:[#allocation29_spill] sm:$0xff]  ;;  %v7955_v26 = vld [vmem:[#allocation28_spill] sm:$0xff]  ;;  %v4878_v24 = vcombine.low %v6311_v25, %v6311_v25 }
  0x5b   : > { %5344 = vmatprep.mubr.msk.bf16.mxu0 %vm1107_vm2, %v1736_v1  ;;  %v1771_v10 = vor.u32 %v1770_v0, %v1767_v43  ;;  %v1776_v1 = vrot.slane %v1774_v53, 3  ;;  %v1779_v43 = vrot.slane %v1777_v61, 4 }
  0x5c   : > { %v1792_v33 = vshrl.u32 %v4878_v24, 16  ;;  %v1795_v60 = vshll.u32 %v4878_v24, 16  ;;  %v7962_v24 = vld [vmem:[#allocation16_spill] sm:$0xff] }
  0x5d   : > { %5307 = vmatmul.mubr.msk.bf16.gmra.mxu1 %vm1107_vm2, %v7946_v35  ;;  %v7951_v35 = vld [vmem:[#allocation27_spill] sm:$0xff]  ;;  %v1772_v0 = vsel %vm954_vm1, %v1762_v34, %v1771_v10 }
  0x5e   : > { %5310 = vmatprep.mubr.msk.bf16.mxu1 %vm1107_vm2, %v6082_v12  ;;  %v7949_v12 = vld [vmem:[#allocation23_spill] sm:$0xff] }
  0x62   : > { %5345 = vmatmul.mubr.msk.bf16.gmra.mxu0 %vm1107_vm2, %v1745_v56  ;;  %v7952_v56 = vld [vmem:[#allocation26_spill] sm:$0xff] }
  0x63   : > { %5348 = vmatprep.mubr.msk.bf16.mxu0 %vm1107_vm2, %v1754_v2  ;;  %v1763_v2 = vsel %vm954_vm1, %v1753_v57, %v1762_v34  ;;  %v7958_v57 = vld [vmem:[#allocation32_spill] sm:$0xff]  ;;  %v7960_v34 = vld [vmem:[#allocation14_spill] sm:$0xff] }
  0x64   : > { %v4958_v53 = vcombine.low %v7958_v57, %v6200_v55 }
  0x65   : > { %5311 = vmatmul.mubr.msk.bf16.gmra.mxu1 %vm1107_vm2, %v7950_v4  ;;  %v1788_v4 = vrot.slane %v1786_v21, 4  ;;  %v1794_v21 = vrot.slane %v1792_v33, 3  ;;  %v7963_v33 = vld [vmem:[#allocation4_spill] sm:$0xff] }
  0x66   : > { %5314 = vmatprep.mubr.msk.bf16.mxu1 %vm1107_vm2, %v7953_v16  ;;  %v1780_v16 = vor.u32 %v1779_v43, %v1776_v1  ;;  %v4959_v1 = vcombine.low %v6203_v36, %v6206_v40  ;;  %v7961_v43 = vld [vmem:[#allocation15_spill] sm:$0xff] }
  0x67   : > { %v1789_v61 = vor.u32 %v1788_v4, %v1785_v31 }
  0x68   : > { %v1781_v39 = vsel %vm954_vm1, %v1771_v10, %v1780_v16  ;;  %v4961_v10 = vcombine.low %v6275_v59, %v6281_v50 }
  0x69   : > { %v1790_v27 = vsel %vm954_vm1, %v1780_v16, %v1789_v61  ;;  %v6366_v16 = vld [vmem:[%s7864_s2 + $0x10] sm:$0x3] }
  0x6a   : > { %5349 = vmatmul.mubr.msk.bf16.gmra.mxu0 %vm1107_vm2, %v1763_v2  ;;  %v1797_v2 = vrot.slane %v1795_v60, 4 }
  0x6b   : > { %5352 = vmatprep.mubr.msk.bf16.mxu0 %vm1107_vm2, %v1772_v0  ;;  %v7964_v0 = vld [vmem:[#allocation24_spill] sm:$0xff] }
  0x6c   : > { %v1798_v31 = vor.u32 %v1797_v2, %v1794_v21  ;;  %v3203_v4 = vsel %vm1156_vm0, %v7964_v0, 0 }
  0x6d   : > { %5315 = vmatmul.mubr.msk.bf16.gmra.mxu1 %vm1107_vm2, %v7959_v28  ;;  %v4960_v28 = vcombine.low %v6209_v18, %v6272_v44 }
  0x6e   : > { %5318 = vmatprep.mubr.msk.bf16.mxu1 %vm1107_vm2, %v7960_v34  ;;  %v1799_v60 = vsel %vm954_vm1, %v1789_v61, %v1798_v31  ;;  %v7968_v61 = vld [vmem:[#allocation13_spill] sm:$0xff]  ;;  %v7969_v34 = vld [vmem:[#allocation7_spill] sm:$0xff]  ;;  %v5659_v31 = vld [vmem:[%s5814_s15 + $0x18] sm:$0xff]  }
  0x72   : > { %5353 = vmatmul.mubr.msk.bf16.gmra.mxu0 %vm1107_vm2, %v1781_v39  ;;  %v7970_v39 = vld [vmem:[#allocation6_spill] sm:$0xff] }
  0x73   : > { %5356 = vmatprep.mubr.msk.bf16.mxu0 %vm1107_vm2, %v1790_v27  ;;  %v4962_v27 = vcombine.low %v6284_v49, %v6311_v25  ;;  %v4905_v21 = vcombine.low %v7970_v39, %v7969_v34 }
  0x75   : > { %5319 = vmatmul.mubr.msk.bf16.gmra.mxu1 %vm1107_vm2, %v7961_v43 }
  0x76   : > { %5322 = vmatprep.mubr.msk.bf16.mxu1 %vm1107_vm2, %v7962_v24 }
  0x7a   : > { %5357 = vmatmul.mubr.msk.bf16.gmra.mxu0 %vm1107_vm2, %v1799_v60 }
  0x7b   : > { %5396 = vmatprep.mubr.msk.bf16.mxu0 %vm1107_vm2, %v4929_v8  ;;  %v7966_v8 = vld [vmem:[#allocation5_spill] sm:$0xff] }
  0x7d   : > { %5323 = vmatmul.mubr.msk.bf16.gmra.mxu1 %vm1107_vm2, %v6245_v54  ;;  %v6377_v54 = vld [vmem:[%s7864_s2 + $0x4] sm:$0x3] }
  0x7e   : > { %5362 = vmatprep.mubr.msk.bf16.mxu1 %vm1107_vm2, %v7963_v33 }
  0x82   : > { %5397 = vmatmul.mubr.msk.bf16.vlgmr.msra.gmra.mxu0 %vm1107_vm2, %v7963_v33  ;;  %v3030_v33 = vshll.u32 %v5659_v31, 16 }
  0x83   : > { %5463 = vmatpush3.bf16.msra.mxu0 %v3203_v4  ;;  %5400 = vmatprep.mubr.msk.bf16.mxu0 %vm1107_vm2, %v7966_v8 }
  0x84   : > { %5575 = vmatprep.subr.msk.bf16.mxu0 %vm1156_vm0, %v6366_v16  ;;  %v3032_v4 = vrot.slane %v3030_v33, 1 }
  0x85   : > { %5363 = vmatmul.mubr.msk.bf16.vlgmr.msra.gmra.mxu1 %vm1107_vm2, %v7966_v8 }
  0x86   : > { %5429 = vmatpush3.bf16.msra.mxu1 %v2671_v5  ;;  %5366 = vmatprep.mubr.msk.bf16.mxu1 %vm1107_vm2, %v6216_v30  ;;  %v3034_v5 = vshrl.u32 %v5659_v31, 16  ;;  %v3856_v31 = vsel %vm1156_vm0, %v6366_v16, 0 }
  0x87   : > { %5574 = vmatprep.subr.msk.bf16.mxu1 %vm1156_vm0, %v6377_v54 }
  0x88   : > { %v3036_v34 = vor.u32 %v3034_v5, %v3032_v4  ;;  %v7978_v5 = vcombine.low %v7945_v6, %v6074_v14 }
  0x8a   : > { %5401 = vmatmul.mubr.msk.bf16.gmra.mxu0 %vm1107_vm2, %v6216_v30  ;;  %v7967_v30 = vld [vmem:[#allocation3_spill] sm:$0xff] }
  0x8b   : > { %5404 = vmatprep.mubr.msk.bf16.mxu0 %vm1107_vm2, %v6222_v46 }
  0x8d   : > { %5367 = vmatmul.mubr.msk.bf16.gmra.mxu1 %vm1107_vm2, %v6222_v46  ;;  %v4904_v46 = vcombine.low %v7968_v61, %v7967_v30  ;;  %v3046_v30 = vshll.u32 %v5662_v7, 16 }
  0x8e   : > { %5370 = vmatprep.mubr.msk.bf16.mxu1 %vm1107_vm2, %v6228_v3 }
  0x8f   : > { %v3048_v39 = vrot.slane %v3046_v30, 1 }
  0x92   : > { %5405 = vmatmul.mubr.msk.bf16.gmra.mxu0 %vm1107_vm2, %v6228_v3  ;;  %v7971_v3 = vld [vmem:[#allocation9_spill] sm:$0xff] }
  0x93   : > { %5408 = vmatprep.mubr.msk.bf16.mxu0 %vm1107_vm2, %v6232_v23 }
  0x95   : > { %5371 = vmatmul.mubr.msk.bf16.gmra.mxu1 %vm1107_vm2, %v6232_v23  ;;  %v7972_v23 = vld [vmem:[#allocation8_spill] sm:$0xff] }
  0x96   : > { %5374 = vmatprep.mubr.msk.bf16.mxu1 %vm1107_vm2, %v6236_v29  ;;  %v4906_v2 = vcombine.low %v7972_v23, %v7971_v3  ;;  %v7973_v3 = vcombine.low %v5990_v37, %v6000_v58  ;;  %v7974_v23 = vcombine.low %v6033_v62, %v6042_v19  ;;  %v5668_v19 = vld [vmem:[%s5814_s15 + $0x40] sm:$0xff]  }
  0x9a   : > { %5409 = vmatmul.mubr.msk.bf16.gmra.mxu0 %vm1107_vm2, %v6236_v29  ;;  %v5658_v29 = vld [vmem:[%s5814_s15 + $0x10] sm:$0xff]  }
  0x9b   : > { %5412 = vmatprep.mubr.msk.bf16.mxu0 %vm1107_vm2, %v4904_v46  ;;  %v3025_v43 = vshll.u32 %v5658_v29, 16  ;;  %v3023_v24 = vshrl.u32 %v5658_v29, 16  ;;  %v3050_v29 = vshrl.u32 %v5662_v7, 16  ;;  %v7976_v7 = vld [vmem:[#allocation18_spill] sm:$0xff] }
  0x9d   : > { %5375 = vmatmul.mubr.msk.bf16.gmra.mxu1 %vm1107_vm2, %v4904_v46  ;;  %v6429_v60 = vrot.slane %v3025_v43, 1  ;;  %v5664_v46 = vld [vmem:[%s5814_s15 + $0x30] sm:$0xff]   ;;  %v3052_v33 = vor.u32 %v3050_v29, %v3048_v39 }
  0x9e   : > { %5378 = vmatprep.mubr.msk.bf16.mxu1 %vm1107_vm2, %v4905_v21  ;;  %v3058_v37 = vshrl.u32 %v5664_v46, 16 }
  0x9f   : > { %v3028_v0 = vor.u32 %v6429_v60, %v3023_v24  ;;  %v3394_v24 = vsel %vm1156_vm0, %v6377_v54, 0  ;;  %v3070_v54 = vshll.u32 %v5668_v19, 16 }
  0xa2   : > { %5413 = vmatmul.mubr.msk.bf16.gmra.mxu0 %vm1107_vm2, %v4905_v21  ;;  %v5666_v21 = vld [vmem:[%s5814_s15 + $0x38] sm:$0xff]  }
  0xa3   : > { %5416 = vmatprep.mubr.msk.bf16.mxu0 %vm1107_vm2, %v4906_v2  ;;  %v3062_v58 = vshll.u32 %v5666_v21, 16  ;;  %v3066_v30 = vshrl.u32 %v5666_v21, 16  ;;  %v7979_v21 = vcombine.low %v7947_v63, %v6085_v45  ;;  %v5676_v63 = vld [vmem:[%s5814_s15 + $0x60] sm:$0xff]  }
  0xa5   : > { %5379 = vmatmul.mubr.msk.bf16.gmra.mxu1 %vm1107_vm2, %v4906_v2 }
  0xa6   : > { %5382 = vmatprep.mubr.msk.bf16.mxu1 %vm1107_vm2, %v6250_v9 }
  0xaa   : > { %5417 = vmatmul.mubr.msk.bf16.gmra.mxu0 %vm1107_vm2, %v6250_v9  ;;  %v5660_v9 = vld [vmem:[%s5814_s15 + $0x20] sm:$0xff]  }
  0xab   : > { %5420 = vmatprep.mubr.msk.bf16.mxu0 %vm1107_vm2, %v6254_v42  ;;  %v3042_v8 = vshrl.u32 %v5660_v9, 16 }
  0xad   : > { %5383 = vmatmul.mubr.msk.bf16.gmra.mxu1 %vm1107_vm2, %v6254_v42  ;;  %v3038_v42 = vshll.u32 %v5660_v9, 16  ;;  %v3064_v9 = vrot.slane %v3062_v58, 1 }
  0xae   : > { %5386 = vmatprep.mubr.msk.bf16.mxu1 %vm1107_vm2, %v6258_v48 }
  0xaf   : > { %v3040_v61 = vrot.slane %v3038_v42, 1  ;;  %v3068_v14 = vor.u32 %v3066_v30, %v3064_v9 }
  0xb1   : > { %v6460_v2 = vsel %vm3021_vm3, %v3036_v34, %v3040_v61 }
  0xb2   : > { %5421 = vmatmul.mubr.msk.bf16.gmra.mxu0 %vm1107_vm2, %v6258_v48  ;;  %v6443_v48 = vsel %vm3021_vm3, %v3028_v0, %v3032_v4  ;;  %v5670_v0 = vld [vmem:[%s5814_s15 + $0x48] sm:$0xff]   ;;  %v7975_v4 = vld [vmem:[#allocation17_spill] sm:$0xff] }
  0xb3   : > { %5424 = vmatprep.mubr.msk.bf16.mxu0 %vm1107_vm2, %v6262_v11  ;;  %v7977_v42 = vcombine.low %v7975_v4, %v7976_v7  ;;  %v3078_v34 = vshll.u32 %v5670_v0, 16 }
  0xb5   : > { %5387 = vmatmul.mubr.msk.bf16.gmra.mxu1 %vm1107_vm2, %v6262_v11  ;;  %v3044_v11 = vor.u32 %v3042_v8, %v3040_v61 }
  0xb6   : > { %5390 = vmatprep.mubr.msk.bf16.mxu1 %vm1107_vm2, %v6266_v20 }
  0xb7   : > { %v6465_v43 = vsel %vm3021_vm3, %v3044_v11, %v3048_v39  ;;  %v3072_v11 = vrot.slane %v3070_v54, 1  ;;  %v5672_v39 = vld [vmem:[%s5814_s15 + $0x50] sm:$0xff]  }
  0xb8   : > { %v3086_v29 = vshll.u32 %v5672_v39, 16 }
  0xba   : > { %5425 = vmatmul.mubr.msk.bf16.gmra.mxu0 %vm1107_vm2, %v6266_v20  ;;  %v3054_v20 = vshll.u32 %v5664_v46, 16  ;;  %v3074_v46 = vshrl.u32 %v5668_v19, 16  ;;  %v3088_v45 = vrot.slane %v3086_v29, 1 }
  0xbb   : > { %5464 = vmatprep.mubr.msk.bf16.mxu0 %vm1107_vm2, %v6443_v48 }
  0xbc   : > { %v3056_v62 = vrot.slane %v3054_v20, 1  ;;  %v3076_v6 = vor.u32 %v3074_v46, %v3072_v11  ;;  %v7980_v20 = vcombine.low %v7948_v13, %v6093_v32  ;;  %v5682_v46 = vld [vmem:[%s5814_s15 + $0x78] sm:$0xff]  }
  0xbd   : > { %5391 = vmatmul.mubr.msk.bf16.gmra.mxu1 %vm1107_vm2, %v7973_v3  ;;  %v3080_v3 = vrot.slane %v3078_v34, 1  ;;  %v7983_v34 = vcombine.low %v6118_v17, %v6141_v52  ;;  %v5684_v52 = vld [vmem:[%s5814_s15 + $0x80] sm:$0xff]  }
  0xbe   : > { %5430 = vmatprep.mubr.msk.bf16.mxu1 %vm1107_vm2, %v7974_v23  ;;  %v3060_v16 = vor.u32 %v3058_v37, %v3056_v62  ;;  %v6484_v8 = vsel %vm3021_vm3, %v3052_v33, %v3056_v62  ;;  %v5674_v23 = vld [vmem:[%s5814_s15 + $0x58] sm:$0xff]   ;;  %v3082_v37 = vshrl.u32 %v5670_v0, 16  ;;  %v3090_v62 = vshrl.u32 %v5672_v39, 16  ;;  %v5678_v33 = vld [vmem:[%s5814_s15 + $0x68] sm:$0xff]  }
  0xbf   : > { %v6507_v58 = vsel %vm3021_vm3, %v3076_v6, %v3080_v3  ;;  %v3094_v19 = vshll.u32 %v5674_v23, 16  ;;  %v3102_v0 = vshll.u32 %v5676_v63, 16  ;;  %v3098_v7 = vshrl.u32 %v5674_v23, 16 }
  0xc0   : > { %v6487_v61 = vsel %vm3021_vm3, %v3060_v16, %v3064_v9  ;;  %v3084_v32 = vor.u32 %v3082_v37, %v3080_v3  ;;  %v3092_v13 = vor.u32 %v3090_v62, %v3088_v45  ;;  %v7981_v16 = vcombine.low %v7949_v12, %v6105_v15  ;;  %v5680_v12 = vld [vmem:[%s5814_s15 + $0x70] sm:$0xff]   ;;  %v5686_v62 = vld [vmem:[%s5814_s15 + $0x88] sm:$0xff]  }
  0xc1   : > { %v7982_v9 = vcombine.low %v6108_v38, %v6111_v51  ;;  %v3110_v54 = vshll.u32 %v5678_v33, 16  ;;  %v3104_v15 = vrot.slane %v3102_v0, 1  ;;  %v3118_v39 = vshll.u32 %v5680_v12, 16 }
  0xc2   : > { %5465 = vmatmul.mubr.msk.bf16.vlgmr.msra.gmra.mxu0 %vm1107_vm2, %v6460_v2  ;;  %v6524_v4 = vsel %vm3021_vm3, %v3084_v32, %v3088_v45  ;;  %v3114_v6 = vshrl.u32 %v5678_v33, 16  ;;  %v3122_v23 = vshrl.u32 %v5680_v12, 16  ;;  %v7985_v45 = vcombine.low %v7955_v26, %v7954_v22  ;;  %v5688_v12 = vld [vmem:[%s5814_s15 + $0x90] ss:$0 sps:$4 sm:$0x11]  }
  0xc3   : > { %5531 = vmatpush3.bf16.msra.mxu0 %v3856_v31  ;;  %5468 = vmatprep.mubr.msk.bf16.mxu0 %vm1107_vm2, %v6465_v43  ;;  %v6504_v31 = vsel %vm3021_vm3, %v3068_v14, %v3072_v11  ;;  %v3112_v30 = vrot.slane %v3110_v54, 1  ;;  %v7984_v11 = vcombine.low %v7952_v56, %v7951_v35  ;;  %v3120_v17 = vrot.slane %v3118_v39, 1 }
  0xc4   : > { %v7986_v32 = vcombine.low %v7957_v47, %v7956_v41  ;;  %v3138_v26 = vshrl.u32 %v5684_v52, 16  ;;  %v3142_v0 = vshll.u32 %v5686_v62, 16  ;;  %v5690_v47 = vld [vmem:[%s5814_s15 + $0x18] sm:$0xff]  }
  0xc5   : > { %5431 = vmatmul.mubr.msk.bf16.vlgmr.msra.gmra.mxu1 %vm1107_vm2, %v7977_v42  ;;  %v3116_v35 = vor.u32 %v3114_v6, %v3112_v30  ;;  %v3124_v29 = vor.u32 %v3122_v23, %v3120_v17  ;;  %v3676_v57 = vshrl.u32 %v5690_v47, 16 }
  0xc6   : > { %5497 = vmatpush3.bf16.msra.mxu1 %v3394_v24  ;;  %5434 = vmatprep.mubr.msk.bf16.mxu1 %vm1107_vm2, %v7978_v5  ;;  %v3096_v24 = vrot.slane %v3094_v19, 1  ;;  %v3106_v5 = vshrl.u32 %v5676_v63, 16 }
  0xc7   : > { %v6574_v33 = vsel %vm3021_vm3, %v3116_v35, %v3120_v17  ;;  %v3146_v17 = vshrl.u32 %v5686_v62, 16 }
  0xc8   : > { %v6527_v42 = vsel %vm3021_vm3, %v3092_v13, %v3096_v24  ;;  %v3100_v38 = vor.u32 %v3098_v7, %v3096_v24  ;;  %v3108_v51 = vor.u32 %v3106_v5, %v3104_v15  ;;  %v3134_v13 = vshll.u32 %v5684_v52, 16 }
  0xc9   : > { %v3150_v52 = vshll.u32 %v5688_v12, 16 }
  0xca   : > { %5469 = vmatmul.mubr.msk.bf16.gmra.mxu0 %vm1107_vm2, %v6484_v8  ;;  %v6544_v14 = vsel %vm3021_vm3, %v3100_v38, %v3104_v15  ;;  %v6547_v3 = vsel %vm3021_vm3, %v3108_v51, %v3112_v30  ;;  %v3136_v5 = vrot.slane %v3134_v13, 1  ;;  %v5689_v38 = vld [vmem:[%s5814_s15 + $0x8] sm:$0xff]  }
  0xcb   : > { %5472 = vmatprep.mubr.msk.bf16.mxu0 %vm1107_vm2, %v6487_v61  ;;  %v3377_v35 = vshll.u32 %v5689_v38, 16  ;;  %v3375_v13 = vshrl.u32 %v5689_v38, 16 }
  0xcc   : > { %v6596_v30 = vor.u32 %v3138_v26, %v3136_v5 }
  0xcd   : > { %5435 = vmatmul.mubr.msk.bf16.gmra.mxu1 %vm1107_vm2, %v7979_v21  ;;  %v3126_v21 = vshll.u32 %v5682_v46, 16 }
  0xce   : > { %5438 = vmatprep.mubr.msk.bf16.mxu1 %vm1107_vm2, %v7980_v20  ;;  %7987 = vst [vmem:[#allocation19_spill] sm:$0xff] %v6596_v30 }
  0xcf   : > { %v3128_v37 = vrot.slane %v3126_v21, 1 }
  0xd1   : > { %v6579_v22 = vsel %vm3021_vm3, %v3124_v29, %v3128_v37 }
  0xd2   : > { %5473 = vmatmul.mubr.msk.bf16.gmra.mxu0 %vm1107_vm2, %v6504_v31 }
  0xd3   : > { %5476 = vmatprep.mubr.msk.bf16.mxu0 %vm1107_vm2, %v6507_v58 }
  0xd5   : > { %5439 = vmatmul.mubr.msk.bf16.gmra.mxu1 %vm1107_vm2, %v7981_v16  ;;  %v3130_v16 = vshrl.u32 %v5682_v46, 16  ;;  %v3144_v46 = vrot.slane %v3142_v0, 1 }
  0xd6   : > { %5442 = vmatprep.mubr.msk.bf16.mxu1 %vm1107_vm2, %v7982_v9 }
  0xd7   : > { %v3132_v15 = vor.u32 %v3130_v16, %v3128_v37  ;;  %v3145_v55 = vsel %vm3021_vm3, %v6596_v30, %v3144_v46  ;;  %v3379_v16 = vrot.slane %v3377_v35, 1 }
  0xd9   : > { %v6614_v21 = vsel %vm3021_vm3, %v3132_v15, %v3136_v5  ;;  %v5693_v5 = vld [vmem:[%s5814_s15 + $0x30] sm:$0xff]  }
  0xda   : > { %5477 = vmatmul.mubr.msk.bf16.gmra.mxu0 %vm1107_vm2, %v6524_v4 }
  0xdb   : > { %5480 = vmatprep.mubr.msk.bf16.mxu0 %vm1107_vm2, %v6527_v42 }
  0xdd   : > { %5443 = vmatmul.mubr.msk.bf16.gmra.mxu1 %vm1107_vm2, %v7983_v34  ;;  %v5691_v34 = vld [vmem:[%s5814_s15 + $0x20] sm:$0xff]  }
  0xde   : > { %5446 = vmatprep.mubr.msk.bf16.mxu1 %vm1107_vm2, %v7984_v11  ;;  %v3678_v11 = vshll.u32 %v5690_v47, 16  ;;  %v3683_v37 = vshll.u32 %v5691_v34, 16 }
  0xe0   : > { %v3685_v47 = vrot.slane %v3683_v37, 1  ;;  %v5695_v37 = vld [vmem:[%s5814_s15 + $0x40] sm:$0xff]  }
  0xe2   : > { %v6549_v20 = vpop.f32.mrf.mxu0  ;;  %5481 = vmatmul.mubr.msk.bf16.gmra.mxu0 %vm1107_vm2, %v6544_v14 }
  0xe3   : > { %5484 = vmatprep.mubr.msk.bf16.mxu0 %vm1107_vm2, %v6547_v3 }
  0xe4   : > { %v6556_v56 = vpop.f32.mrf.mxu0 }
  0xe5   : > { %v6559_v19 = vpop.f32.mrf.mxu1  ;;  %5447 = vmatmul.mubr.msk.bf16.gmra.mxu1 %vm1107_vm2, %v7985_v45  ;;  %v3148_v45 = vor.u32 %v3146_v17, %v3144_v46  ;;  %v3380_v17 = vor.u32 %v3379_v16, %v3375_v13 }
  0xe6   : > { %v6565_v63 = vpop.f32.mrf.mxu0  ;;  %5450 = vmatprep.mubr.msk.bf16.mxu1 %vm1107_vm2, %v7986_v32  ;;  %v3152_v32 = vrot.slane %v3150_v52, 1  ;;  %v3687_v52 = vshrl.u32 %v5691_v34, 16 }
  0xe7   : > { %v6571_v24 = vpop.f32.mrf.mxu1 }
  0xe8   : > { %v6576_v9 = vpop.f32.mrf.mxu0  ;;  %v3689_v34 = vor.u32 %v3687_v52, %v3685_v47 }
  0xe9   : > { %v6582_v41 = vpop.f32.mrf.mxu1 }
  0xea   : > { %v6584_v7 = vpop.f32.mrf.mxu0  ;;  %5485 = vmatmul.mubr.msk.bf16.gmra.mxu0 %vm1107_vm2, %v6574_v33 }
  0xeb   : > { %v6588_v54 = vpop.f32.mrf.mxu1  ;;  %5488 = vmatprep.mubr.msk.bf16.mxu0 %vm1107_vm2, %v6579_v22 }
  0xec   : > { %v6594_v51 = vpop.f32.mrf.mxu0 }
  0xed   : > { %v6599_v39 = vpop.f32.mrf.mxu1  ;;  %5451 = vmatmul.mubr.msk.bf16.gmra.mxu1 %vm1107_vm2, %v4958_v53  ;;  %v3680_v53 = vrot.slane %v3678_v11, 1  ;;  %v3153_v11 = vsel %vm3021_vm3, %v3148_v45, %v3152_v32 }
  0xee   : > { %v6605_v6 = vpop.f32.mrf.mxu0  ;;  %5454 = vmatprep.mubr.msk.bf16.mxu1 %vm1107_vm2, %v4959_v1  ;;  %v5692_v1 = vld [vmem:[%s5814_s15 + $0x28] sm:$0xff]  }
  0xef   : > { %v6611_v23 = vpop.f32.mrf.mxu1  ;;  %v3681_v0 = vor.u32 %v3680_v53, %v3676_v57  ;;  %v3691_v38 = vshll.u32 %v5692_v1, 16  ;;  %v3695_v44 = vshrl.u32 %v5692_v1, 16  ;;  %v5694_v57 = vld [vmem:[%s5814_s15 + $0x38] sm:$0xff]   ;;  %v3381_v53 = vsel %vm3021_vm3, %v3380_v17, %v6429_v60 }
  0xf0   : > { %v6616_v29 = vpop.f32.mrf.mxu0  ;;  %v3707_v16 = vshll.u32 %v5694_v57, 16  ;;  %v3715_v17 = vshll.u32 %v5695_v37, 16 }
  0xf1   : > { %v6620_v36 = vpop.f32.mrf.mxu1  ;;  %v3686_v18 = vsel %vm3021_vm3, %v3681_v0, %v3685_v47  ;;  %v3693_v50 = vrot.slane %v3691_v38, 1  ;;  %v3703_v38 = vshrl.u32 %v5693_v5, 16 }
  0xf2   : > { %v6622_v40 = vpop.f32.mrf.mxu0  ;;  %5489 = vmatmul.mubr.msk.bf16.gmra.mxu0 %vm1107_vm2, %v6614_v21 }
  0xf3   : > { %v6627_v62 = vpop.f32.mrf.mxu1  ;;  %5492 = vmatprep.mubr.msk.bf16.mxu0 %vm1107_vm2, %v3145_v55  ;;  %v3697_v1 = vor.u32 %v3695_v44, %v3693_v50  ;;  %v3694_v47 = vsel %vm3021_vm3, %v3689_v34, %v3693_v50  ;;  %v5696_v44 = vld [vmem:[%s5814_s15 + $0x48] sm:$0xff]   ;;  %v3717_v50 = vrot.slane %v3715_v17, 1  ;;  %v5697_v34 = vld [vmem:[%s5814_s15 + $0x50] sm:$0xff]  }
  0xf4   : > { %v6630_v26 = vpop.f32.mrf.mxu0 }
  0xf5   : > { %v6633_v15 = vpop.f32.mrf.mxu1  ;;  %5455 = vmatmul.mubr.msk.bf16.gmra.mxu1 %vm1107_vm2, %v4960_v28  ;;  %v3699_v28 = vshll.u32 %v5693_v5, 16 }
  0xf6   : > { %v6639_v12 = vpop.f32.mrf.mxu0  ;;  %5458 = vmatprep.mubr.msk.bf16.mxu1 %vm1107_vm2, %v4961_v10 }
  0xf7   : > { %v6645_v46 = vpop.f32.mrf.mxu1  ;;  %v3701_v32 = vrot.slane %v3699_v28, 1 }
  0xf8   : > { %v6648_v35 = vpop.f32.mrf.mxu0 }
  0xf9   : > { %v6651_v55 = vpop.f32.mrf.mxu1  ;;  %v3702_v49 = vsel %vm3021_vm3, %v3697_v1, %v3701_v32 }
  0xfa   : > { %v6654_v59 = vpop.f32.mrf.mxu0  ;;  %5493 = vmatmul.mubr.msk.bf16.gmra.mxu0 %vm1107_vm2, %v3153_v11  ;;  %v3711_v11 = vshrl.u32 %v5694_v57, 16 }
  0xfb   : > { %v6657_v10 = vpop.f32.mrf.mxu1  ;;  %5532 = vmatprep.mubr.msk.bf16.mxu0 %vm1107_vm2, %v3686_v18 }
  0xfc   : > { %7988 = vst [vmem:[#allocation20_spill] sm:$0xff] %v6657_v10  ;;  %v6663_v45 = vpop.f32.mrf.mxu0 }
  0xfd   : > { %v6665_v13 = vpop.f32.mrf.mxu1  ;;  %5459 = vmatmul.mubr.msk.bf16.gmra.mxu1 %vm1107_vm2, %v4962_v27  ;;  %v3709_v27 = vrot.slane %v3707_v16, 1 }
  0xfe   : > { %7989 = vst [vmem:[#allocation21_spill] sm:$0xff] %v6665_v13  ;;  %v6671_v0 = vpop.f32.mrf.mxu0  ;;  %5498 = vmatprep.mubr.msk.bf16.mxu1 %vm1107_vm2, %v3381_v53  ;;  %v3705_v53 = vor.u32 %v3703_v38, %v3701_v32  ;;  %v3731_v13 = vshll.u32 %v5697_v34, 16 }
  0xff   : > { %v6674_v60 = vpop.f32.mrf.mxu1  ;;  %v3713_v5 = vor.u32 %v3711_v11, %v3709_v27  ;;  %v3719_v11 = vshrl.u32 %v5695_v37, 16 }
 0x100   : > { %7990 = vst [vmem:[#allocation22_spill] sm:$0xff] %v6674_v60  ;;  %v6677_v52 = vpop.f32.mrf.mxu0  ;;  %v3710_v32 = vsel %vm3021_vm3, %v3705_v53, %v3709_v27 }
 0x101   : > { %v6680_v25 = vpop.f32.mrf.mxu1  ;;  %v3718_v38 = vsel %vm3021_vm3, %v3713_v5, %v3717_v50  ;;  %v3721_v37 = vor.u32 %v3719_v11, %v3717_v50 }
 0x102   : > { %7991 = vst [vmem:[#allocation23_spill] sm:$0xff] %v6680_v25  ;;  %v5330_v18 = vpop.f32.mrf.mxu0  ;;  %5533 = vmatmul.mubr.msk.bf16.vlgmr.msra.gmra.mxu0 %vm1107_vm2, %v3694_v47  ;;  %v3723_v47 = vshll.u32 %v5696_v44, 16 }
 0x103   : > { %v6684_v28 = vpop.f32.mrf.mxu1  ;;  %5536 = vmatprep.mubr.msk.bf16.mxu0 %vm1107_vm2, %v3702_v49 }
 0x104   : > { %7992 = vst [vmem:[#allocation10_spill] sm:$0xff] %v6684_v28  ;;  %v1885_v57 = vpop.f32.mrf.mxu0  ;;  %v3725_v27 = vrot.slane %v3723_v47, 1 }
 0x105   : > { %v5296_v60 = vpop.f32.mrf.mxu1  ;;  %5499 = vmatmul.mubr.msk.bf16.vlgmr.msra.gmra.mxu1 %vm1107_vm2, %v6443_v48  ;;  %v3727_v48 = vshrl.u32 %v5696_v44, 16 }
 0x106   : > { %v1412_v1 = vadd.f32 %v5296_v60, %v6549_v20  ;;  %v5331_v16 = vpop.f32.mrf.mxu0  ;;  %5502 = vmatprep.mubr.msk.bf16.mxu1 %vm1107_vm2, %v6460_v2  ;;  %v5698_v60 = vld [vmem:[%s5814_s15 + $0x58] sm:$0xff]  }
 0x107   : > { %v1403_v28 = vpop.f32.mrf.mxu1  ;;  %v3729_v5 = vor.u32 %v3727_v48, %v3725_v27  ;;  %v3743_v11 = vshrl.u32 %v5698_v60, 16 }
 0x108   : > { %v6695_v17 = vadd.f32 %v5330_v18, %v1412_v1  ;;  %v1404_v49 = vadd.f32 %v1403_v28, %v6556_v56  ;;  %v1888_v25 = vpop.f32.mrf.mxu0  ;;  %v6705_v18 = vld [vmem:[%s5814_s15 + $0x60] sm:$0xff]  }
 0x109   : > { %v5297_v20 = vpop.f32.mrf.mxu1 }
 0x10a   : > { %v6699_v10 = vadd.f32 %v1885_v57, %v1404_v49  ;;  %v1415_v2 = vadd.f32 %v5297_v20, %v6565_v63  ;;  %v5334_v30 = vpop.f32.mrf.mxu0  ;;  %5537 = vmatmul.mubr.msk.bf16.gmra.mxu0 %vm1107_vm2, %v3710_v32  ;;  %v3733_v57 = vrot.slane %v3731_v13, 1  ;;  %v3739_v63 = vshll.u32 %v5698_v60, 16 }
 0x10b   : > { %v1406_v53 = vpop.f32.mrf.mxu1  ;;  %5540 = vmatprep.mubr.msk.bf16.mxu0 %vm1107_vm2, %v3718_v38  ;;  %v3735_v38 = vshrl.u32 %v5697_v34, 16  ;;  %v3747_v13 = vshll.u32 %v6705_v18, 16  ;;  %v5700_v34 = vld [vmem:[%s5814_s15 + $0x68] sm:$0xff]  }
 0x10c   : > { %v6707_v56 = vadd.f32 %v5331_v16, %v1415_v2  ;;  %v1407_v44 = vadd.f32 %v1406_v53, %v6576_v9  ;;  %v1901_v28 = vpop.f32.mrf.mxu0  ;;  %v3726_v9 = vsel %vm3021_vm3, %v3721_v37, %v3725_v27  ;;  %v3734_v48 = vsel %vm3021_vm3, %v3729_v5, %v3733_v57 }
 0x10d   : > { %v5300_v1 = vpop.f32.mrf.mxu1  ;;  %5503 = vmatmul.mubr.msk.bf16.gmra.mxu1 %vm1107_vm2, %v6465_v43  ;;  %v3741_v20 = vrot.slane %v3739_v63, 1  ;;  %v3737_v27 = vor.u32 %v3735_v38, %v3733_v57 }
 0x10e   : > { %v6712_v32 = vadd.f32 %v1888_v25, %v1407_v44  ;;  %v1428_v50 = vadd.f32 %v5300_v1, %v6584_v7  ;;  %v5335_v47 = vpop.f32.mrf.mxu0  ;;  %5506 = vmatprep.mubr.msk.bf16.mxu1 %vm1107_vm2, %v6484_v8  ;;  %v5701_v1 = vld [vmem:[%s5814_s15 + $0x70] sm:$0xff]  }
 0x10f   : > { %v1419_v16 = vpop.f32.mrf.mxu1 }
 0x110   : > { %v6719_v49 = vadd.f32 %v5334_v30, %v1428_v50  ;;  %v1420_v43 = vadd.f32 %v1419_v16, %v6594_v51  ;;  %v1904_v25 = vpop.f32.mrf.mxu0  ;;  %v3745_v30 = vor.u32 %v3743_v11, %v3741_v20  ;;  %v3749_v51 = vrot.slane %v3747_v13, 1 }
 0x111   : > { %v5301_v7 = vpop.f32.mrf.mxu1  ;;  %v3755_v50 = vshll.u32 %v5700_v34, 16  ;;  %v3742_v16 = vsel %vm3021_vm3, %v3737_v27, %v3741_v20  ;;  %v3759_v13 = vshrl.u32 %v5700_v34, 16 }
 0x112   : > { %v6723_v2 = vadd.f32 %v1901_v28, %v1420_v43  ;;  %v1431_v8 = vadd.f32 %v5301_v7, %v6605_v6  ;;  %v5338_v53 = vpop.f32.mrf.mxu0  ;;  %5541 = vmatmul.mubr.msk.bf16.gmra.mxu0 %vm1107_vm2, %v3726_v9  ;;  %v3751_v9 = vshrl.u32 %v6705_v18, 16 }
 0x113   : > { %v1422_v60 = vpop.f32.mrf.mxu1  ;;  %5544 = vmatprep.mubr.msk.bf16.mxu0 %vm1107_vm2, %v3734_v48  ;;  %v3757_v20 = vrot.slane %v3755_v50, 1 }
 0x114   : > { %v6729_v37 = vadd.f32 %v5335_v47, %v1431_v8  ;;  %v1423_v44 = vadd.f32 %v1422_v60, %v6616_v29  ;;  %v1917_v5 = vpop.f32.mrf.mxu0  ;;  %v3750_v29 = vsel %vm3021_vm3, %v3745_v30, %v3749_v51  ;;  %v3753_v18 = vor.u32 %v3751_v9, %v3749_v51 }
 0x115   : > { %v5304_v28 = vpop.f32.mrf.mxu1  ;;  %5507 = vmatmul.mubr.msk.bf16.gmra.mxu1 %vm1107_vm2, %v6487_v61  ;;  %v3761_v27 = vor.u32 %v3759_v13, %v3757_v20 }
 0x116   : > { %v6735_v6 = vadd.f32 %v1904_v25, %v1423_v44  ;;  %v1444_v63 = vadd.f32 %v5304_v28, %v6622_v40  ;;  %v5339_v57 = vpop.f32.mrf.mxu0  ;;  %5510 = vmatprep.mubr.msk.bf16.mxu1 %vm1107_vm2, %v6504_v31  ;;  %v3763_v40 = vshll.u32 %v5701_v1, 16  ;;  %v5702_v25 = vld [vmem:[%s5814_s15 + $0x78] sm:$0xff]  }
 0x117   : > { %v1435_v47 = vpop.f32.mrf.mxu1  ;;  %v3775_v50 = vshrl.u32 %v5702_v25, 16 }
 0x118   : > { %v6743_v38 = vadd.f32 %v5338_v53, %v1444_v63  ;;  %v1436_v61 = vadd.f32 %v1435_v47, %v6630_v26  ;;  %v1920_v11 = vpop.f32.mrf.mxu0  ;;  %v5703_v53 = vld [vmem:[%s5814_s15 + $0x80] sm:$0xff]   ;;  %v3765_v30 = vrot.slane %v3763_v40, 1 }
 0x119   : > { %v5305_v43 = vpop.f32.mrf.mxu1  ;;  %v3779_v47 = vshll.u32 %v5703_v53, 16 }
 0x11a   : > { %v6747_v48 = vadd.f32 %v1917_v5, %v1436_v61  ;;  %v1447_v31 = vadd.f32 %v5305_v43, %v6639_v12  ;;  %v5342_v7 = vpop.f32.mrf.mxu0  ;;  %5545 = vmatmul.mubr.msk.bf16.gmra.mxu0 %vm1107_vm2, %v3742_v16  ;;  %v3771_v12 = vshll.u32 %v5702_v25, 16  ;;  %v3766_v9 = vsel %vm3021_vm3, %v3761_v27, %v3765_v30 }
 0x11b   : > { %v1438_v8 = vpop.f32.mrf.mxu1  ;;  %5548 = vmatprep.mubr.msk.bf16.mxu0 %vm1107_vm2, %v3750_v29 }
 0x11c   : > { %v6753_v60 = vadd.f32 %v5339_v57, %v1447_v31  ;;  %v1439_v26 = vadd.f32 %v1438_v8, %v6648_v35  ;;  %v1933_v34 = vpop.f32.mrf.mxu0  ;;  %v3758_v35 = vsel %vm3021_vm3, %v3753_v18, %v3757_v20  ;;  %v3767_v57 = vshrl.u32 %v5701_v1, 16  ;;  %v5704_v1 = vld [vmem:[%s5814_s15 + $0x88] sm:$0xff]   ;;  %v5705_v8 = vld [vmem:[%s5814_s15 + $0x90] sm:$0xff]  }
 0x11d   : > { %v5308_v44 = vpop.f32.mrf.mxu1  ;;  %5511 = vmatmul.mubr.msk.bf16.gmra.mxu1 %vm1107_vm2, %v6507_v58  ;;  %v3773_v61 = vrot.slane %v3771_v12, 1  ;;  %v3787_v27 = vshll.u32 %v5704_v1, 16  ;;  %v3783_v12 = vshrl.u32 %v5703_v53, 16  ;;  %v5707_v53 = vld [vmem:[%s5814_s15 + $0x98] ss:$0 sps:$4 sm:$0x11]  }
 0x11e   : > { %v6758_v5 = vadd.f32 %v1920_v11, %v1439_v26  ;;  %v1460_v28 = vadd.f32 %v5308_v44, %v6654_v59  ;;  %v5343_v51 = vpop.f32.mrf.mxu0  ;;  %5514 = vmatprep.mubr.msk.bf16.mxu1 %vm1107_vm2, %v6524_v4  ;;  %v3769_v43 = vor.u32 %v3767_v57, %v3765_v30 }
 0x11f   : > { %v1451_v63 = vpop.f32.mrf.mxu1  ;;  %v3777_v25 = vor.u32 %v3775_v50, %v3773_v61 }
 0x120   : > { %v6764_v16 = vadd.f32 %v5342_v7, %v1460_v28  ;;  %v1452_v58 = vadd.f32 %v1451_v63, %v6663_v45  ;;  %v1936_v29 = vpop.f32.mrf.mxu0  ;;  %v3781_v45 = vrot.slane %v3779_v47, 1  ;;  %v3774_v44 = vsel %vm3021_vm3, %v3769_v43, %v3773_v61  ;;  %v5706_v43 = vld [vmem:[%s5814_s15 + $0x88] ss:$0 sps:$4 sm:$0x11]  }
 0x121   : > { %v5309_v59 = vpop.f32.mrf.mxu1  ;;  %v3791_v63 = vshrl.u32 %v5704_v1, 16  ;;  %v3789_v47 = vrot.slane %v3787_v27, 1 }
 0x122   : > { %v6768_v11 = vadd.f32 %v1933_v34, %v1452_v58  ;;  %v1463_v4 = vadd.f32 %v5309_v59, %v6671_v0  ;;  %v5346_v13 = vpop.f32.mrf.mxu0  ;;  %5549 = vmatmul.mubr.msk.bf16.gmra.mxu0 %vm1107_vm2, %v3758_v35  ;;  %v3795_v35 = vshll.u32 %v5705_v8, 16 }
 0x123   : > { %v1454_v40 = vpop.f32.mrf.mxu1  ;;  %5552 = vmatprep.mubr.msk.bf16.mxu0 %vm1107_vm2, %v3766_v9  ;;  %v3793_v61 = vor.u32 %v3791_v63, %v3789_v47 }
 0x124   : > { %v6774_v31 = vadd.f32 %v5343_v51, %v1463_v4  ;;  %v1455_v7 = vadd.f32 %v1454_v40, %v6677_v52  ;;  %v1949_v20 = vpop.f32.mrf.mxu0  ;;  %v3782_v52 = vsel %vm3021_vm3, %v3777_v25, %v3781_v45  ;;  %v3797_v4 = vrot.slane %v3795_v35, 1 }
 0x125   : > { %v5312_v18 = vpop.f32.mrf.mxu1  ;;  %5515 = vmatmul.mubr.msk.bf16.gmra.mxu1 %vm1107_vm2, %v6527_v42 }
 0x126   : > { %v6780_v0 = vadd.f32 %v1936_v29, %v1455_v7  ;;  %v1476_v26 = vadd.f32 %v5312_v18, %v6559_v19  ;;  %v5347_v34 = vpop.f32.mrf.mxu0  ;;  %5518 = vmatprep.mubr.msk.bf16.mxu1 %vm1107_vm2, %v6544_v14  ;;  %v3785_v29 = vor.u32 %v3783_v12, %v3781_v45  ;;  %v3803_v7 = vshll.u32 %v5707_v53, 16 }
 0x127   : > { %v1467_v30 = vpop.f32.mrf.mxu1 }
 0x128   : > { %v6787_v28 = vadd.f32 %v5346_v13, %v1476_v26  ;;  %v1468_v42 = vadd.f32 %v1467_v30, %v6571_v24  ;;  %v1952_v51 = vpop.f32.mrf.mxu0  ;;  %v3790_v45 = vsel %vm3021_vm3, %v3785_v29, %v3789_v47 }
 0x129   : > { %v5313_v19 = vpop.f32.mrf.mxu1 }
 0x12a   : > { %v6790_v57 = vadd.f32 %v1949_v20, %v1468_v42  ;;  %v1479_v14 = vadd.f32 %v5313_v19, %v6582_v41  ;;  %v5350_v50 = vpop.f32.mrf.mxu0  ;;  %5553 = vmatmul.mubr.msk.bf16.gmra.mxu0 %vm1107_vm2, %v3774_v44 }
 0x12b   : > { %v1470_v58 = vpop.f32.mrf.mxu1  ;;  %5556 = vmatprep.mubr.msk.bf16.mxu0 %vm1107_vm2, %v3782_v52 }
 0x12c   : > { %v6796_v9 = vadd.f32 %v5347_v34, %v1479_v14  ;;  %v1471_v24 = vadd.f32 %v1470_v58, %v6588_v54  ;;  %v1965_v59 = vpop.f32.mrf.mxu0  ;;  %v3799_v54 = vshrl.u32 %v5705_v8, 16  ;;  %v3805_v8 = vrot.slane %v3803_v7, 1  ;;  %v8001_v7 = vld [vmem:[#allocation22_spill] sm:$0xff] }
 0x12d   : > { %v5316_v13 = vpop.f32.mrf.mxu1  ;;  %5519 = vmatmul.mubr.msk.bf16.gmra.mxu1 %vm1107_vm2, %v6547_v3  ;;  %v3798_v3 = vsel %vm3021_vm3, %v3793_v61, %v3797_v4 }
 0x12e   : > { %v6801_v41 = vadd.f32 %v1952_v51, %v1471_v24  ;;  %v1492_v1 = vadd.f32 %v5316_v13, %v6599_v39  ;;  %v5351_v40 = vpop.f32.mrf.mxu0  ;;  %5522 = vmatprep.mubr.msk.bf16.mxu1 %vm1107_vm2, %v6574_v33  ;;  %v3383_v33 = vshll.u32 %v5706_v43, 16  ;;  %v3801_v52 = vor.u32 %v3799_v54, %v3797_v4  ;;  %v7998_v4 = vld [vmem:[#allocation20_spill] sm:$0xff]  ;;  %v8000_v43 = vld [vmem:[#allocation21_spill] sm:$0xff] }
 0x12f   : > { %v1483_v25 = vpop.f32.mrf.mxu1 }
 0x130   : > { %7993 = vst [vmem:[#allocation27_spill] sm:$0xff] %v6801_v41  ;;  %v6808_v20 = vadd.f32 %v5350_v50, %v1492_v1  ;;  %v1484_v18 = vadd.f32 %v1483_v25, %v6611_v23  ;;  %v1968_v26 = vpop.f32.mrf.mxu0  ;;  %v3385_v19 = vrot.slane %v3383_v33, 1  ;;  %v3806_v50 = vsel %vm3021_vm3, %v3801_v52, %v3805_v8  ;;  %v8004_v8 = vld [vmem:[#allocation10_spill] sm:$0xff] }
 0x131   : > { %v5317_v34 = vpop.f32.mrf.mxu1 }
 0x132   : > { %v6812_v27 = vadd.f32 %v1965_v59, %v1484_v18  ;;  %v1495_v39 = vadd.f32 %v5317_v34, %v6620_v36  ;;  %v5354_v30 = vpop.f32.mrf.mxu0  ;;  %5557 = vmatmul.mubr.msk.bf16.gmra.mxu0 %vm1107_vm2, %v3790_v45 }
 0x133   : > { %v1486_v44 = vpop.f32.mrf.mxu1  ;;  %5560 = vmatprep.mubr.msk.bf16.mxu0 %vm1107_vm2, %v3798_v3 }
 0x134   : > { %v6817_v12 = vadd.f32 %v5351_v40, %v1495_v39  ;;  %v1487_v23 = vadd.f32 %v1486_v44, %v6627_v62  ;;  %v1981_v42 = vpop.f32.mrf.mxu0  ;;  %v8002_v39 = vld [vmem:[#allocation23_spill] sm:$0xff] }
 0x135   : > { %v5320_v51 = vpop.f32.mrf.mxu1  ;;  %5523 = vmatmul.mubr.msk.bf16.gmra.mxu1 %vm1107_vm2, %v6579_v22 }
 0x136   : > { %7994 = vst [vmem:[#allocation26_spill] sm:$0xff] %v6817_v12  ;;  %v6822_v63 = vadd.f32 %v1968_v26, %v1487_v23  ;;  %v1508_v36 = vadd.f32 %v5320_v51, %v6633_v15  ;;  %v5355_v35 = vpop.f32.mrf.mxu0  ;;  %5526 = vmatprep.mubr.msk.bf16.mxu1 %vm1107_vm2, %v6614_v21  ;;  %v7996_v15 = vld [vmem:[#allocation19_spill] sm:$0xff] }
 0x137   : > { %v1499_v14 = vpop.f32.mrf.mxu1  ;;  %v3386_v59 = vsel %vm3021_vm3, %v7996_v15, %v3385_v19 }
 0x138   : > { %7995 = vst [vmem:[#allocation11_spill] sm:$0xff] %v6822_v63  ;;  %v6828_v47 = vadd.f32 %v5354_v30, %v1508_v36  ;;  %v1500_v62 = vadd.f32 %v1499_v14, %v6645_v46  ;;  %v1984_v58 = vpop.f32.mrf.mxu0 }
 0x139   : > { %v5321_v29 = vpop.f32.mrf.mxu1 }
 0x13a   : > { %v6831_v53 = vadd.f32 %v1981_v42, %v1500_v62  ;;  %v1511_v22 = vadd.f32 %v5321_v29, %v6651_v55  ;;  %v5358_v24 = vpop.f32.mrf.mxu0  ;;  %5561 = vmatmul.mubr.msk.bf16.gmra.mxu0 %vm1107_vm2, %v3806_v50 }
 0x13b   : > { %v1502_v21 = vpop.f32.mrf.mxu1 }
 0x13c   : > { %v6837_v61 = vadd.f32 %v5355_v35, %v1511_v22  ;;  %v1503_v13 = vadd.f32 %v1502_v21, %v7998_v4  ;;  %v1997_v1 = vpop.f32.mrf.mxu0 }
 0x13d   : > { %v5324_v40 = vpop.f32.mrf.mxu1  ;;  %5527 = vmatmul.mubr.msk.bf16.gmra.mxu1 %vm1107_vm2, %v3386_v59 }
 0x13e   : > { %7997 = vst [vmem:[#allocation29_spill] sm:$0xff] %v6837_v61  ;;  %v6841_v46 = vadd.f32 %v1984_v58, %v1503_v13  ;;  %v1524_v25 = vadd.f32 %v5324_v40, %v8000_v43  ;;  %v5359_v55 = vpop.f32.mrf.mxu0 }
 0x13f   : > { %v1515_v45 = vpop.f32.mrf.mxu1 }
 0x140   : > { %7999 = vst [vmem:[#allocation28_spill] sm:$0xff] %v6841_v46  ;;  %v6844_v54 = vadd.f32 %v5358_v24, %v1524_v25  ;;  %v1516_v18 = vadd.f32 %v1515_v45, %v8001_v7  ;;  %v2000_v26 = vpop.f32.mrf.mxu0 }
 0x141   : > { %v5325_v3 = vpop.f32.mrf.mxu1 }
 0x142   : > { %v6847_v34 = vadd.f32 %v1997_v1, %v1516_v18  ;;  %v1527_v30 = vadd.f32 %v5325_v3, %v8002_v39  ;;  %v5398_v33 = vpop.f32.mrf.mxu0 }
 0x143   : > { %v1518_v44 = vpop.f32.mrf.mxu1 }
 0x144   : > { %v6850_v52 = vadd.f32 %v5359_v55, %v1527_v30  ;;  %v1519_v23 = vadd.f32 %v1518_v44, %v8004_v8  ;;  %v2477_v42 = vpop.f32.mrf.mxu0 }
 0x145   : > { %v5364_v51 = vpop.f32.mrf.mxu1 }
 0x146   : > { %8003 = vst [vmem:[#allocation31_spill] sm:$0xff] %v6850_v52  ;;  %v6853_v36 = vadd.f32 %v2000_v26, %v1519_v23  ;;  %v6855_v35 = vadd.f32 %v5398_v33, %v5364_v51  ;;  %v5399_v19 = vpop.f32.mrf.mxu0 }
 0x147   : > { %v2309_v14 = vpop.f32.mrf.mxu1 }
 0x148   : > { %8005 = vst [vmem:[#allocation30_spill] sm:$0xff] %v6853_v36  ;;  %v6857_v50 = vadd.f32 %v2477_v42, %v2309_v14  ;;  %v2480_v62 = vpop.f32.mrf.mxu0 }
 0x149   : > { %v5365_v58 = vpop.f32.mrf.mxu1 }
 0x14a   : > { %v6859_v29 = vadd.f32 %v5399_v19, %v5365_v58  ;;  %v5402_v22 = vpop.f32.mrf.mxu0 }
 0x14b   : > { %v2312_v24 = vpop.f32.mrf.mxu1 }
 0x14c   : > { %v6861_v15 = vadd.f32 %v2480_v62, %v2312_v24  ;;  %v2493_v59 = vpop.f32.mrf.mxu0 }
 0x14d   : > { %v5368_v21 = vpop.f32.mrf.mxu1 }
 0x14e   : > { %v6863_v4 = vadd.f32 %v5402_v22, %v5368_v21  ;;  %v5403_v13 = vpop.f32.mrf.mxu0 }
 0x14f   : > { %v2325_v1 = vpop.f32.mrf.mxu1 }
 0x150   : > { %v6865_v40 = vadd.f32 %v2493_v59, %v2325_v1  ;;  %v2496_v43 = vpop.f32.mrf.mxu0 }
 0x151   : > { %v5369_v25 = vpop.f32.mrf.mxu1 }
 0x152   : > { %v6867_v55 = vadd.f32 %v5403_v13, %v5369_v25  ;;  %v5406_v45 = vpop.f32.mrf.mxu0 }
 0x153   : > { %v2328_v7 = vpop.f32.mrf.mxu1 }
 0x154   : > { %v6869_v18 = vadd.f32 %v2496_v43, %v2328_v7  ;;  %v2509_v26 = vpop.f32.mrf.mxu0 }
 0x155   : > { %v5372_v3 = vpop.f32.mrf.mxu1 }
 0x156   : > { %v6871_v39 = vadd.f32 %v5406_v45, %v5372_v3  ;;  %v5407_v30 = vpop.f32.mrf.mxu0 }
 0x157   : > { %v2341_v33 = vpop.f32.mrf.mxu1 }
 0x158   : > { %v6873_v44 = vadd.f32 %v2509_v26, %v2341_v33  ;;  %v2512_v8 = vpop.f32.mrf.mxu0 }
 0x159   : > { %v5373_v23 = vpop.f32.mrf.mxu1 }
 0x15a   : > { %v6875_v42 = vadd.f32 %v5407_v30, %v5373_v23  ;;  %v5410_v51 = vpop.f32.mrf.mxu0 }
 0x15b   : > { %v2344_v19 = vpop.f32.mrf.mxu1 }
 0x15c   : > { %v6877_v14 = vadd.f32 %v2512_v8, %v2344_v19  ;;  %v2525_v62 = vpop.f32.mrf.mxu0 }
 0x15d   : > { %v5376_v58 = vpop.f32.mrf.mxu1 }
 0x15e   : > { %v6879_v22 = vadd.f32 %v5410_v51, %v5376_v58  ;;  %v5411_v24 = vpop.f32.mrf.mxu0 }
 0x15f   : > { %v2357_v59 = vpop.f32.mrf.mxu1 }
 0x160   : > { %v6881_v21 = vadd.f32 %v2525_v62, %v2357_v59  ;;  %v2528_v13 = vpop.f32.mrf.mxu0 }
 0x161   : > { %v5377_v1 = vpop.f32.mrf.mxu1 }
 0x162   : > { %v6883_v43 = vadd.f32 %v5411_v24, %v5377_v1  ;;  %v5414_v25 = vpop.f32.mrf.mxu0 }
 0x163   : > { %v2360_v45 = vpop.f32.mrf.mxu1 }
 0x164   : > { %v6885_v7 = vadd.f32 %v2528_v13, %v2360_v45  ;;  %v2541_v26 = vpop.f32.mrf.mxu0 }
 0x165   : > { %v5380_v3 = vpop.f32.mrf.mxu1 }
 0x166   : > { %v6887_v30 = vadd.f32 %v5414_v25, %v5380_v3  ;;  %v5415_v33 = vpop.f32.mrf.mxu0 }
 0x167   : > { %v2373_v8 = vpop.f32.mrf.mxu1 }
 0x168   : > { %v6889_v23 = vadd.f32 %v2541_v26, %v2373_v8  ;;  %v2544_v51 = vpop.f32.mrf.mxu0 }
 0x169   : > { %v5381_v19 = vpop.f32.mrf.mxu1 }
 0x16a   : > { %v6891_v62 = vadd.f32 %v5415_v33, %v5381_v19  ;;  %v5418_v58 = vpop.f32.mrf.mxu0  ;;  %v415_v33 = vlaneseq }
 0x16b   : > { %v2376_v59 = vpop.f32.mrf.mxu1 }
 0x16c   : > { %v6893_v24 = vadd.f32 %v2544_v51, %v2376_v59  ;;  %v2557_v1 = vpop.f32.mrf.mxu0 }
 0x16d   : > { %v5384_v36 = vpop.f32.mrf.mxu1 }
 0x16e   : > { %v6895_v13 = vadd.f32 %v5418_v58, %v5384_v36  ;;  %v5419_v45 = vpop.f32.mrf.mxu0  ;;  %v6905_v58 = vshrl.u32 %v415_v33, 7 }
 0x16f   : > { %v2389_v52 = vpop.f32.mrf.mxu1 }
 0x170   : > { %8006 = vst [vmem:[#allocation32_spill] sm:$0xff] %v6895_v13  ;;  %v6897_v25 = vadd.f32 %v2557_v1, %v2389_v52  ;;  %v2560_v3 = vpop.f32.mrf.mxu0 }
 0x171   : > { %v5385_v46 = vpop.f32.mrf.mxu1 }
 0x172   : > { %8007 = vst [vmem:[#allocation12_spill] sm:$0xff] %v6897_v25  ;;  %v6899_v26 = vadd.f32 %v5419_v45, %v5385_v46  ;;  %v5422_v8 = vpop.f32.mrf.mxu0 }
 0x173   : > { %v2392_v61 = vpop.f32.mrf.mxu1 }
 0x174   : > { %8008 = vst [vmem:[#allocation14_spill] sm:$0xff] %v6899_v26  ;;  %v6901_v19 = vadd.f32 %v2560_v3, %v2392_v61  ;;  %v2573_v63 = vpop.f32.mrf.mxu0  ;;  %v418_v26 = vadd.s32 16, %v6905_v58 }
 0x175   : > { %v5388_v51 = vpop.f32.mrf.mxu1 }
 0x176   : > { %8009 = vst [vmem:[#allocation15_spill] sm:$0xff] %v6901_v19  ;;  %v6903_v59 = vadd.f32 %v5422_v8, %v5388_v51  ;;  %v5423_v12 = vpop.f32.mrf.mxu0  ;;  %v466_v33 = vand.u32 15, %v418_v26  ;;  %v420_v26 = vadd.s32 32, %v6905_v58 }
 0x177   : > { %v2405_v36 = vpop.f32.mrf.mxu1 }
 0x178   : > { %8010 = vst [vmem:[#allocation16_spill] sm:$0xff] %v6903_v59  ;;  %v6907_v13 = vadd.f32 %v2573_v63, %v2405_v36  ;;  %v2576_v52 = vpop.f32.mrf.mxu0  ;;  %vm2046_vm4 = vcmp.gt.s32.totalorder %v466_v33, 0 }
 0x179   : > { %v5389_v1 = vpop.f32.mrf.mxu1 }
 0x17a   : > { %8011 = vst [vmem:[#allocation4_spill] sm:$0xff] %v6907_v13  ;;  %v6909_v25 = vadd.f32 %v5423_v12, %v5389_v1  ;;  %v5426_v46 = vpop.f32.mrf.mxu0  ;;  %v452_v12 = vand.u32 15, %v6905_v58 }
 0x17b   : > { %v2408_v45 = vpop.f32.mrf.mxu1 }
 0x17c   : > { %8012 = vst [vmem:[#allocation24_spill] sm:$0xff] %v6909_v25  ;;  %v6912_v61 = vadd.f32 %v2576_v52, %v2408_v45  ;;  %v2589_v3 = vpop.f32.mrf.mxu0  ;;  %v422_v52 = vadd.s32 48, %v6905_v58  ;;  %vm2044_vm5 = vcmp.gt.s32.totalorder %v452_v12, 0  ;;  %v480_v12 = vand.u32 15, %v420_v26 }
 0x17d   : > { %v5392_v19 = vpop.f32.mrf.mxu1  ;;  %v424_v26 = vadd.s32 64, %v6905_v58 }
 0x17e   : > { %v6914_v8 = vadd.f32 %v5426_v46, %v5392_v19  ;;  %v5427_v51 = vpop.f32.mrf.mxu0  ;;  %vm2048_vm7 = vcmp.gt.s32.totalorder %v480_v12, 0 }
 0x17f   : > { %v2421_v59 = vpop.f32.mrf.mxu1 }
 0x180   : > { %v6916_v41 = vadd.f32 %v2589_v3, %v2421_v59  ;;  %v2592_v63 = vpop.f32.mrf.mxu0 }
 0x181   : > { %v5393_v36 = vpop.f32.mrf.mxu1 }
 0x182   : > { %v6919_v1 = vadd.f32 %v5427_v51, %v5393_v36  ;;  %v6921_v25 = vpop.f32.mrf.mxu0  ;;  %v2142_v51 = vsel %vm2046_vm4, %v6695_v17, 0.0  ;;  %v426_v17 = vadd.s32 80, %v6905_v58 }
 0x183   : > { %8014 = vst [vmem:[#allocation5_spill] sm:$0xff] %v6921_v25  ;;  %v2424_v13 = vpop.f32.mrf.mxu1  ;;  %v494_v25 = vand.u32 15, %v422_v52 }
 0x184   : > { %8013 = vst [vmem:[#allocation25_spill] sm:$0xff] %v6919_v1  ;;  %v6924_v45 = vadd.f32 %v2592_v63, %v2424_v13  ;;  %v6926_v19 = vpop.f32.mrf.mxu0  ;;  %v2140_v63 = vsel %vm2044_vm5, %v6699_v10, 0.0 }
 0x185   : > { %8016 = vst [vmem:[#allocation13_spill] sm:$0xff] %v6926_v19  ;;  %v5432_v46 = vpop.f32.mrf.mxu1  ;;  %vm2050_vm6 = vcmp.gt.s32.totalorder %v494_v25, 0 }
 0x186   : > { %8015 = vst [vmem:[#allocation3_spill] sm:$0xff] %v6924_v45  ;;  %v2836_v59 = vadd.f32 %v5432_v46, %v6855_v35  ;;  %v6930_v3 = vpop.f32.mrf.mxu0  ;;  %v2146_v25 = vsel %vm2050_vm6, %v6719_v49, 0.0  ;;  %v430_v49 = vadd.s32 112, %v6905_v58 }
 0x187   : > { %8017 = vst [vmem:[#allocation7_spill] sm:$0xff] %v6930_v3  ;;  %v2707_v36 = vpop.f32.mrf.mxu1 }
 0x188   : > { %v6933_v1 = vadd.f32 %v2836_v59, %v2142_v51  ;;  %v2834_v33 = vadd.f32 %v2707_v36, %v6857_v50  ;;  %v6936_v13 = vpop.f32.mrf.mxu0 }
 0x189   : > { %v5433_v19 = vpop.f32.mrf.mxu1 }
 0x18a   : > { %v6939_v45 = vadd.f32 %v2834_v33, %v2140_v63  ;;  %v2837_v35 = vadd.f32 %v5433_v19, %v6859_v29  ;;  %v6942_v46 = vpop.f32.mrf.mxu0  ;;  %v2144_v63 = vsel %vm2048_vm7, %v6723_v2, 0.0  ;;  %v428_v2 = vadd.s32 96, %v6905_v58 }
 0x18b   : > { %v2710_v3 = vpop.f32.mrf.mxu1 }
 0x18c   : > { %v6946_v52 = vadd.f32 %v2837_v35, %v6707_v56  ;;  %v2835_v50 = vadd.f32 %v2710_v3, %v6861_v15  ;;  %v6949_v59 = vpop.f32.mrf.mxu0  ;;  %v522_v56 = vand.u32 15, %v426_v17  ;;  %v508_v35 = vand.u32 15, %v424_v26 }
 0x18d   : > { %v5436_v10 = vpop.f32.mrf.mxu1 }
 0x18e   : > { %v6953_v51 = vadd.f32 %v2835_v50, %v6712_v32  ;;  %v2840_v29 = vadd.f32 %v5436_v10, %v6863_v4  ;;  %v6956_v19 = vpop.f32.mrf.mxu0  ;;  %vm2054_vm8 = vcmp.gt.s32.totalorder %v522_v56, 0  ;;  %vm6978_vm9 = vcmp.gt.s32.totalorder %v508_v35, 0 }
 0x18f   : > { %v2723_v36 = vpop.f32.mrf.mxu1  ;;  %v2148_v35 = vsel %vm6978_vm9, %v6747_v48, 0.0  ;;  %v440_v48 = vadd.s32 192, %v6905_v58 }
 0x190   : > { %v6959_v33 = vadd.f32 %v2840_v29, %v2146_v25  ;;  %v2838_v15 = vadd.f32 %v2723_v36, %v6865_v40  ;;  %v6962_v3 = vpop.f32.mrf.mxu0 }
 0x191   : > { %v5437_v12 = vpop.f32.mrf.mxu1 }
 0x192   : > { %v6965_v32 = vadd.f32 %v2838_v15, %v2144_v63  ;;  %v2841_v4 = vadd.f32 %v5437_v12, %v6867_v55  ;;  %v6968_v50 = vpop.f32.mrf.mxu0 }
 0x193   : > { %8018 = vst [vmem:[#allocation6_spill] sm:$0xff] %v6968_v50  ;;  %v2726_v10 = vpop.f32.mrf.mxu1 }
 0x194   : > { %v6972_v17 = vadd.f32 %v2841_v4, %v6729_v37  ;;  %v2839_v40 = vadd.f32 %v2726_v10, %v6869_v18  ;;  %v6975_v29 = vpop.f32.mrf.mxu0  ;;  %v2150_v37 = vsel %vm2054_vm8, %v6743_v38, 0.0  ;;  %v550_v18 = vand.u32 15, %v430_v49 }
 0x195   : > { %8019 = vst [vmem:[#allocation9_spill] sm:$0xff] %v6975_v29  ;;  %v5440_v26 = vpop.f32.mrf.mxu1  ;;  %v434_v10 = vadd.s32 144, %v6905_v58  ;;  %v438_v38 = vadd.s32 176, %v6905_v58  ;;  %v436_v49 = vadd.s32 160, %v6905_v58 }
 0x196   : > { %v6983_v55 = vadd.f32 %v2839_v40, %v6735_v6  ;;  %v2844_v36 = vadd.f32 %v5440_v26, %v6871_v39  ;;  %v6986_v56 = vpop.f32.mrf.mxu0  ;;  %v536_v6 = vand.u32 15, %v428_v2  ;;  %v432_v39 = vadd.s32 128, %v6905_v58 }
 0x197   : > { %8023 = vst [vmem:[#allocation17_spill] sm:$0xff] %v6986_v56  ;;  %v2739_v15 = vpop.f32.mrf.mxu1  ;;  %v446_v2 = vadd.s32 240, %v6905_v58  ;;  %vm7009_vm10 = vcmp.gt.s32.totalorder %v550_v18, 0  ;;  %v592_v56 = vand.u32 15, %v436_v49  ;;  %v4252_v49 = vld [vmem:[%s7069_s10 + $0x8] sm:$0xff] }
 0x198   : > { %8022 = vst [vmem:[#allocation8_spill] sm:$0xff] %v6983_v55  ;;  %v6989_v63 = vadd.f32 %v2844_v36, %v2150_v37  ;;  %v2842_v12 = vadd.f32 %v2739_v15, %v6873_v44  ;;  %v6992_v4 = vpop.f32.mrf.mxu0  ;;  %v442_v37 = vadd.s32 208, %v6905_v58  ;;  %vm7020_vm11 = vcmp.gt.s32.totalorder %v536_v6, 0 }
 0x199   : > { %8025 = vst [vmem:[#allocation19_spill] sm:$0xff] %v6992_v4  ;;  %v5441_v40 = vpop.f32.mrf.mxu1  ;;  %v444_v4 = vadd.s32 224, %v6905_v58  ;;  %vm7056_vm15 = vcmp.gt.s32.totalorder %v592_v56, 0 }
 0x19a   : > { %8024 = vst [vmem:[#allocation18_spill] sm:$0xff] %v6989_v63  ;;  %v7001_v26 = vadd.f32 %v2842_v12, %v2148_v35  ;;  %v2845_v44 = vadd.f32 %v5441_v40, %v6875_v42  ;;  %v7004_v36 = vpop.f32.mrf.mxu0  ;;  %v606_v63 = vand.u32 15, %v438_v38  ;;  %v634_v6 = vand.u32 15, %v442_v37 }
 0x19b   : > { %8027 = vst [vmem:[#allocation21_spill] sm:$0xff] %v7004_v36  ;;  %v2742_v25 = vpop.f32.mrf.mxu1  ;;  %v578_v36 = vand.u32 15, %v434_v10  ;;  %v648_v10 = vand.u32 15, %v444_v4  ;;  %v2152_v38 = vsel %vm7020_vm11, %v6768_v11, 0.0 }
 0x19c   : > { %8026 = vst [vmem:[#allocation20_spill] sm:$0xff] %v7001_v26  ;;  %v7015_v12 = vadd.f32 %v2845_v44, %v6753_v60  ;;  %v2843_v42 = vadd.f32 %v2742_v25, %v6877_v14  ;;  %v7018_v35 = vpop.f32.mrf.mxu0  ;;  %v564_v26 = vand.u32 15, %v432_v39  ;;  %v2154_v14 = vsel %vm7009_vm10, %v6764_v16, 0.0  ;;  %v4315_v16 = vld [vmem:[%s7075_s13] sm:$0xff] }
 0x19d   : > { %8031 = vst [vmem:[#allocation23_spill] sm:$0xff] %v7018_v35  ;;  %v5444_v18 = vpop.f32.mrf.mxu1  ;;  %v620_v25 = vand.u32 15, %v440_v48  ;;  %v662_v35 = vand.u32 15, %v446_v2  ;;  %vm7044_vm12 = vcmp.gt.s32.totalorder %v578_v36, 0  ;;  %vm7052_vm14 = vcmp.gt.s32.totalorder %v606_v63, 0  ;;  %v8116_v63 = vld [vmem:[#allocation25_spill] sm:$0xff] }
 0x19e   : > { %8030 = vst [vmem:[#allocation22_spill] sm:$0xff] %v7015_v12  ;;  %v7025_v55 = vadd.f32 %v2843_v42, %v6758_v5  ;;  %v2848_v60 = vadd.f32 %v5444_v18, %v6879_v22  ;;  %v7028_v44 = vpop.f32.mrf.mxu0  ;;  %vm7048_vm13 = vcmp.gt.s32.totalorder %v564_v26, 0  ;;  %vm7077_vm0 = vcmp.gt.s32.totalorder %v634_v6, 0  ;;  %v4316_v18 = vld [vmem:[%s7075_s13 + $0x8] sm:$0xff] }
 0x19f   : > { %8035 = vst [vmem:[#allocation33_spill] sm:$0xff] %v7028_v44  ;;  %v2755_v12 = vpop.f32.mrf.mxu1  ;;  %vm7081_vm1 = vcmp.gt.s32.totalorder %v620_v25, 0  ;;  %vm7085_vm2 = vcmp.gt.s32.totalorder %v662_v35, 0  ;;  %v2158_v2 = vsel %vm7044_vm12, %v6787_v28, 0.0  ;;  %vm7092_vm3 = vcmp.gt.s32.totalorder %v648_v10, 0 }
 0x1a0   : > { %8034 = vst [vmem:[#allocation10_spill] sm:$0xff] %v7025_v55  ;;  %v7036_v39 = vadd.f32 %v2848_v60, %v2154_v14  ;;  %v2846_v5 = vadd.f32 %v2755_v12, %v6881_v21  ;;  %v7039_v22 = vpop.f32.mrf.mxu0  ;;  %v2156_v40 = vsel %vm7048_vm13, %v6790_v57, 0.0  ;;  %v4253_v60 = vld [vmem:[%s7069_s10 + $0x10] sm:$0xff]  ;;  %v7229_v21 = vadd.s32 88, %v6905_v58 }
 0x1a1   : > { %8037 = vst [vmem:[#allocation35_spill] sm:$0xff] %v7039_v22  ;;  %v5445_v37 = vpop.f32.mrf.mxu1  ;;  %v4317_v14 = vld [vmem:[%s7075_s13 + $0x10] sm:$0xff]  ;;  %v4285_v6 = vmul.f32 0.25, %v4253_v60  ;;  %v4322_v22 = vld [vmem:[%s7075_s13 + $0x38] sm:$0xff] }
 0x1a2   : > { %8036 = vst [vmem:[#allocation34_spill] sm:$0xff] %v7036_v39  ;;  %v7060_v48 = vadd.f32 %v2846_v5, %v2152_v38  ;;  %v2849_v11 = vadd.f32 %v5445_v37, %v6883_v43  ;;  %v7063_v36 = vpop.f32.mrf.mxu0  ;;  %v4251_v38 = vld [vmem:[%s7069_s10] sm:$0xff]  ;;  %v4349_v57 = vsub.f32 1.0, %v4317_v14  ;;  %v4257_v37 = vld [vmem:[%s7069_s10 + $0x30] sm:$0xff]  ;;  %v7163_v39 = vadd.s32 56, %v6905_v58 }
 0x1a3   : > { %8047 = vst [vmem:[#allocation37_spill] sm:$0xff] %v7063_v36  ;;  %v2758_v26 = vpop.f32.mrf.mxu1  ;;  %v4319_v36 = vld [vmem:[%s7075_s13 + $0x20] sm:$0xff] }
 0x1a4   : > { %8046 = vst [vmem:[#allocation36_spill] sm:$0xff] %v7060_v48  ;;  %v7097_v12 = vadd.f32 %v2849_v11, %v6774_v31  ;;  %v2847_v42 = vadd.f32 %v2758_v26, %v6885_v7  ;;  %v7100_v35 = vpop.f32.mrf.mxu0  ;;  %v7114_v7 = vadd.s32 24, %v6905_v58  ;;  %v4348_v48 = vsub.f32 1.0, %v4316_v18 }
 0x1a5   : > { %8057 = vst [vmem:[#allocation39_spill] sm:$0xff] %v7100_v35  ;;  %v5448_v31 = vpop.f32.mrf.mxu1  ;;  %v4289_v35 = vmul.f32 0.25, %v4257_v37  ;;  %v4351_v37 = vsub.f32 1.0, %v4319_v36  ;;  %v4256_v36 = vld [vmem:[%s7069_s10 + $0x28] sm:$0xff] }
 0x1a6   : > { %8056 = vst [vmem:[#allocation38_spill] sm:$0xff] %v7097_v12  ;;  %v7123_v25 = vadd.f32 %v2847_v42, %v6780_v0  ;;  %v2852_v10 = vadd.f32 %v5448_v31, %v6887_v30  ;;  %v7126_v5 = vpop.f32.mrf.mxu0  ;;  %v4254_v0 = vld [vmem:[%s7069_s10 + $0x18] sm:$0xff]  ;;  %v8118_v15 = vand.u32 15, %v7114_v7 }
 0x1a7   : > { %8059 = vst [vmem:[#allocation41_spill] sm:$0xff] %v7126_v5  ;;  %v2771_v11 = vpop.f32.mrf.mxu1  ;;  %v4318_v30 = vld [vmem:[%s7075_s13 + $0x18] sm:$0xff]  ;;  %v4283_v5 = vmul.f32 0.25, %v4251_v38 }
 0x1a8   : > { %8058 = vst [vmem:[#allocation40_spill] sm:$0xff] %v7123_v25  ;;  %v7140_v26 = vadd.f32 %v2852_v10, %v2158_v2  ;;  %v2850_v42 = vadd.f32 %v2771_v11, %v6889_v23  ;;  %v7143_v31 = vpop.f32.mrf.mxu0  ;;  %v4347_v25 = vsub.f32 1.0, %v4315_v16  ;;  %v7150_v2 = vadd.s32 8, %v6905_v58  ;;  %v4321_v10 = vld [vmem:[%s7075_s13 + $0x30] sm:$0xff]  ;;  %v4255_v23 = vld [vmem:[%s7069_s10 + $0x20] sm:$0xff]  ;;  %v4258_v12 = vld [vmem:[%s7069_s10 + $0x38] sm:$0xff] }
 0x1a9   : > { %8061 = vst [vmem:[#allocation43_spill] sm:$0xff] %v7143_v31  ;;  %v5449_v28 = vpop.f32.mrf.mxu1  ;;  %v4286_v31 = vmul.f32 0.25, %v4254_v0  ;;  %v4284_v16 = vmul.f32 0.25, %v4252_v49  ;;  %v7172_v0 = vadd.s32 40, %v6905_v58  ;;  %v4287_v18 = vmul.f32 0.25, %v4255_v23 }
 0x1aa   : > { %8060 = vst [vmem:[#allocation42_spill] sm:$0xff] %v7140_v26  ;;  %v7154_v11 = vadd.f32 %v2850_v42, %v2156_v40  ;;  %v2853_v60 = vadd.f32 %v5449_v28, %v6891_v62  ;;  %v7157_v14 = vpop.f32.mrf.mxu0  ;;  %v4350_v26 = vsub.f32 1.0, %v4318_v30  ;;  %v4353_v28 = vsub.f32 1.0, %v4321_v10 }
 0x1ab   : > { %8063 = vst [vmem:[#allocation45_spill] sm:$0xff] %v7157_v14  ;;  %v2774_v38 = vpop.f32.mrf.mxu1  ;;  %v4290_v30 = vmul.f32 0.25, %v4258_v12  ;;  %v4354_v42 = vsub.f32 1.0, %v4322_v22  ;;  %v8066_v14 = vld [vmem:[#allocation27_spill] sm:$0xff]  ;;  %v7180_v10 = vmul.f32 %v4349_v57, %v4285_v6  ;;  %v7186_v23 = vmul.f32 %v4347_v25, %v4283_v5  ;;  %v4320_v12 = vld [vmem:[%s7075_s13 + $0x28] sm:$0xff]  ;;  %v4261_v5 = vld [vmem:[%s7069_s10 + $0x50] sm:$0xff] }
 0x1ac   : > { %8062 = vst [vmem:[#allocation44_spill] sm:$0xff] %v7154_v11  ;;  %v7166_v44 = vadd.f32 %v2853_v60, %v6796_v9  ;;  %v2851_v62 = vadd.f32 %v2774_v38, %v6893_v24  ;;  %v7169_v40 = vpop.f32.mrf.mxu0  ;;  %v8068_v9 = vld [vmem:[#allocation32_spill] sm:$0xff]  ;;  %v7188_v22 = vmul.f32 %v4350_v26, %v4286_v31  ;;  %v4325_v26 = vld [vmem:[%s7075_s13 + $0x50] sm:$0xff]  ;;  %v7206_v38 = vmul.f32 %v4353_v28, %v4289_v35  ;;  %v8078_v25 = vld [vmem:[#allocation14_spill] sm:$0xff] }
 0x1ad   : > { %8065 = vst [vmem:[#allocation47_spill] sm:$0xff] %v7169_v40  ;;  %v5452_v49 = vpop.f32.mrf.mxu1  ;;  %v8072_v6 = vld [vmem:[#allocation12_spill] sm:$0xff]  ;;  %v7208_v4 = vmul.f32 %v4351_v37, %v4287_v18  ;;  %v4288_v35 = vmul.f32 0.25, %v4256_v36  ;;  %v4352_v28 = vsub.f32 1.0, %v4320_v12  ;;  %v4326_v18 = vld [vmem:[%s7075_s13 + $0x58] sm:$0xff]  ;;  %vm7358_vm4 = vcmp.lt.s32.totalorder %v8118_v15, 15 }
 0x1ae   : > { %8064 = vst [vmem:[#allocation46_spill] sm:$0xff] %v7166_v44  ;;  %v7175_v11 = vadd.f32 %v2851_v62, %v8066_v14  ;;  %v2856_v60 = vadd.f32 %v5452_v49, %v8068_v9  ;;  %v7178_v24 = vpop.f32.mrf.mxu0  ;;  %v7184_v44 = vstv %s7136_s14  ;;  %v8070_v14 = vsel %vm7052_vm14, %v6808_v20, 0.0  ;;  %v4260_v37 = vld [vmem:[%s7069_s10 + $0x48] sm:$0xff] }
 0x1af   : > { %8069 = vst [vmem:[#allocation32_spill] sm:$0xff] %v7178_v24  ;;  %v2787_v40 = vpop.f32.mrf.mxu1  ;;  %v7201_v9 = vmul.f32 %v4348_v48, %v4284_v16  ;;  %8074 = vst [vmem:[#allocation49_spill] sm:$0xff] %v7208_v4  ;;  %v7210_v20 = vmul.f32 %v4354_v42, %v4290_v30  ;;  %v4262_v48 = vld [vmem:[%s7069_s10 + $0x58] sm:$0xff]  ;;  %v8076_v16 = vsel %vm7056_vm15, %v6812_v27, 0.0  ;;  %v4324_v30 = vld [vmem:[%s7075_s13 + $0x48] sm:$0xff]  ;;  %v4357_v24 = vsub.f32 1.0, %v4325_v26 }
 0x1b0   : > { %8067 = vst [vmem:[#allocation27_spill] sm:$0xff] %v7175_v11  ;;  %v7196_v57 = vadd.f32 %v2856_v60, %v8070_v14  ;;  %v2854_v62 = vadd.f32 %v2787_v40, %v8072_v6  ;;  %v7199_v49 = vpop.f32.mrf.mxu0  ;;  %v4259_v60 = vld [vmem:[%s7069_s10 + $0x40] sm:$0xff]  ;;  %v4293_v40 = vmul.f32 0.25, %v4261_v5  ;;  %v7232_v27 = vadd.s32 72, %v6905_v58  ;;  %v4329_v11 = vld [vmem:[%s7075_s13 + $0x70] sm:$0xff] }
 0x1b1   : > { %8073 = vst [vmem:[#allocation12_spill] sm:$0xff] %v7199_v49  ;;  %v5453_v31 = vpop.f32.mrf.mxu1  ;;  %8075 = vst [vmem:[#allocation50_spill] sm:$0xff] %v7210_v20  ;;  %v4323_v14 = vld [vmem:[%s7075_s13 + $0x40] sm:$0xff]  ;;  %v4291_v12 = vmul.f32 0.25, %v4259_v60  ;;  %v4294_v26 = vmul.f32 0.25, %v4262_v48  ;;  %v4358_v55 = vsub.f32 1.0, %v4326_v18 }
 0x1b2   : > { %8071 = vst [vmem:[#allocation48_spill] sm:$0xff] %v7196_v57  ;;  %v7220_v6 = vadd.f32 %v2854_v62, %v8076_v16  ;;  %v2857_v49 = vadd.f32 %v5453_v31, %v8078_v25  ;;  %v7223_v57 = vpop.f32.mrf.mxu0  ;;  %v8080_v62 = vld [vmem:[#allocation26_spill] sm:$0xff]  ;;  %v8082_v31 = vld [vmem:[#allocation15_spill] sm:$0xff]  ;;  %v4292_v20 = vmul.f32 0.25, %v4260_v37  ;;  %v4356_v29 = vsub.f32 1.0, %v4324_v30 }
 0x1b3   : > { %8079 = vst [vmem:[#allocation14_spill] sm:$0xff] %v7223_v57  ;;  %v2790_v42 = vpop.f32.mrf.mxu1  ;;  %v4355_v57 = vsub.f32 1.0, %v4323_v14  ;;  %v8084_v4 = vld [vmem:[#allocation11_spill] sm:$0xff]  ;;  %v7252_v14 = vadd.s32 120, %v6905_v58  ;;  %v7254_v48 = vmul.f32 %v4357_v24, %v4293_v40  ;;  %v4361_v37 = vsub.f32 1.0, %v4329_v11  ;;  %v4266_v40 = vld [vmem:[%s7069_s10 + $0x78] sm:$0xff] }
 0x1b4   : > { %8077 = vst [vmem:[#allocation51_spill] sm:$0xff] %v7220_v6  ;;  %v7235_v25 = vadd.f32 %v2857_v49, %v8080_v62  ;;  %v2855_v36 = vadd.f32 %v2790_v42, %v8082_v31  ;;  %v7238_v16 = vpop.f32.mrf.mxu0  ;;  %v4265_v6 = vld [vmem:[%s7069_s10 + $0x70] sm:$0xff]  ;;  %v8086_v49 = vld [vmem:[#allocation16_spill] sm:$0xff]  ;;  %v7248_v42 = vmul.f32 %v4352_v28, %v4288_v35  ;;  %v4263_v60 = vld [vmem:[%s7069_s10 + $0x60] sm:$0xff]  ;;  %v7260_v30 = vadd.s32 104, %v6905_v58 }
 0x1b5   : > { %8083 = vst [vmem:[#allocation15_spill] sm:$0xff] %v7238_v16  ;;  %v5456_v5 = vpop.f32.mrf.mxu1  ;;  %8089 = vst [vmem:[#allocation53_spill] sm:$0xff] %v7252_v14  ;;  %v4297_v18 = vmul.f32 0.25, %v4265_v6  ;;  %v8092_v35 = vsel %vm7077_vm0, %v6828_v47, 0.0  ;;  %v4330_v6 = vld [vmem:[%s7075_s13 + $0x78] sm:$0xff]  ;;  %v7277_v56 = vmul.f32 %v4358_v55, %v4294_v26  ;;  %v7279_v47 = vmul.f32 %v4356_v29, %v4292_v20  ;;  %v8101_v24 = vld [vmem:[#allocation24_spill] sm:$0xff] }
 0x1b6   : > { %8081 = vst [vmem:[#allocation26_spill] sm:$0xff] %v7235_v25  ;;  %v7243_v50 = vadd.f32 %v2855_v36, %v8084_v4  ;;  %v2860_v62 = vadd.f32 %v5456_v5, %v8086_v49  ;;  %v7246_v25 = vpop.f32.mrf.mxu0  ;;  %8088 = vst [vmem:[#allocation52_spill] sm:$0xff] %v7248_v42  ;;  %v7257_v4 = vld [vmem:[%s7075_s13 + $0x60] sm:$0xff]  ;;  %v8094_v36 = vld [vmem:[#allocation4_spill] sm:$0xff]  ;;  %v4298_v43 = vmul.f32 0.25, %v4266_v40  ;;  %v8110_v42 = vsel %vm7085_vm2, %v6844_v54, 0.0 }
 0x1b7   : > { %8087 = vst [vmem:[#allocation16_spill] sm:$0xff] %v7246_v25  ;;  %v2803_v31 = vpop.f32.mrf.mxu1  ;;  %8090 = vst [vmem:[#allocation54_spill] sm:$0xff] %v7254_v48  ;;  %v4359_v55 = vsub.f32 1.0, %v7257_v4  ;;  %v4269_v20 = vld [vmem:[%s7069_s10 + $0x90] sm:$0xff]  ;;  %v4332_v40 = vld [vmem:[%s7075_s13 + $0x88] sm:$0xff]  ;;  %v7341_v54 = vadd.s32 184, %v6905_v58 }
 0x1b8   : > { %8085 = vst [vmem:[#allocation11_spill] sm:$0xff] %v7243_v50  ;;  %8091 = vst [vmem:[#allocation55_spill] sm:$0xff] %v7260_v30  ;;  %v7266_v28 = vadd.f32 %v2860_v62, %v8092_v35  ;;  %v2858_v5 = vadd.f32 %v2803_v31, %v8094_v36  ;;  %v7269_v49 = vpop.f32.mrf.mxu0  ;;  %v7275_v50 = vmul.f32 %v4355_v57, %v4291_v12  ;;  %v4295_v62 = vmul.f32 0.25, %v4263_v60  ;;  %v4264_v31 = vld [vmem:[%s7069_s10 + $0x68] sm:$0xff]  ;;  %v4333_v12 = vld [vmem:[%s7075_s13 + $0x90] sm:$0xff] }
 0x1b9   : > { %8095 = vst [vmem:[#allocation4_spill] sm:$0xff] %v7269_v49  ;;  %v5457_v25 = vpop.f32.mrf.mxu1  ;;  %8097 = vst [vmem:[#allocation58_spill] sm:$0xff] %v7277_v56  ;;  %v4328_v35 = vld [vmem:[%s7075_s13 + $0x68] sm:$0xff]  ;;  %v8099_v36 = vsel %vm7081_vm1, %v6831_v53, 0.0  ;;  %v7296_v60 = vmul.f32 %v4361_v37, %v4297_v18  ;;  %v4362_v53 = vsub.f32 1.0, %v4330_v6  ;;  %v8104_v4 = vld [vmem:[#allocation29_spill] sm:$0xff] }
 0x1ba   : > { %8093 = vst [vmem:[#allocation56_spill] sm:$0xff] %v7266_v28  ;;  %8096 = vst [vmem:[#allocation57_spill] sm:$0xff] %v7275_v50  ;;  %v7287_v11 = vadd.f32 %v2858_v5, %v8099_v36  ;;  %v2861_v49 = vadd.f32 %v5457_v25, %v8101_v24  ;;  %v7290_v57 = vpop.f32.mrf.mxu0  ;;  %v4267_v36 = vld [vmem:[%s7069_s10 + $0x80] sm:$0xff]  ;;  %v4270_v24 = vld [vmem:[%s7069_s10 + $0x98] sm:$0xff]  ;;  %v4296_v28 = vmul.f32 0.25, %v4264_v31  ;;  %v4360_v16 = vsub.f32 1.0, %v4328_v35 }
 0x1bb   : > { %8098 = vst [vmem:[#allocation59_spill] sm:$0xff] %v7279_v47  ;;  %8102 = vst [vmem:[#allocation24_spill] sm:$0xff] %v7290_v57  ;;  %v2806_v26 = vpop.f32.mrf.mxu1  ;;  %v4331_v25 = vld [vmem:[%s7075_s13 + $0x80] sm:$0xff]  ;;  %v4334_v18 = vld [vmem:[%s7075_s13 + $0x98] sm:$0xff]  ;;  %v4365_v5 = vsub.f32 1.0, %v4333_v12  ;;  %v7312_v47 = vadd.s32 152, %v6905_v58 }
 0x1bc   : > { %8100 = vst [vmem:[#allocation60_spill] sm:$0xff] %v7287_v11  ;;  %8103 = vst [vmem:[#allocation61_spill] sm:$0xff] %v7296_v60  ;;  %v7303_v57 = vadd.f32 %v2861_v49, %v8104_v4  ;;  %v2859_v29 = vadd.f32 %v2806_v26, %v6912_v61  ;;  %v7306_v11 = vpop.f32.mrf.mxu0  ;;  %v4268_v37 = vld [vmem:[%s7069_s10 + $0x88] sm:$0xff]  ;;  %v4301_v60 = vmul.f32 0.25, %v4269_v20  ;;  %v7315_v56 = vadd.s32 136, %v6905_v58  ;;  %v4273_v49 = vld [vmem:[%s7069_s10 + $0xb0] sm:$0xff] }
 0x1bd   : > { %8106 = vst [vmem:[#allocation62_spill] sm:$0xff] %v7306_v11  ;;  %v5460_v6 = vpop.f32.mrf.mxu1  ;;  %v4337_v4 = vld [vmem:[%s7075_s13 + $0xb0] sm:$0xff]  ;;  %v4299_v26 = vmul.f32 0.25, %v4267_v36  ;;  %v4363_v11 = vsub.f32 1.0, %v4331_v25  ;;  %v4302_v20 = vmul.f32 0.25, %v4270_v24  ;;  %v4366_v12 = vsub.f32 1.0, %v4334_v18 }
 0x1be   : > { %8105 = vst [vmem:[#allocation29_spill] sm:$0xff] %v7303_v57  ;;  %v8107_v57 = vld [vmem:[#allocation28_spill] sm:$0xff]  ;;  %v2864_v31 = vadd.f32 %v5460_v6, %v6914_v8  ;;  %v7323_v35 = vpop.f32.mrf.mxu0  ;;  %v4300_v48 = vmul.f32 0.25, %v4268_v37  ;;  %v4364_v30 = vsub.f32 1.0, %v4332_v40  ;;  %v4369_v36 = vsub.f32 1.0, %v4337_v4  ;;  %v4338_v4 = vld [vmem:[%s7075_s13 + $0xb8] sm:$0xff] }
 0x1bf   : > { %v7320_v61 = vadd.f32 %v2859_v29, %v8107_v57  ;;  %8109 = vst [vmem:[#allocation63_spill] sm:$0xff] %v7323_v35  ;;  %v2819_v50 = vpop.f32.mrf.mxu1  ;;  %v4305_v29 = vmul.f32 0.25, %v4273_v49  ;;  %v7334_v24 = vmul.f32 %v4359_v55, %v4295_v62  ;;  %v7336_v18 = vmul.f32 %v4362_v53, %v4298_v43  ;;  %v4274_v43 = vld [vmem:[%s7069_s10 + $0xb8] sm:$0xff] }
 0x1c0   : > { %v7329_v14 = vadd.f32 %v2864_v31, %v8110_v42  ;;  %v2862_v57 = vadd.f32 %v2819_v50, %v6916_v41  ;;  %v7332_v8 = vpop.f32.mrf.mxu0  ;;  %v7338_v37 = vmul.f32 %v4360_v16, %v4296_v28  ;;  %v8114_v41 = vsel %vm7092_vm3, %v6847_v34, 0.0  ;;  %v4271_v16 = vld [vmem:[%s7069_s10 + $0xa0] sm:$0xff]  ;;  %v4272_v31 = vld [vmem:[%s7069_s10 + $0xa8] sm:$0xff] }
 0x1c1   : > { %8108 = vst [vmem:[#allocation28_spill] sm:$0xff] %v7320_v61  ;;  %8112 = vst [vmem:[#allocation65_spill] sm:$0xff] %v7332_v8  ;;  %v5461_v25 = vpop.f32.mrf.mxu1  ;;  %v7350_v62 = vmul.f32 %v4365_v5, %v4301_v60  ;;  %v4335_v28 = vld [vmem:[%s7075_s13 + $0xa0] sm:$0xff]  ;;  %v7362_v6 = vmul.f32 %v4363_v11, %v4299_v26  ;;  %v7364_v49 = vmul.f32 %v4366_v12, %v4302_v20  ;;  %v7378_v11 = vadd.s32 168, %v6905_v58  ;;  %v4336_v26 = vld [vmem:[%s7075_s13 + $0xa8] sm:$0xff] }
 0x1c2   : > { %8111 = vst [vmem:[#allocation64_spill] sm:$0xff] %v7329_v14  ;;  %8113 = vst [vmem:[#allocation66_spill] sm:$0xff] %v7338_v37  ;;  %v7347_v50 = vadd.f32 %v2862_v57, %v8114_v41  ;;  %v2865_v42 = vadd.f32 %v5461_v25, %v8116_v63  ;;  %v5534_v40 = vpop.f32.mrf.mxu0  ;;  %v7367_v5 = vmul.f32 %v4364_v30, %v4300_v48  ;;  %v8124_v57 = vld [vmem:[#allocation31_spill] sm:$0xff]  ;;  %v4277_v20 = vld [vmem:[%s7069_s10 + $0xd0] sm:$0xff]  ;;  %v8129_v12 = vand.u32 15, %v7150_v2 }
 0x1c3   : > { %8117 = vst [vmem:[#allocation25_spill] sm:$0xff] %v7350_v62  ;;  %v2822_v53 = vpop.f32.mrf.mxu1  ;;  %8121 = vst [vmem:[#allocation68_spill] sm:$0xff] %v7362_v6  ;;  %v8126_v41 = vld [vmem:[#allocation3_spill] sm:$0xff]  ;;  %v7375_v15 = vmul.f32 %v4369_v36, %v4305_v29  ;;  %v4341_v48 = vld [vmem:[%s7075_s13 + $0xd0] sm:$0xff]  ;;  %v4306_v36 = vmul.f32 0.25, %v4274_v43  ;;  %v4370_v14 = vsub.f32 1.0, %v4338_v4 }
 0x1c4   : > { %8115 = vst [vmem:[#allocation67_spill] sm:$0xff] %v7347_v50  ;;  %8122 = vst [vmem:[#allocation69_spill] sm:$0xff] %v7364_v49  ;;  %v7372_v25 = vadd.f32 %v2865_v42, %v8124_v57  ;;  %v2863_v7 = vadd.f32 %v2822_v53, %v8126_v41  ;;  %v3892_v63 = vpop.f32.mrf.mxu0  ;;  %vm7385_vm5 = vcmp.lt.s32.totalorder %v8129_v12, 15  ;;  %v4303_v53 = vmul.f32 0.25, %v4271_v16  ;;  %v4275_v41 = vld [vmem:[%s7069_s10 + $0xc0] sm:$0xff]  ;;  %v8132_v60 = vld [vmem:[#allocation30_spill] sm:$0xff] }
 0x1c5   : > { %8123 = vst [vmem:[#allocation70_spill] sm:$0xff] %v7367_v5  ;;  %8127 = vst [vmem:[#allocation3_spill] sm:$0xff] %v7375_v15  ;;  %v5500_v30 = vpop.f32.mrf.mxu1  ;;  %v4367_v57 = vsub.f32 1.0, %v4335_v28  ;;  %v4304_v35 = vmul.f32 0.25, %v4272_v31  ;;  %v4339_v61 = vld [vmem:[%s7075_s13 + $0xc0] sm:$0xff]  ;;  %v4278_v2 = vld [vmem:[%s7069_s10 + $0xd8] sm:$0xff] }
 0x1c6   : > { %8125 = vst [vmem:[#allocation31_spill] sm:$0xff] %v7372_v25  ;;  %8128 = vst [vmem:[#allocation71_spill] sm:$0xff] %v7378_v11  ;;  %v7392_v55 = vadd.f32 %v2863_v7, %v8132_v60  ;;  %v8134_v25 = vld [vmem:[#allocation5_spill] sm:$0xff]  ;;  %v5535_v50 = vpop.f32.mrf.mxu0  ;;  %v4342_v12 = vld [vmem:[%s7075_s13 + $0xd8] sm:$0xff]  ;;  %v4368_v5 = vsub.f32 1.0, %v4336_v26  ;;  %v4309_v49 = vmul.f32 0.25, %v4277_v20 }
 0x1c7   : > { %v3439_v8 = vadd.f32 %v5500_v30, %v8134_v25  ;;  %v3430_v15 = vpop.f32.mrf.mxu1  ;;  %v4373_v16 = vsub.f32 1.0, %v4341_v48  ;;  %v7399_v28 = vadd.s32 216, %v6905_v58  ;;  %v8135_v29 = vld [vmem:[#allocation13_spill] sm:$0xff]  ;;  %v7404_v4 = vadd.s32 200, %v6905_v58  ;;  %v7409_v31 = vld [vmem:[%s7865_s3] ss:$0 sm:$0xff] }
 0x1c8   : > { %8133 = vst [vmem:[#allocation30_spill] sm:$0xff] %v7392_v55  ;;  %v3431_v60 = vadd.f32 %v3430_v15, %v8135_v29  ;;  %v3895_v7 = vpop.f32.mrf.mxu0  ;;  %v4307_v20 = vmul.f32 0.25, %v4275_v41  ;;  %v4371_v48 = vsub.f32 1.0, %v4339_v61  ;;  %v4310_v30 = vmul.f32 0.25, %v4278_v2  ;;  %v8136_v15 = vld [vmem:[#allocation7_spill] sm:$0xff]  ;;  %v4276_v62 = vld [vmem:[%s7069_s10 + $0xc8] sm:$0xff] }
 0x1c9   : > { %v4021_v43 = vadd.f32 %v5534_v40, %v3439_v8  ;;  %v5501_v26 = vpop.f32.mrf.mxu1  ;;  %v4374_v55 = vsub.f32 1.0, %v4342_v12  ;;  %v7413_v6 = vmul.f32 %v4367_v57, %v4303_v53  ;;  %v8137_v37 = vand.u32 15, %v7163_v39  ;;  %v8150_v41 = vld [vmem:[#allocation49_spill] sm:$0xff] }
 0x1ca   : > { %v4019_v40 = vadd.f32 %v3892_v63, %v3431_v60  ;;  %v3442_v29 = vadd.f32 %v5501_v26, %v8136_v15  ;;  %v5538_v25 = vpop.f32.mrf.mxu0  ;;  %v7422_v61 = vmul.f32 %v4370_v14, %v4306_v36  ;;  %v7426_v63 = vmul.f32 %v4373_v16, %v4309_v49  ;;  %v4281_v60 = vld [vmem:[%s7069_s10 + $0xf0] sm:$0xff] }
 0x1cb   : > { %v4181_v8 = vadd.f32 %v4021_v43, %v6933_v1  ;;  %v3433_v11 = vpop.f32.mrf.mxu1  ;;  %vm7418_vm6 = vcmp.lt.s32.totalorder %v8137_v37, 15  ;;  %v7424_v1 = vmul.f32 %v4368_v5, %v4304_v35  ;;  %v641_v2 = vand.u32 15, %v7399_v28  ;;  %v4340_v37 = vld [vmem:[%s7075_s13 + $0xc8] sm:$0xff] }
 0x1cc   : > { %v4179_v53 = vadd.f32 %v4019_v40, %v6939_v45  ;;  %v4022_v57 = vadd.f32 %v5535_v50, %v3442_v29  ;;  %v3434_v43 = vadd.f32 %v3433_v11, %v6936_v13  ;;  %v3908_v39 = vpop.f32.mrf.mxu0  ;;  %v8140_v35 = vand.u32 15, %v7172_v0  ;;  %v8215_v28 = vld [vmem:[#allocation70_spill] sm:$0xff] }
 0x1cd   : > { %v4220_v12 = vadd.f32 %v7409_v31, %v4181_v8  ;;  %v5504_v14 = vpop.f32.mrf.mxu1  ;;  %v7446_v45 = vmul.f32 %v4371_v48, %v4307_v20  ;;  %v7448_v13 = vmul.f32 %v4374_v55, %v4310_v30  ;;  %v627_v50 = vand.u32 15, %v7404_v4  ;;  %v7466_v30 = vld [vmem:[%s7075_s13 + $0xf0] sm:$0xff]  ;;  %v8218_v4 = vld [vmem:[#allocation3_spill] sm:$0xff] }
 0x1ce   : > { %vm7442_vm7 = vcmp.lt.s32.totalorder %v8140_v35, 15  ;;  %v4308_v5 = vmul.f32 0.25, %v4276_v62  ;;  %v4218_v36 = vadd.f32 %v7409_v31, %v4179_v53  ;;  %v4150_v0 = vsel %vm7358_vm4, %v4022_v57, 0.0  ;;  %v5539_v26 = vpop.f32.mrf.mxu0 }
 0x1cf   : > { %v4413_v11 = vadd.f32 %v7180_v10, %v4220_v12  ;;  %v4020_v16 = vadd.f32 %v3895_v7, %v3434_v43  ;;  %v4182_v55 = vadd.f32 %v4150_v0, %v6946_v52  ;;  %v3455_v20 = vadd.f32 %v5504_v14, %v6942_v46  ;;  %v3446_v48 = vpop.f32.mrf.mxu1 }
 0x1d0   : > { %v4372_v62 = vsub.f32 1.0, %v4340_v37  ;;  %v7463_v10 = vmul.f32 0.25, %v4281_v60  ;;  %v4411_v34 = vadd.f32 %v7186_v23, %v4218_v36  ;;  %v3447_v52 = vadd.f32 %v3446_v48, %v6949_v59  ;;  %v3911_v8 = vpop.f32.mrf.mxu0 }
 0x1d1   : > { %vm4446_vm8 = vcmp.gt.f32.partialorder %v4413_v11, %v7184_v44  ;;  %4542 = vst [vmem:[%s7438_s19 + $0x10] sm:$0xff] %v4413_v11  ;;  %v4148_v7 = vsel %vm7385_vm5, %v4020_v16, 0.0  ;;  %v5732_v46 = vmov 0.0   ;;  %v4221_v15 = vadd.f32 %v7409_v31, %v4182_v55  ;;  %v5505_v53 = vpop.f32.mrf.mxu1 }
 0x1d2   : > { %v5069_v40 = vsel %vm4446_vm8, 1.0, %v5732_v46  ;;  %v4180_v29 = vadd.f32 %v4148_v7, %v6953_v51  ;;  %v4025_v12 = vadd.f32 %v5538_v25, %v3455_v20  ;;  %vm4444_vm9 = vcmp.gt.f32.partialorder %v4411_v34, %v7184_v44  ;;  %4540 = vst [vmem:[%s7438_s19] sm:$0xff] %v4411_v34  ;;  %v5542_v59 = vpop.f32.mrf.mxu0 }
 0x1d3   : > { %4574 = vst [vmem:[%s7459_s22 + $0x10] sm:$0xff] %v5069_v40  ;;  %v4023_v23 = vadd.f32 %v3908_v39, %v3447_v52  ;;  %v3458_v42 = vadd.f32 %v5505_v53, %v6956_v19  ;;  %v4377_v57 = vsub.f32 1.0, %v7466_v30  ;;  %v5067_v43 = vsel %vm4444_vm9, 1.0, %v5732_v46  ;;  %v3449_v60 = vpop.f32.mrf.mxu1  ;;  %v8168_v30 = vld [vmem:[#allocation22_spill] sm:$0xff] }
 0x1d4   : > { %v4414_v37 = vadd.f32 %v7188_v22, %v4221_v15  ;;  %v4219_v51 = vadd.f32 %v7409_v31, %v4180_v29  ;;  %v4185_v25 = vadd.f32 %v4025_v12, %v6959_v33  ;;  %v8143_v14 = vand.u32 15, %v7229_v21  ;;  %4572 = vst [vmem:[%s7459_s22] sm:$0xff] %v5067_v43  ;;  %v3924_v36 = vpop.f32.mrf.mxu0  ;;  %v8151_v15 = vld [vmem:[#allocation9_spill] sm:$0xff] }
 0x1d5   : > { %v4183_v19 = vadd.f32 %v4023_v23, %v6965_v32  ;;  %v4026_v39 = vadd.f32 %v5539_v26, %v3458_v42  ;;  %v3450_v11 = vadd.f32 %v3449_v60, %v6962_v3  ;;  %v7496_v22 = vadd.s32 248, %v6905_v58  ;;  %v5508_v0 = vpop.f32.mrf.mxu1 }
 0x1d6   : > { %vm7488_vm10 = vcmp.lt.s32.totalorder %v8143_v14, 15  ;;  %vm4447_vm11 = vcmp.gt.f32.partialorder %v4414_v37, %v7184_v44  ;;  %4543 = vst [vmem:[%s7438_s19 + $0x18] sm:$0xff] %v4414_v37  ;;  %v4412_v33 = vadd.f32 %v7201_v9, %v4219_v51  ;;  %v4224_v21 = vadd.f32 %v7409_v31, %v4185_v25  ;;  %v5543_v48 = vpop.f32.mrf.mxu0  ;;  %v8153_v37 = vld [vmem:[#allocation17_spill] sm:$0xff]  ;;  %v8154_v14 = vld [vmem:[#allocation50_spill] sm:$0xff] }
 0x1d7   : > { %v8146_v16 = vand.u32 15, %v7232_v27  ;;  %v7508_v3 = vmul.f32 %v4372_v62, %v4308_v5  ;;  %v5070_v26 = vsel %vm4447_vm11, 1.0, %v5732_v46  ;;  %v4222_v55 = vadd.f32 %v7409_v31, %v4183_v19  ;;  %v8149_v62 = vld [vmem:[#allocation6_spill] sm:$0xff]  ;;  %v3462_v7 = vpop.f32.mrf.mxu1 }
 0x1d8   : > { %v4154_v20 = vsel %vm7418_vm6, %v4026_v39, 0.0  ;;  %v4024_v9 = vadd.f32 %v3911_v8, %v3450_v11  ;;  %4575 = vst [vmem:[%s7459_s22 + $0x18] sm:$0xff] %v5070_v26  ;;  %vm4445_vm13 = vcmp.gt.f32.partialorder %v4412_v33, %v7184_v44  ;;  %4541 = vst [vmem:[%s7438_s19 + $0x8] sm:$0xff] %v4412_v33  ;;  %v4417_v27 = vadd.f32 %v7206_v38, %v4224_v21  ;;  %v3927_v12 = vpop.f32.mrf.mxu0  ;;  %v8152_v38 = vld [vmem:[#allocation8_spill] sm:$0xff]  ;;  %v8155_v11 = vld [vmem:[#allocation18_spill] sm:$0xff] }
 0x1d9   : > { %vm7504_vm12 = vcmp.lt.s32.totalorder %v8146_v16, 15  ;;  %v4186_v5 = vadd.f32 %v4154_v20, %v6972_v17  ;;  %v3471_v34 = vadd.f32 %v5508_v0, %v8149_v62  ;;  %v5068_v52 = vsel %vm4445_vm13, 1.0, %v5732_v46  ;;  %v5509_v42 = vpop.f32.mrf.mxu1  ;;  %v8156_v21 = vld [vmem:[#allocation53_spill] sm:$0xff]  ;;  %v8161_v20 = vld [vmem:[#allocation19_spill] sm:$0xff]  ;;  %v8162_v62 = vld [vmem:[#allocation52_spill] sm:$0xff] }
 0x1da   : > { %v4415_v40 = vadd.f32 %v8150_v41, %v4222_v55  ;;  %v4152_v8 = vsel %vm7442_vm7, %v4024_v9, 0.0  ;;  %v3463_v29 = vadd.f32 %v3462_v7, %v8151_v15  ;;  %4573 = vst [vmem:[%s7459_s22 + $0x8] sm:$0xff] %v5068_v52  ;;  %vm4450_vm14 = vcmp.gt.f32.partialorder %v4417_v27, %v7184_v44  ;;  %4546 = vst [vmem:[%s7438_s19 + $0x30] sm:$0xff] %v4417_v27  ;;  %v5546_v25 = vpop.f32.mrf.mxu0  ;;  %v8163_v41 = vld [vmem:[#allocation55_spill] sm:$0xff] }
 0x1db   : > { %v4225_v17 = vadd.f32 %v7409_v31, %v4186_v5  ;;  %v4184_v53 = vadd.f32 %v4152_v8, %v8152_v38  ;;  %v4029_v23 = vadd.f32 %v5542_v59, %v3471_v34  ;;  %v5073_v43 = vsel %vm4450_vm14, 1.0, %v5732_v46  ;;  %v3465_v33 = vpop.f32.mrf.mxu1 }
 0x1dc   : > { %vm4448_vm15 = vcmp.gt.f32.partialorder %v4415_v40, %v7184_v44  ;;  %4544 = vst [vmem:[%s7438_s19 + $0x20] sm:$0xff] %v4415_v40  ;;  %v4027_v49 = vadd.f32 %v3924_v36, %v3463_v29  ;;  %v3474_v51 = vadd.f32 %v5509_v42, %v8153_v37  ;;  %4578 = vst [vmem:[%s7459_s22 + $0x30] sm:$0xff] %v5073_v43  ;;  %v8157_v0 = vand.u32 15, %v8156_v21  ;;  %v8160_v36 = vld [vmem:[#allocation20_spill] sm:$0xff]  ;;  %v3940_v27 = vpop.f32.mrf.mxu0  ;;  %v4279_v21 = vld [vmem:[%s7069_s10 + $0xe0] sm:$0xff] }
 0x1dd   : > { %v5071_v60 = vsel %vm4448_vm15, 1.0, %v5732_v46  ;;  %v4418_v19 = vadd.f32 %v8154_v14, %v4225_v17  ;;  %v4223_v39 = vadd.f32 %v7409_v31, %v4184_v53  ;;  %v4189_v59 = vadd.f32 %v4029_v23, %v8155_v11  ;;  %v5512_v52 = vpop.f32.mrf.mxu1  ;;  %v8167_v53 = vld [vmem:[#allocation54_spill] sm:$0xff] }
 0x1de   : > { %vm7541_vm0 = vcmp.lt.s32.totalorder %v8157_v0, 15  ;;  %4576 = vst [vmem:[%s7459_s22 + $0x20] sm:$0xff] %v5071_v60  ;;  %v4187_v26 = vadd.f32 %v4027_v49, %v8160_v36  ;;  %v4030_v55 = vadd.f32 %v5543_v48, %v3474_v51  ;;  %v3466_v9 = vadd.f32 %v3465_v33, %v8161_v20  ;;  %v5547_v38 = vpop.f32.mrf.mxu0  ;;  %v8170_v49 = vld [vmem:[#allocation57_spill] sm:$0xff]  ;;  %v8171_v51 = vld [vmem:[#allocation23_spill] sm:$0xff] }
 0x1df   : > { %v7549_v5 = vadd.s32 232, %v6905_v58  ;;  %vm4451_vm1 = vcmp.gt.f32.partialorder %v4418_v19, %v7184_v44  ;;  %4547 = vst [vmem:[%s7438_s19 + $0x38] sm:$0xff] %v4418_v19  ;;  %v4416_v34 = vadd.f32 %v8162_v62, %v4223_v39  ;;  %v4228_v7 = vadd.f32 %v7409_v31, %v4189_v59  ;;  %v3478_v43 = vpop.f32.mrf.mxu1  ;;  %v8172_v39 = vld [vmem:[#allocation10_spill] sm:$0xff]  ;;  %v8173_v36 = vld [vmem:[#allocation33_spill] sm:$0xff]  ;;  %v7592_v20 = vld [vmem:[%s7075_s13 + $0xe0] sm:$0xff] }
 0x1e0   : > { %v8164_v40 = vand.u32 15, %v8163_v41  ;;  %v7564_v8 = vmul.f32 %v4377_v57, %v7463_v10  ;;  %v5074_v58 = vsel %vm4451_vm1, 1.0, %v5732_v46  ;;  %v4226_v15 = vadd.f32 %v7409_v31, %v4187_v26  ;;  %v8169_v57 = vld [vmem:[#allocation21_spill] sm:$0xff]  ;;  %v3943_v14 = vpop.f32.mrf.mxu0  ;;  %v8174_v62 = vld [vmem:[#allocation58_spill] sm:$0xff] }
 0x1e1   : > { %v4158_v29 = vsel %vm7488_vm10, %v4030_v55, 0.0  ;;  %v4028_v17 = vadd.f32 %v3927_v12, %v3466_v9  ;;  %4579 = vst [vmem:[%s7459_s22 + $0x38] sm:$0xff] %v5074_v58  ;;  %vm4449_vm3 = vcmp.gt.f32.partialorder %v4416_v34, %v7184_v44  ;;  %4545 = vst [vmem:[%s7438_s19 + $0x28] sm:$0xff] %v4416_v34  ;;  %v4421_v23 = vadd.f32 %v8167_v53, %v4228_v7  ;;  %v5513_v33 = vpop.f32.mrf.mxu1  ;;  %v8175_v7 = vld [vmem:[#allocation34_spill] sm:$0xff]  ;;  %v8179_v58 = vld [vmem:[#allocation36_spill] sm:$0xff] }
 0x1e2   : > { %vm7557_vm2 = vcmp.lt.s32.totalorder %v8164_v40, 15  ;;  %v4190_v10 = vadd.f32 %v4158_v29, %v8168_v30  ;;  %v3487_v42 = vadd.f32 %v5512_v52, %v8169_v57  ;;  %v5072_v35 = vsel %vm4449_vm3, 1.0, %v5732_v46  ;;  %v5550_v55 = vpop.f32.mrf.mxu0 }
 0x1e3   : > { %v4419_v37 = vadd.f32 %v8170_v49, %v4226_v15  ;;  %v4156_v12 = vsel %vm7504_vm12, %v4028_v17, 0.0  ;;  %v3479_v60 = vadd.f32 %v3478_v43, %v8171_v51  ;;  %4577 = vst [vmem:[%s7459_s22 + $0x28] sm:$0xff] %v5072_v35  ;;  %vm4454_vm4 = vcmp.gt.f32.partialorder %v4421_v23, %v7184_v44  ;;  %4550 = vst [vmem:[%s7438_s19 + $0x50] sm:$0xff] %v4421_v23  ;;  %v3481_v41 = vpop.f32.mrf.mxu1  ;;  %v8180_v17 = vld [vmem:[#allocation35_spill] sm:$0xff] }
 0x1e4   : > { %v4229_v19 = vadd.f32 %v7409_v31, %v4190_v10  ;;  %v4188_v11 = vadd.f32 %v4156_v12, %v8172_v39  ;;  %v4033_v59 = vadd.f32 %v5546_v25, %v3487_v42  ;;  %v5077_v32 = vsel %vm4454_vm4, 1.0, %v5732_v46  ;;  %v3956_v23 = vpop.f32.mrf.mxu0  ;;  %v8181_v10 = vld [vmem:[#allocation59_spill] sm:$0xff]  ;;  %v8186_v39 = vld [vmem:[#allocation38_spill] sm:$0xff] }
 0x1e5   : > { %vm4452_vm5 = vcmp.gt.f32.partialorder %v4419_v37, %v7184_v44  ;;  %4548 = vst [vmem:[%s7438_s19 + $0x40] sm:$0xff] %v4419_v37  ;;  %v4031_v0 = vadd.f32 %v3940_v27, %v3479_v60  ;;  %v3490_v26 = vadd.f32 %v5513_v33, %v8173_v36  ;;  %4582 = vst [vmem:[%s7459_s22 + $0x50] sm:$0xff] %v5077_v32  ;;  %v8176_v40 = vand.u32 15, %v7312_v47  ;;  %v5516_v42 = vpop.f32.mrf.mxu1  ;;  %v8205_v27 = vld [vmem:[#allocation68_spill] sm:$0xff] }
 0x1e6   : > { %v5075_v9 = vsel %vm4452_vm5, 1.0, %v5732_v46  ;;  %v4422_v25 = vadd.f32 %v8174_v62, %v4229_v19  ;;  %v4227_v34 = vadd.f32 %v7409_v31, %v4188_v11  ;;  %v4193_v52 = vadd.f32 %v4033_v59, %v8175_v7  ;;  %v5551_v60 = vpop.f32.mrf.mxu0  ;;  %v8187_v59 = vld [vmem:[#allocation37_spill] sm:$0xff]  ;;  %v8189_v62 = vld [vmem:[#allocation40_spill] sm:$0xff] }
 0x1e7   : > { %vm7601_vm6 = vcmp.lt.s32.totalorder %v8176_v40, 15  ;;  %4580 = vst [vmem:[%s7459_s22 + $0x40] sm:$0xff] %v5075_v9  ;;  %v4191_v15 = vadd.f32 %v4031_v0, %v8179_v58  ;;  %v4034_v29 = vadd.f32 %v5547_v38, %v3490_v26  ;;  %v3482_v53 = vadd.f32 %v3481_v41, %v8180_v17  ;;  %v8188_v0 = vld [vmem:[#allocation39_spill] sm:$0xff]  ;;  %v8191_v17 = vld [vmem:[#allocation42_spill] sm:$0xff] }
 0x1e8   : > { %v7608_v30 = vmul.f32 0.25, %v4279_v21  ;;  %vm4455_vm7 = vcmp.gt.f32.partialorder %v4422_v25, %v7184_v44  ;;  %4551 = vst [vmem:[%s7438_s19 + $0x58] sm:$0xff] %v4422_v25  ;;  %v4420_v47 = vadd.f32 %v8181_v10, %v4227_v34  ;;  %v4232_v57 = vadd.f32 %v7409_v31, %v4193_v52  ;;  %v3494_v21 = vpop.f32.mrf.mxu1  ;;  %v3959_v26 = vpop.f32.mrf.mxu0  ;;  %v8190_v52 = vld [vmem:[#allocation41_spill] sm:$0xff] }
 0x1e9   : > { %v8182_v43 = vand.u32 15, %v7315_v56  ;;  %v4375_v38 = vsub.f32 1.0, %v7592_v20  ;;  %v5078_v49 = vsel %vm4455_vm7, 1.0, %v5732_v46  ;;  %v4230_v37 = vadd.f32 %v7409_v31, %v4191_v15  ;;  %v8185_v56 = vld [vmem:[#allocation61_spill] sm:$0xff] }
 0x1ea   : > { %v4162_v12 = vsel %vm7541_vm0, %v4034_v29, 0.0  ;;  %v4032_v51 = vadd.f32 %v3943_v14, %v3482_v53  ;;  %4583 = vst [vmem:[%s7459_s22 + $0x58] sm:$0xff] %v5078_v49  ;;  %vm4453_vm9 = vcmp.gt.f32.partialorder %v4420_v47, %v7184_v44  ;;  %4549 = vst [vmem:[%s7438_s19 + $0x48] sm:$0xff] %v4420_v47  ;;  %v4425_v19 = vadd.f32 %v8185_v56, %v4232_v57  ;;  %v5517_v7 = vpop.f32.mrf.mxu1  ;;  %v5554_v40 = vpop.f32.mrf.mxu0 }
 0x1eb   : > { %vm7616_vm8 = vcmp.lt.s32.totalorder %v8182_v43, 15  ;;  %v4194_v11 = vadd.f32 %v4162_v12, %v8186_v39  ;;  %v3503_v33 = vadd.f32 %v5516_v42, %v8187_v59  ;;  %v5076_v32 = vsel %vm4453_vm9, 1.0, %v5732_v46  ;;  %v8196_v43 = vld [vmem:[#allocation43_spill] sm:$0xff]  ;;  %v8197_v12 = vld [vmem:[#allocation66_spill] sm:$0xff] }
 0x1ec   : > { %v4423_v16 = vadd.f32 %v7334_v24, %v4230_v37  ;;  %v4160_v14 = vsel %vm7557_vm2, %v4032_v51, 0.0  ;;  %v3495_v36 = vadd.f32 %v3494_v21, %v8188_v0  ;;  %4581 = vst [vmem:[%s7459_s22 + $0x48] sm:$0xff] %v5076_v32  ;;  %vm4458_vm10 = vcmp.gt.f32.partialorder %v4425_v19, %v7184_v44  ;;  %4554 = vst [vmem:[%s7438_s19 + $0x70] sm:$0xff] %v4425_v19  ;;  %v3497_v53 = vpop.f32.mrf.mxu1  ;;  %v3972_v37 = vpop.f32.mrf.mxu0  ;;  %v8198_v19 = vld [vmem:[#allocation71_spill] sm:$0xff] }
 0x1ed   : > { %v4233_v9 = vadd.f32 %v7409_v31, %v4194_v11  ;;  %v4192_v25 = vadd.f32 %v4160_v14, %v8189_v62  ;;  %v4037_v34 = vadd.f32 %v5550_v55, %v3503_v33  ;;  %v5081_v24 = vsel %vm4458_vm10, 1.0, %v5732_v46  ;;  %v8202_v14 = vld [vmem:[#allocation25_spill] sm:$0xff] }
 0x1ee   : > { %vm4456_vm11 = vcmp.gt.f32.partialorder %v4423_v16, %v7184_v44  ;;  %4552 = vst [vmem:[%s7438_s19 + $0x60] sm:$0xff] %v4423_v16  ;;  %v4035_v48 = vadd.f32 %v3956_v23, %v3495_v36  ;;  %v3506_v41 = vadd.f32 %v5517_v7, %v8190_v52  ;;  %4586 = vst [vmem:[%s7459_s22 + $0x70] sm:$0xff] %v5081_v24  ;;  %v8192_v10 = vand.u32 15, %v7341_v54  ;;  %v8195_v23 = vld [vmem:[#allocation44_spill] sm:$0xff]  ;;  %v5520_v56 = vpop.f32.mrf.mxu1  ;;  %v5555_v16 = vpop.f32.mrf.mxu0  ;;  %v8203_v36 = vld [vmem:[#allocation46_spill] sm:$0xff] }
 0x1ef   : > { %v5079_v58 = vsel %vm4456_vm11, 1.0, %v5732_v46  ;;  %v4426_v15 = vadd.f32 %v7336_v18, %v4233_v9  ;;  %v4231_v29 = vadd.f32 %v7409_v31, %v4192_v25  ;;  %v4197_v55 = vadd.f32 %v4037_v34, %v8191_v17  ;;  %v8204_v62 = vld [vmem:[#allocation45_spill] sm:$0xff] }
 0x1f0   : > { %vm7652_vm12 = vcmp.lt.s32.totalorder %v8192_v10, 15  ;;  %4584 = vst [vmem:[%s7459_s22 + $0x60] sm:$0xff] %v5079_v58  ;;  %v4195_v57 = vadd.f32 %v4035_v48, %v8195_v23  ;;  %v4038_v42 = vadd.f32 %v5551_v60, %v3506_v41  ;;  %v3498_v49 = vadd.f32 %v3497_v53, %v8196_v43  ;;  %v3510_v34 = vpop.f32.mrf.mxu1  ;;  %v8206_v48 = vld [vmem:[#allocation47_spill] sm:$0xff]  ;;  %v3975_v41 = vpop.f32.mrf.mxu0  ;;  %v8208_v10 = vld [vmem:[#allocation32_spill] sm:$0xff] }
 0x1f1   : > { %v669_v18 = vand.u32 15, %v7496_v22  ;;  %vm4459_vm13 = vcmp.gt.f32.partialorder %v4426_v15, %v7184_v44  ;;  %4555 = vst [vmem:[%s7438_s19 + $0x78] sm:$0xff] %v4426_v15  ;;  %v4424_v54 = vadd.f32 %v8197_v12, %v4231_v29  ;;  %v4236_v51 = vadd.f32 %v7409_v31, %v4197_v55  ;;  %v8207_v15 = vld [vmem:[#allocation27_spill] sm:$0xff] }
 0x1f2   : > { %v8199_v39 = vand.u32 15, %v8198_v19  ;;  %v655_v60 = vand.u32 15, %v7549_v5  ;;  %v5082_v59 = vsel %vm4459_vm13, 1.0, %v5732_v46  ;;  %v4234_v33 = vadd.f32 %v7409_v31, %v4195_v57  ;;  %v5521_v55 = vpop.f32.mrf.mxu1  ;;  %v5558_v57 = vpop.f32.mrf.mxu0 }
 0x1f3   : > { %v4166_v21 = vsel %vm7601_vm6, %v4038_v42, 0.0  ;;  %v4036_v32 = vadd.f32 %v3959_v26, %v3498_v49  ;;  %4587 = vst [vmem:[%s7459_s22 + $0x78] sm:$0xff] %v5082_v59  ;;  %vm4457_vm15 = vcmp.gt.f32.partialorder %v4424_v54, %v7184_v44  ;;  %4553 = vst [vmem:[%s7438_s19 + $0x68] sm:$0xff] %v4424_v54  ;;  %v4429_v0 = vadd.f32 %v8202_v14, %v4236_v51  ;;  %v4282_v42 = vld [vmem:[%s7069_s10 + $0xf8] sm:$0xff]  ;;  %v8209_v49 = vld [vmem:[#allocation69_spill] sm:$0xff] }
 0x1f4   : > { %vm7666_vm14 = vcmp.lt.s32.totalorder %v8199_v39, 15  ;;  %v4198_v9 = vadd.f32 %v4166_v21, %v8203_v36  ;;  %v3519_v25 = vadd.f32 %v5520_v56, %v8204_v62  ;;  %v5080_v7 = vsel %vm4457_vm15, 1.0, %v5732_v46  ;;  %v8210_v54 = vld [vmem:[#allocation48_spill] sm:$0xff]  ;;  %v3513_v56 = vpop.f32.mrf.mxu1 }
 0x1f5   : > { %v4427_v24 = vadd.f32 %v8205_v27, %v4234_v33  ;;  %v4164_v26 = vsel %vm7616_vm8, %v4036_v32, 0.0  ;;  %v3511_v52 = vadd.f32 %v3510_v34, %v8206_v48  ;;  %4585 = vst [vmem:[%s7459_s22 + $0x68] sm:$0xff] %v5080_v7  ;;  %vm4462_vm0 = vcmp.gt.f32.partialorder %v4429_v0, %v7184_v44  ;;  %4558 = vst [vmem:[%s7438_s19 + $0x90] sm:$0xff] %v4429_v0  ;;  %v8214_v33 = vld [vmem:[#allocation12_spill] sm:$0xff]  ;;  %v3988_v32 = vpop.f32.mrf.mxu0  ;;  %v8219_v34 = vld [vmem:[#allocation26_spill] sm:$0xff] }
 0x1f6   : > { %v4237_v58 = vadd.f32 %v7409_v31, %v4198_v9  ;;  %v4196_v29 = vadd.f32 %v4164_v26, %v8207_v15  ;;  %v4041_v17 = vadd.f32 %v5554_v40, %v3519_v25  ;;  %v5085_v53 = vsel %vm4462_vm0, 1.0, %v5732_v46  ;;  %v5524_v36 = vpop.f32.mrf.mxu1  ;;  %v8220_v27 = vld [vmem:[#allocation14_spill] sm:$0xff] }
 0x1f7   : > { %vm4460_vm1 = vcmp.gt.f32.partialorder %v4427_v24, %v7184_v44  ;;  %4556 = vst [vmem:[%s7438_s19 + $0x80] sm:$0xff] %v4427_v24  ;;  %v4039_v35 = vadd.f32 %v3972_v37, %v3511_v52  ;;  %v3522_v23 = vadd.f32 %v5521_v55, %v8208_v10  ;;  %4590 = vst [vmem:[%s7459_s22 + $0x90] sm:$0xff] %v5085_v53  ;;  %vm7703_vm2 = vcmp.lt.s32.totalorder %v641_v2, 15  ;;  %v8213_v37 = vld [vmem:[#allocation51_spill] sm:$0xff]  ;;  %v5559_v25 = vpop.f32.mrf.mxu0  ;;  %v7748_v10 = vld [vmem:[%s7075_s13 + $0xf8] sm:$0xff] }
 0x1f8   : > { %v5083_v43 = vsel %vm4460_vm1, 1.0, %v5732_v46  ;;  %v4430_v12 = vadd.f32 %v8209_v49, %v4237_v58  ;;  %v4235_v40 = vadd.f32 %v7409_v31, %v4196_v29  ;;  %v4201_v51 = vadd.f32 %v4041_v17, %v8210_v54  ;;  %v3526_v26 = vpop.f32.mrf.mxu1  ;;  %v8222_v17 = vld [vmem:[#allocation11_spill] sm:$0xff] }
 0x1f9   : > { %4588 = vst [vmem:[%s7459_s22 + $0x80] sm:$0xff] %v5083_v43  ;;  %v4199_v39 = vadd.f32 %v4039_v35, %v8213_v37  ;;  %v4042_v59 = vadd.f32 %v5555_v16, %v3522_v23  ;;  %v3514_v21 = vadd.f32 %v3513_v56, %v8214_v33  ;;  %v7713_v14 = vmul.f32 %v4375_v38, %v7608_v30  ;;  %v3991_v15 = vpop.f32.mrf.mxu0  ;;  %v8223_v23 = vld [vmem:[#allocation16_spill] sm:$0xff] }
 0x1fa   : > { %vm4463_vm3 = vcmp.gt.f32.partialorder %v4430_v12, %v7184_v44  ;;  %4559 = vst [vmem:[%s7438_s19 + $0x98] sm:$0xff] %v4430_v12  ;;  %v4428_v2 = vadd.f32 %v8215_v28, %v4235_v40  ;;  %v4240_v0 = vadd.f32 %v7409_v31, %v4201_v51  ;;  %vm7721_vm4 = vcmp.lt.s32.totalorder %v627_v50, 15  ;;  %v5525_v35 = vpop.f32.mrf.mxu1  ;;  %v8224_v40 = vld [vmem:[#allocation56_spill] sm:$0xff] }
 0x1fb   : > { %v7725_v9 = vmul.f32 0.25, %v4282_v42  ;;  %v5086_v20 = vsel %vm4463_vm3, 1.0, %v5732_v46  ;;  %v4238_v30 = vadd.f32 %v7409_v31, %v4199_v39  ;;  %v4170_v38 = vsel %vm7652_vm12, %v4042_v59, 0.0  ;;  %v5562_v43 = vpop.f32.mrf.mxu0  ;;  %v8227_v37 = vld [vmem:[#allocation60_spill] sm:$0xff] }
 0x1fc   : > { %v4040_v62 = vadd.f32 %v3975_v41, %v3514_v21  ;;  %4591 = vst [vmem:[%s7459_s22 + $0x98] sm:$0xff] %v5086_v20  ;;  %vm4461_vm5 = vcmp.gt.f32.partialorder %v4428_v2, %v7184_v44  ;;  %4557 = vst [vmem:[%s7438_s19 + $0x88] sm:$0xff] %v4428_v2  ;;  %v4433_v50 = vadd.f32 %v8218_v4, %v4240_v0  ;;  %v8221_v41 = vld [vmem:[#allocation15_spill] sm:$0xff]  ;;  %v3529_v51 = vpop.f32.mrf.mxu1  ;;  %vm7761_vm8 = vcmp.lt.s32.totalorder %v669_v18, 15  ;;  %v8228_v33 = vld [vmem:[#allocation4_spill] sm:$0xff] }
 0x1fd   : > { %v4202_v7 = vadd.f32 %v4170_v38, %v8219_v34  ;;  %v3535_v24 = vadd.f32 %v5524_v36, %v8220_v27  ;;  %v5084_v47 = vsel %vm4461_vm5, 1.0, %v5732_v46  ;;  %v4431_v48 = vadd.f32 %v7413_v6, %v4238_v30  ;;  %v4004_v28 = vpop.f32.mrf.mxu0  ;;  %v8232_v38 = vld [vmem:[#allocation24_spill] sm:$0xff]  ;;  %v8233_v34 = vld [vmem:[#allocation62_spill] sm:$0xff] }
 0x1fe   : > { %v4168_v52 = vsel %vm7666_vm14, %v4040_v62, 0.0  ;;  %v3527_v58 = vadd.f32 %v3526_v26, %v8221_v41  ;;  %4589 = vst [vmem:[%s7459_s22 + $0x88] sm:$0xff] %v5084_v47  ;;  %vm4466_vm6 = vcmp.gt.f32.partialorder %v4433_v50, %v7184_v44  ;;  %4562 = vst [vmem:[%s7438_s19 + $0xb0] sm:$0xff] %v4433_v50  ;;  %v3538_v42 = vadd.f32 %v5525_v35, %v8223_v23  ;;  %v5528_v18 = vpop.f32.mrf.mxu1  ;;  %v8234_v27 = vld [vmem:[#allocation28_spill] sm:$0xff]  ;;  %v8235_v41 = vld [vmem:[#allocation63_spill] sm:$0xff] }
 0x1ff   : > { %v4241_v29 = vadd.f32 %v7409_v31, %v4202_v7  ;;  %v4200_v55 = vadd.f32 %v4168_v52, %v8222_v17  ;;  %v4045_v53 = vadd.f32 %v5558_v57, %v3535_v24  ;;  %v5089_v6 = vsel %vm4466_vm6, 1.0, %v5732_v46  ;;  %4560 = vst [vmem:[%s7438_s19 + $0xa0] sm:$0xff] %v4431_v48 }
 0x200   : > { %vm4464_vm7 = vcmp.gt.f32.partialorder %v4431_v48, %v7184_v44  ;;  %v4043_v11 = vadd.f32 %v3988_v32, %v3527_v58  ;;  %4594 = vst [vmem:[%s7459_s22 + $0xb0] sm:$0xff] %v5089_v6  ;;  %v4046_v59 = vadd.f32 %v5559_v25, %v3538_v42  ;;  %v3530_v21 = vadd.f32 %v3529_v51, %v8228_v33  ;;  %v3542_v25 = vpop.f32.mrf.mxu1  ;;  %v5563_v48 = vpop.f32.mrf.mxu0  ;;  %v8239_v33 = vld [vmem:[#allocation31_spill] sm:$0xff] }
 0x201   : > { %v5087_v49 = vsel %vm4464_vm7, 1.0, %v5732_v46  ;;  %v4434_v12 = vadd.f32 %v7422_v61, %v4241_v29  ;;  %v4239_v57 = vadd.f32 %v7409_v31, %v4200_v55  ;;  %v4205_v54 = vadd.f32 %v4045_v53, %v8224_v40  ;;  %v8236_v53 = vld [vmem:[#allocation64_spill] sm:$0xff] }
 0x202   : > { %4592 = vst [vmem:[%s7459_s22 + $0xa0] sm:$0xff] %v5087_v49  ;;  %v4203_v39 = vadd.f32 %v4043_v11, %v8227_v37  ;;  %v4378_v61 = vsub.f32 1.0, %v7748_v10  ;;  %vm7775_vm10 = vcmp.lt.s32.totalorder %v655_v60, 15  ;;  %v4174_v20 = vsel %vm7703_vm2, %v4046_v59, 0.0  ;;  %v8231_v60 = vld [vmem:[#allocation29_spill] sm:$0xff]  ;;  %v5529_v47 = vpop.f32.mrf.mxu1  ;;  %v8237_v11 = vld [vmem:[#allocation67_spill] sm:$0xff]  ;;  %v4007_v40 = vpop.f32.mrf.mxu0 }
 0x203   : > { %vm4467_vm9 = vcmp.gt.f32.partialorder %v4434_v12, %v7184_v44  ;;  %4563 = vst [vmem:[%s7438_s19 + $0xb8] sm:$0xff] %v4434_v12  ;;  %v4432_v32 = vadd.f32 %v7424_v1, %v4239_v57  ;;  %v4244_v22 = vadd.f32 %v7409_v31, %v4205_v54  ;;  %v4044_v1 = vadd.f32 %v3991_v15, %v3530_v21  ;;  %v4344_v15 = vld [vmem:[%s7075_s13 + $0xe8] sm:$0xff] }
 0x204   : > { %v5090_v0 = vsel %vm4467_vm9, 1.0, %v5732_v46  ;;  %v4242_v36 = vadd.f32 %v7409_v31, %v4203_v39  ;;  %v4206_v30 = vadd.f32 %v4174_v20, %v8231_v60  ;;  %v3551_v62 = vadd.f32 %v5528_v18, %v8232_v38  ;;  %v3545_v6 = vpop.f32.mrf.mxu1 }
 0x205   : > { %4595 = vst [vmem:[%s7459_s22 + $0xb8] sm:$0xff] %v5090_v0  ;;  %vm4465_vm11 = vcmp.gt.f32.partialorder %v4432_v32, %v7184_v44  ;;  %4561 = vst [vmem:[%s7438_s19 + $0xa8] sm:$0xff] %v4432_v32  ;;  %v4437_v5 = vadd.f32 %v7426_v63, %v4244_v22  ;;  %v4172_v50 = vsel %vm7721_vm4, %v4044_v1, 0.0  ;;  %v3543_v7 = vadd.f32 %v3542_v25, %v8233_v34 }
 0x206   : > { %v5088_v4 = vsel %vm4465_vm11, 1.0, %v5732_v46  ;;  %v4435_v19 = vadd.f32 %v7446_v45, %v4242_v36  ;;  %v4245_v63 = vadd.f32 %v7409_v31, %v4206_v30  ;;  %v4204_v24 = vadd.f32 %v4172_v50, %v8234_v27  ;;  %v4280_v45 = vld [vmem:[%s7069_s10 + $0xe8] sm:$0xff] }
 0x207   : > { %4593 = vst [vmem:[%s7459_s22 + $0xa8] sm:$0xff] %v5088_v4  ;;  %vm4470_vm12 = vcmp.gt.f32.partialorder %v4437_v5, %v7184_v44  ;;  %4566 = vst [vmem:[%s7438_s19 + $0xd0] sm:$0xff] %v4437_v5  ;;  %v4049_v26 = vadd.f32 %v5562_v43, %v3551_v62  ;;  %v4047_v52 = vadd.f32 %v4004_v28, %v3543_v7  ;;  %v8238_v43 = vld [vmem:[#allocation65_spill] sm:$0xff]  ;;  %v4312_v12 = vmul.f32 0.25, %v4280_v45  ;;  %v8240_v28 = vld [vmem:[#allocation30_spill] sm:$0xff] }
 0x208   : > { %v5093_v16 = vsel %vm4470_vm12, 1.0, %v5732_v46  ;;  %vm4468_vm13 = vcmp.gt.f32.partialorder %v4435_v19, %v7184_v44  ;;  %4564 = vst [vmem:[%s7438_s19 + $0xc0] sm:$0xff] %v4435_v19  ;;  %v3554_v58 = vadd.f32 %v5529_v47, %v8235_v41  ;;  %v4438_v17 = vadd.f32 %v7448_v13, %v4245_v63 }
 0x209   : > { %4598 = vst [vmem:[%s7459_s22 + $0xd0] sm:$0xff] %v5093_v16  ;;  %v5091_v29 = vsel %vm4468_vm13, 1.0, %v5732_v46  ;;  %v4243_v55 = vadd.f32 %v7409_v31, %v4204_v24  ;;  %v4209_v35 = vadd.f32 %v4049_v26, %v8236_v53  ;;  %v4207_v23 = vadd.f32 %v4047_v52, %v8237_v11 }
 0x20a   : > { %4596 = vst [vmem:[%s7459_s22 + $0xc0] sm:$0xff] %v5091_v29  ;;  %v4050_v42 = vadd.f32 %v5563_v48, %v3554_v58  ;;  %v3546_v49 = vadd.f32 %v3545_v6, %v8238_v43  ;;  %vm4471_vm14 = vcmp.gt.f32.partialorder %v4438_v17, %v7184_v44  ;;  %4567 = vst [vmem:[%s7438_s19 + $0xd8] sm:$0xff] %v4438_v17  ;;  %v4376_v54 = vsub.f32 1.0, %v4344_v15 }
 0x20b   : > { %v4436_v57 = vadd.f32 %v7508_v3, %v4243_v55  ;;  %v4248_v13 = vadd.f32 %v7409_v31, %v4209_v35  ;;  %v5094_v51 = vsel %vm4471_vm14, 1.0, %v5732_v46  ;;  %v4246_v37 = vadd.f32 %v7409_v31, %v4207_v23 }
 0x20c   : > { %v4178_v39 = vsel %vm7761_vm8, %v4050_v42, 0.0  ;;  %v4048_v59 = vadd.f32 %v4007_v40, %v3546_v49  ;;  %4599 = vst [vmem:[%s7459_s22 + $0xd8] sm:$0xff] %v5094_v51  ;;  %v4410_v32 = vmul.f32 %v4378_v61, %v7725_v9  ;;  %v4408_v9 = vmul.f32 %v4376_v54, %v4312_v12 }
 0x20d   : > { %vm4469_vm15 = vcmp.gt.f32.partialorder %v4436_v57, %v7184_v44  ;;  %4565 = vst [vmem:[%s7438_s19 + $0xc8] sm:$0xff] %v4436_v57  ;;  %v4441_v3 = vadd.f32 %v7564_v8, %v4248_v13  ;;  %v4210_v21 = vadd.f32 %v4178_v39, %v8239_v33  ;;  %v4439_v56 = vadd.f32 %v7713_v14, %v4246_v37 }
 0x20e   : > { %v5092_v22 = vsel %vm4469_vm15, 1.0, %v5732_v46  ;;  %v4176_v18 = vsel %vm7775_vm10, %v4048_v59, 0.0 }
 0x20f   : > { %4597 = vst [vmem:[%s7459_s22 + $0xc8] sm:$0xff] %v5092_v22  ;;  %vm4474_vm0 = vcmp.gt.f32.partialorder %v4441_v3, %v7184_v44  ;;  %4570 = vst [vmem:[%s7438_s19 + $0xf0] sm:$0xff] %v4441_v3  ;;  %v4249_v8 = vadd.f32 %v7409_v31, %v4210_v21  ;;  %v4208_v0 = vadd.f32 %v4176_v18, %v8240_v28 }
 0x210   : > { %v5097_v10 = vsel %vm4474_vm0, 1.0, %v5732_v46  ;;  %vm4472_vm1 = vcmp.gt.f32.partialorder %v4439_v56, %v7184_v44  ;;  %4568 = vst [vmem:[%s7438_s19 + $0xe0] sm:$0xff] %v4439_v56 }
 0x211   : > { %4602 = vst [vmem:[%s7459_s22 + $0xf0] sm:$0xff] %v5097_v10  ;;  %v5095_v14 = vsel %vm4472_vm1, 1.0, %v5732_v46  ;;  %v4442_v61 = vadd.f32 %v4410_v32, %v4249_v8  ;;  %v4247_v2 = vadd.f32 %v7409_v31, %v4208_v0 }
 0x212   : > { %4600 = vst [vmem:[%s7459_s22 + $0xe0] sm:$0xff] %v5095_v14 }
 0x213   : > { %vm4475_vm2 = vcmp.gt.f32.partialorder %v4442_v61, %v7184_v44  ;;  %4571 = vst [vmem:[%s7438_s19 + $0xf8] sm:$0xff] %v4442_v61  ;;  %v4440_v36 = vadd.f32 %v4408_v9, %v4247_v2 }
 0x214   : > { %v5098_v20 = vsel %vm4475_vm2, 1.0, %v5732_v46 }
 0x215   : > { %4603 = vst [vmem:[%s7459_s22 + $0xf8] sm:$0xff] %v5098_v20  ;;  %vm4473_vm3 = vcmp.gt.f32.partialorder %v4440_v36, %v7184_v44  ;;  %4569 = vst [vmem:[%s7438_s19 + $0xe8] sm:$0xff] %v4440_v36 }
 0x216   : > { %v5096_v1 = vsel %vm4473_vm3, 1.0, %v5732_v46 }
 0x217   : > { %4601 = vst [vmem:[%s7459_s22 + $0xe8] sm:$0xff] %v5096_v1 }
 0x218 PF: > { %s19_s28 = sadd.s32 1, %s5730_s28   ;;  %s8241_s26 = smov %s5726_s27 }
 0x219   : > { %p16_p5 = scmp.ge.s32.totalorder %s19_s28, 4   ;;  %s8242_s27 = smov %s8244_s0 }
 0x21b   :  { %18 = sbr.rel (!%p16_p5) target bundleno = 2 (0x2), region = 106 }

</bundles_post_ra>
